<compile_context>
chip_gen: v6e
topology: v6e:2x2x1
jax: 0.10.0
libtpu: 0.0.40
codegen_flags: <defaults>
</compile_context>

<pallas_src>
import functools

import jax
import jax.numpy as jnp
from jax import lax
from jax.experimental import pallas as pl
from jax.experimental.pallas import tpu as pltpu


# ----------------------------------------------------------------------------
# In-kernel helpers
# ----------------------------------------------------------------------------

def _layer_norm(x, w, b, eps=1e-5):
    mu = jnp.mean(x, axis=-1, keepdims=True)
    var = jnp.mean((x - mu) ** 2, axis=-1, keepdims=True)
    return (x - mu) * lax.rsqrt(var + eps) * w + b


def _mm(a, w):
    """(..., K) @ (K, N) on the MXU: bf16 operands, f32 accumulation."""
    return lax.dot_general(
        a.astype(jnp.bfloat16), w,
        dimension_numbers=(((a.ndim - 1,), (0,)), ((), ())),
        preferred_element_type=jnp.float32)


# ----------------------------------------------------------------------------
# Fused kernel factory
# ----------------------------------------------------------------------------

def make_fused_kernel(*, K, T_out, nhead, n_lstm, n_trans):
    """conv1d -> LSTM stack -> +PE -> transformer stack -> final linear head,
    all inside one pallas_call (everything stays in VMEM/vregs)."""

    def kernel(*refs):
        it = iter(refs)
        x_ref = next(it)          # (B, T, Cin)      f32
        pe_ref = next(it)         # (T_out, D)       f32
        conv_w_ref = next(it)     # (K*Cin, Cout)    bf16
        conv_b_ref = next(it)     # (1, Cout)        f32
        lstm_ws = [(next(it), next(it), next(it)) for _ in range(n_lstm)]
        tr_ws = [tuple(next(it) for _ in range(12)) for _ in range(n_trans)]
        fc_w_ref = next(it)       # (D, out)         bf16
        fc_b_ref = next(it)       # (1, out)         f32
        o_ref = next(it)          # (B, out)         f32 output
        seq_ref = next(it)        # (B, T_out, H)    f32 VMEM scratch

        x = x_ref[...]
        B = x.shape[0]

        # ---- Conv1d over time as ONE matmul on a (B, T_out, K*Cin) window view.
        xw = jnp.concatenate([x[:, k:k + T_out, :] for k in range(K)], axis=-1)
        h = _mm(xw, conv_w_ref[...]) + conv_b_ref[...]          # (B, T_out, Cout)

        # ---- LSTM stack (PyTorch gate order i, f, g, o). Input projection is
        #      hoisted out of the recurrence; the time loop is fully unrolled.
        # TODO(synk): dropout between stacked LSTM layers is training-only;
        #             eval semantics (identity) implemented here.
        for wih_ref, whh_ref, b_ref in lstm_ws:
            wih = wih_ref[...]                                  # bf16 (Cin, 4H)
            whh = whh_ref[...]                                  # bf16 (H, 4H)
            H = whh.shape[0]
            xg = _mm(h, wih) + b_ref[...]                       # (B, T_out, 4H) f32
            h_t = jnp.zeros((B, H), jnp.float32)
            c_t = jnp.zeros((B, H), jnp.float32)
            for t in range(T_out):                              # static, unrolled
                gates = xg[:, t, :] + _mm(h_t, whh)             # (B, 4H)
                i_g = jax.nn.sigmoid(gates[:, 0 * H:1 * H])
                f_g = jax.nn.sigmoid(gates[:, 1 * H:2 * H])
                g_g = jnp.tanh(gates[:, 2 * H:3 * H])
                o_g = jax.nn.sigmoid(gates[:, 3 * H:4 * H])
                c_t = f_g * c_t + i_g * g_g
                h_t = o_g * jnp.tanh(c_t)
                seq_ref[:, t, :] = h_t                          # assemble sequence
            h = seq_ref[...]                                    # (B, T_out, H)

        # lstm_hidden == d_model in this config -> projection is nn.Identity.
        # TODO(synk): add the optional Linear projection when lstm_hidden != d_model.

        # ---- Learned cyclic positional encoding (table gathered outside kernel).
        h = h + pe_ref[...]

        # ---- Transformer encoder stack (post-norm, ReLU FFN, no mask, dropout=eval).
        for (wqkv_ref, bqkv_ref, wo_ref, bo_ref, ln1w_ref, ln1b_ref,
             w1_ref, b1_ref, w2_ref, b2_ref, ln2w_ref, ln2b_ref) in tr_ws:
            D = wo_ref.shape[0]
            hd = D // nhead
            scale = 1.0 / float(hd) ** 0.5
            wo = wo_ref[...]                                    # bf16 (D, D)

            qkv = _mm(h, wqkv_ref[...]) + bqkv_ref[...]         # (B, T_out, 3D)
            q, k, v = qkv[..., 0:D], qkv[..., D:2 * D], qkv[..., 2 * D:3 * D]

            # Per-head attention; the head concat is folded into per-head slices
            # of the output projection accumulated into one (B, T, D) buffer.
            attn = jnp.zeros_like(h)
            for hh in range(nhead):                             # static, small
                sl = slice(hh * hd, (hh + 1) * hd)
                s = jnp.einsum('btd,bsd->bts',
                               q[..., sl].astype(jnp.bfloat16),
                               k[..., sl].astype(jnp.bfloat16),
                               preferred_element_type=jnp.float32) * scale
                s = s - jnp.max(s, axis=-1, keepdims=True)
                p = jnp.exp(s)
                p = p * pl.reciprocal(jnp.sum(p, axis=-1, keepdims=True),
                                      approx=True)
                head = jnp.einsum('bts,bsd->btd',
                                  p.astype(jnp.bfloat16),
                                  v[..., sl].astype(jnp.bfloat16),
                                  preferred_element_type=jnp.float32)
                attn = attn + _mm(head, wo[sl, :])
            attn = attn + bo_ref[...]

            x1 = _layer_norm(h + attn, ln1w_ref[...], ln1b_ref[...])
            ffn = jnp.maximum(_mm(x1, w1_ref[...]) + b1_ref[...], 0.0)
            ffn = _mm(ffn, w2_ref[...]) + b2_ref[...]
            h = _layer_norm(x1 + ffn, ln2w_ref[...], ln2b_ref[...])

        # ---- Many-to-1 head on the final timestep.
        final = h[:, T_out - 1, :]                              # (B, D)
        o_ref[...] = _mm(final, fc_w_ref[...]) + fc_b_ref[...]

    return kernel


# ----------------------------------------------------------------------------
# Parameter init (deterministic; PyTorch-shape correspondence noted inline)
# ----------------------------------------------------------------------------

def init_params(key, *, input_dim, n_filters, kernel_size, lstm_hidden,
                lstm_num_layers, d_model, nhead, num_transformer_layers,
                dim_feedforward, output_dim, max_len=5000):
    keys = iter(jax.random.split(key, 128))
    bf = jnp.bfloat16

    def u(shape, scale=0.1, dtype=jnp.float32):
        w = jax.random.uniform(next(keys), shape, jnp.float32, -scale, scale)
        return w.astype(dtype)

    p = {}
    # Conv1d: torch weight (Cout, Cin, K) -> transpose (K, Cin, Cout) -> reshape
    # (K*Cin, Cout); bias (Cout,) -> (1, Cout).
    p['conv_w'] = u((kernel_size * input_dim, n_filters), dtype=bf)
    p['conv_b'] = u((1, n_filters))

    # LSTM: torch weight_ih (4H, in) -> (in, 4H); weight_hh (4H, H) -> (H, 4H);
    # bias = b_ih + b_hh combined -> (1, 4H) (sum both torch biases when porting).
    p['lstm'] = []
    in_dim = n_filters
    for _ in range(lstm_num_layers):
        p['lstm'].append({'wih': u((in_dim, 4 * lstm_hidden), dtype=bf),
                          'whh': u((lstm_hidden, 4 * lstm_hidden), dtype=bf),
                          'b': u((1, 4 * lstm_hidden))})
        in_dim = lstm_hidden

    # Learned cyclic positional-encoding tables (uniform(-0.1, 0.1) as in torch).
    d_part = d_model // 4
    d_global = d_model - 3 * d_part
    p['global_pe'] = u((max_len, d_global))
    p['week_pe'] = u((5, d_part))
    p['month_pe'] = u((25, d_part))
    p['year_pe'] = u((252, d_part))

    # TransformerEncoder layers: in_proj_weight (3D, D) -> (D, 3D); out_proj
    # (D, D) -> (D, D); linear1 (F, D) -> (D, F); linear2 (D, F) -> (F, D).
    p['layers'] = []
    for _ in range(num_transformer_layers):
        p['layers'].append({
            'wqkv': u((d_model, 3 * d_model), dtype=bf),
            'bqkv': u((1, 3 * d_model)),
            'wo': u((d_model, d_model), dtype=bf),
            'bo': u((1, d_model)),
            'ln1w': jnp.ones((1, d_model), jnp.float32),
            'ln1b': jnp.zeros((1, d_model), jnp.float32),
            'w1': u((d_model, dim_feedforward), dtype=bf),
            'b1': u((1, dim_feedforward)),
            'w2': u((dim_feedforward, d_model), dtype=bf),
            'b2': u((1, d_model)),
            'ln2w': jnp.ones((1, d_model), jnp.float32),
            'ln2b': jnp.zeros((1, d_model), jnp.float32),
        })

    # fc_out: torch weight (out, D) -> (D, out); bias (out,) -> (1, out).
    p['fc_w'] = u((d_model, output_dim), dtype=bf)
    p['fc_b'] = u((1, output_dim))
    return p


# ----------------------------------------------------------------------------
# Forward pass (eval mode: dropout = identity); one pallas_call total.
# ----------------------------------------------------------------------------

@functools.partial(jax.jit, static_argnames=("kernel_size", "nhead"))
def cnn_lstm_transformer_forward(x, params, *, kernel_size, nhead):
    B, T, _ = x.shape
    K = kernel_size
    T1 = T - K + 1
    lstm_hidden = params['lstm'][0]['whh'].shape[0]
    out_dim = params['fc_w'].shape[-1]

    # Positional-encoding table (T1, d_model): tiny gathers fused by jit, fed to
    # the kernel as one small input so the add happens in VMEM.
    pos = jnp.arange(T1)
    pe = jnp.concatenate([
        params['global_pe'][:T1],
        params['week_pe'][pos % params['week_pe'].shape[0]],
        params['month_pe'][pos % params['month_pe'].shape[0]],
        params['year_pe'][pos % params['year_pe'].shape[0]],
    ], axis=-1)

    inputs = [x, pe, params['conv_w'], params['conv_b']]
    for lyr in params['lstm']:
        inputs += [lyr['wih'], lyr['whh'], lyr['b']]
    for lyr in params['layers']:
        inputs += [lyr['wqkv'], lyr['bqkv'], lyr['wo'], lyr['bo'],
                   lyr['ln1w'], lyr['ln1b'], lyr['w1'], lyr['b1'],
                   lyr['w2'], lyr['b2'], lyr['ln2w'], lyr['ln2b']]
    inputs += [params['fc_w'], params['fc_b']]

    kernel = make_fused_kernel(K=K, T_out=T1, nhead=nhead,
                               n_lstm=len(params['lstm']),
                               n_trans=len(params['layers']))

    vmem = pl.BlockSpec(memory_space=pltpu.MemorySpace.VMEM)
    # NOTE: at larger B/T/d_model, add a grid over B with tiled BlockSpecs and
    # dimension_semantics=("parallel",) (v7x 2-TC) + explicit vmem_limit_bytes.
    return pl.pallas_call(
        kernel,
        out_shape=jax.ShapeDtypeStruct((B, out_dim), jnp.float32),
        in_specs=[vmem] * len(inputs),
        out_specs=vmem,
        scratch_shapes=[pltpu.VMEM((B, T1, lstm_hidden), jnp.float32)],
    )(*inputs)


# ----------------------------------------------------------------------------
# Demo
# ----------------------------------------------------------------------------

if __name__ == "__main__":
    cfg = dict(input_dim=4, n_filters=8, kernel_size=3,
               lstm_hidden=32, lstm_num_layers=1,
               d_model=32, nhead=4, num_transformer_layers=2,
               dim_feedforward=64, output_dim=1)
    B, T = 2, 8

    key = jax.random.PRNGKey(0)
    k_x, k_p = jax.random.split(key)
    x = jax.random.normal(k_x, (B, T, cfg['input_dim']), jnp.float32)

    params = init_params(
        k_p,
        input_dim=cfg['input_dim'], n_filters=cfg['n_filters'],
        kernel_size=cfg['kernel_size'], lstm_hidden=cfg['lstm_hidden'],
        lstm_num_layers=cfg['lstm_num_layers'], d_model=cfg['d_model'],
        nhead=cfg['nhead'], num_transformer_layers=cfg['num_transformer_layers'],
        dim_feedforward=cfg['dim_feedforward'], output_dim=cfg['output_dim'])

    preds = cnn_lstm_transformer_forward(
        x, params, kernel_size=cfg['kernel_size'], nhead=cfg['nhead'])
    preds = jax.block_until_ready(preds)
    assert preds.shape == (B, cfg['output_dim'])
    assert bool(jnp.all(jnp.isfinite(preds)))
    print("KERNEL_OK")
</pallas_src>

<mosaic_0001>
module attributes {stable_mosaic.version = 11 : i64} {
  func.func @kernel(%arg0: memref<2x8x4xf32, #tpu.memory_space<vmem>>, %arg1: memref<6x32xf32, #tpu.memory_space<vmem>>, %arg2: memref<12x8xbf16, #tpu.memory_space<vmem>>, %arg3: memref<1x8xf32, #tpu.memory_space<vmem>>, %arg4: memref<8x128xbf16, #tpu.memory_space<vmem>>, %arg5: memref<32x128xbf16, #tpu.memory_space<vmem>>, %arg6: memref<1x128xf32, #tpu.memory_space<vmem>>, %arg7: memref<32x96xbf16, #tpu.memory_space<vmem>>, %arg8: memref<1x96xf32, #tpu.memory_space<vmem>>, %arg9: memref<32x32xbf16, #tpu.memory_space<vmem>>, %arg10: memref<1x32xf32, #tpu.memory_space<vmem>>, %arg11: memref<1x32xf32, #tpu.memory_space<vmem>>, %arg12: memref<1x32xf32, #tpu.memory_space<vmem>>, %arg13: memref<32x64xbf16, #tpu.memory_space<vmem>>, %arg14: memref<1x64xf32, #tpu.memory_space<vmem>>, %arg15: memref<64x32xbf16, #tpu.memory_space<vmem>>, %arg16: memref<1x32xf32, #tpu.memory_space<vmem>>, %arg17: memref<1x32xf32, #tpu.memory_space<vmem>>, %arg18: memref<1x32xf32, #tpu.memory_space<vmem>>, %arg19: memref<32x96xbf16, #tpu.memory_space<vmem>>, %arg20: memref<1x96xf32, #tpu.memory_space<vmem>>, %arg21: memref<32x32xbf16, #tpu.memory_space<vmem>>, %arg22: memref<1x32xf32, #tpu.memory_space<vmem>>, %arg23: memref<1x32xf32, #tpu.memory_space<vmem>>, %arg24: memref<1x32xf32, #tpu.memory_space<vmem>>, %arg25: memref<32x64xbf16, #tpu.memory_space<vmem>>, %arg26: memref<1x64xf32, #tpu.memory_space<vmem>>, %arg27: memref<64x32xbf16, #tpu.memory_space<vmem>>, %arg28: memref<1x32xf32, #tpu.memory_space<vmem>>, %arg29: memref<1x32xf32, #tpu.memory_space<vmem>>, %arg30: memref<1x32xf32, #tpu.memory_space<vmem>>, %arg31: memref<32x1xbf16, #tpu.memory_space<vmem>>, %arg32: memref<1x1xf32, #tpu.memory_space<vmem>>, %arg33: memref<2x1xf32, #tpu.memory_space<vmem>>, %arg34: memref<2x6x32xf32, #tpu.memory_space<vmem>>) attributes {dimension_semantics = [], scalar_prefetch = 0 : i64, scratch_operands = 1 : i64, tpu.core_type = #tpu.core_type<tc>} {
    %c0 = arith.constant 0 : index
    %c0_0 = arith.constant 0 : index
    %c0_1 = arith.constant 0 : index
    %0 = vector.load %arg0[%c0, %c0_0, %c0_1] : memref<2x8x4xf32, #tpu.memory_space<vmem>>, vector<2x8x4xf32>
    %1 = vector.extract_strided_slice %0 {offsets = [0, 0, 0], sizes = [2, 6, 4], strides = [1, 1, 1]} : vector<2x8x4xf32> to vector<2x6x4xf32>
    %2 = vector.extract_strided_slice %0 {offsets = [0, 1, 0], sizes = [2, 6, 4], strides = [1, 1, 1]} : vector<2x8x4xf32> to vector<2x6x4xf32>
    %3 = vector.extract_strided_slice %0 {offsets = [0, 2, 0], sizes = [2, 6, 4], strides = [1, 1, 1]} : vector<2x8x4xf32> to vector<2x6x4xf32>
    %4 = tpu.concatenate %1, %2, %3 in 2 : vector<2x6x4xf32>, vector<2x6x4xf32>, vector<2x6x4xf32> -> vector<2x6x12xf32>
    %c0_2 = arith.constant 0 : index
    %c0_3 = arith.constant 0 : index
    %5 = vector.load %arg2[%c0_2, %c0_3] : memref<12x8xbf16, #tpu.memory_space<vmem>>, vector<12x8xbf16>
    %6 = arith.truncf %4 : vector<2x6x12xf32> to vector<2x6x12xbf16>
    %cst = arith.constant dense<0.000000e+00> : vector<2x6x8xf32>
    %7 = tpu.matmul %6, %5, %cst {dimension_numbers = #tpu.dot_dimension_numbers<[2], [0], [0, 1], [1], [0, 0, 0, 1, 1, 1], [], []>} : vector<2x6x12xbf16>, vector<12x8xbf16>, vector<2x6x8xf32> -> vector<2x6x8xf32>
    %c0_4 = arith.constant 0 : index
    %c0_5 = arith.constant 0 : index
    %8 = vector.load %arg3[%c0_4, %c0_5] : memref<1x8xf32, #tpu.memory_space<vmem>>, vector<1x8xf32>
    %9 = vector.shape_cast %8 : vector<1x8xf32> to vector<1x1x8xf32>
    %10 = vector.broadcast %9 : vector<1x1x8xf32> to vector<2x6x8xf32>
    %11 = arith.addf %7, %10 : vector<2x6x8xf32>
    %c0_6 = arith.constant 0 : index
    %c0_7 = arith.constant 0 : index
    %12 = vector.load %arg4[%c0_6, %c0_7] : memref<8x128xbf16, #tpu.memory_space<vmem>>, vector<8x128xbf16>
    %c0_8 = arith.constant 0 : index
    %c0_9 = arith.constant 0 : index
    %13 = vector.load %arg5[%c0_8, %c0_9] : memref<32x128xbf16, #tpu.memory_space<vmem>>, vector<32x128xbf16>
    %14 = arith.truncf %11 : vector<2x6x8xf32> to vector<2x6x8xbf16>
    %cst_10 = arith.constant dense<0.000000e+00> : vector<2x6x128xf32>
    %15 = tpu.matmul %14, %12, %cst_10 {dimension_numbers = #tpu.dot_dimension_numbers<[2], [0], [0, 1], [1], [0, 0, 0, 1, 1, 1], [], []>} : vector<2x6x8xbf16>, vector<8x128xbf16>, vector<2x6x128xf32> -> vector<2x6x128xf32>
    %c0_11 = arith.constant 0 : index
    %c0_12 = arith.constant 0 : index
    %16 = vector.load %arg6[%c0_11, %c0_12] : memref<1x128xf32, #tpu.memory_space<vmem>>, vector<1x128xf32>
    %17 = vector.shape_cast %16 : vector<1x128xf32> to vector<1x1x128xf32>
    %18 = vector.broadcast %17 : vector<1x1x128xf32> to vector<2x6x128xf32>
    %19 = arith.addf %15, %18 : vector<2x6x128xf32>
    %cst_13 = arith.constant 0.000000e+00 : f32
    %20 = vector.broadcast %cst_13 : f32 to vector<2x32xf32>
    %cst_14 = arith.constant 0.000000e+00 : f32
    %21 = vector.broadcast %cst_14 : f32 to vector<2x32xf32>
    %22 = vector.extract_strided_slice %19 {offsets = [0, 0, 0], sizes = [2, 1, 128], strides = [1, 1, 1]} : vector<2x6x128xf32> to vector<2x1x128xf32>
    %23 = vector.shape_cast %22 : vector<2x1x128xf32> to vector<2x128xf32>
    %24 = arith.truncf %20 : vector<2x32xf32> to vector<2x32xbf16>
    %cst_15 = arith.constant dense<0.000000e+00> : vector<2x128xf32>
    %25 = tpu.matmul %24, %13, %cst_15 {dimension_numbers = #tpu.dot_dimension_numbers<[1], [0], [0], [1], [0, 0, 1, 1], [], []>} : vector<2x32xbf16>, vector<32x128xbf16>, vector<2x128xf32> -> vector<2x128xf32>
    %26 = arith.addf %23, %25 : vector<2x128xf32>
    %27 = vector.extract_strided_slice %26 {offsets = [0, 0], sizes = [2, 32], strides = [1, 1]} : vector<2x128xf32> to vector<2x32xf32>
    %28 = arith.negf %27 : vector<2x32xf32>
    %29 = math.exp %28 : vector<2x32xf32>
    %cst_16 = arith.constant 1.000000e+00 : f32
    %30 = vector.broadcast %cst_16 : f32 to vector<2x32xf32>
    %31 = arith.addf %30, %29 : vector<2x32xf32>
    %32 = arith.divf %30, %31 : vector<2x32xf32>
    %33 = vector.extract_strided_slice %26 {offsets = [0, 32], sizes = [2, 32], strides = [1, 1]} : vector<2x128xf32> to vector<2x32xf32>
    %34 = arith.negf %33 : vector<2x32xf32>
    %35 = math.exp %34 : vector<2x32xf32>
    %cst_17 = arith.constant 1.000000e+00 : f32
    %36 = vector.broadcast %cst_17 : f32 to vector<2x32xf32>
    %37 = arith.addf %36, %35 : vector<2x32xf32>
    %38 = arith.divf %36, %37 : vector<2x32xf32>
    %39 = vector.extract_strided_slice %26 {offsets = [0, 64], sizes = [2, 32], strides = [1, 1]} : vector<2x128xf32> to vector<2x32xf32>
    %40 = math.tanh %39 : vector<2x32xf32>
    %41 = vector.extract_strided_slice %26 {offsets = [0, 96], sizes = [2, 32], strides = [1, 1]} : vector<2x128xf32> to vector<2x32xf32>
    %42 = arith.negf %41 : vector<2x32xf32>
    %43 = math.exp %42 : vector<2x32xf32>
    %cst_18 = arith.constant 1.000000e+00 : f32
    %44 = vector.broadcast %cst_18 : f32 to vector<2x32xf32>
    %45 = arith.addf %44, %43 : vector<2x32xf32>
    %46 = arith.divf %44, %45 : vector<2x32xf32>
    %47 = arith.mulf %38, %21 : vector<2x32xf32>
    %48 = arith.mulf %32, %40 : vector<2x32xf32>
    %49 = arith.addf %47, %48 : vector<2x32xf32>
    %50 = math.tanh %49 : vector<2x32xf32>
    %51 = arith.mulf %46, %50 : vector<2x32xf32>
    %c0_19 = arith.constant 0 : index
    %c0_20 = arith.constant 0 : index
    %c0_21 = arith.constant 0 : index
    %52 = vector.load %arg34[%c0_19, %c0_20, %c0_21] : memref<2x6x32xf32, #tpu.memory_space<vmem>>, vector<2x1x32xf32>
    %53 = vector.shape_cast %52 : vector<2x1x32xf32> to vector<2x32xf32>
    %54 = vector.shape_cast %51 : vector<2x32xf32> to vector<2x1x32xf32>
    tpu.vector_store %arg34[%c0_19, %c0_20, %c0_21], %54 {strides = array<i32>} : memref<2x6x32xf32, #tpu.memory_space<vmem>>, vector<2x1x32xf32>,
    %55 = vector.extract_strided_slice %19 {offsets = [0, 1, 0], sizes = [2, 1, 128], strides = [1, 1, 1]} : vector<2x6x128xf32> to vector<2x1x128xf32>
    %56 = vector.shape_cast %55 : vector<2x1x128xf32> to vector<2x128xf32>
    %57 = arith.truncf %51 : vector<2x32xf32> to vector<2x32xbf16>
    %cst_22 = arith.constant dense<0.000000e+00> : vector<2x128xf32>
    %58 = tpu.matmul %57, %13, %cst_22 {dimension_numbers = #tpu.dot_dimension_numbers<[1], [0], [0], [1], [0, 0, 1, 1], [], []>} : vector<2x32xbf16>, vector<32x128xbf16>, vector<2x128xf32> -> vector<2x128xf32>
    %59 = arith.addf %56, %58 : vector<2x128xf32>
    %60 = vector.extract_strided_slice %59 {offsets = [0, 0], sizes = [2, 32], strides = [1, 1]} : vector<2x128xf32> to vector<2x32xf32>
    %61 = arith.negf %60 : vector<2x32xf32>
    %62 = math.exp %61 : vector<2x32xf32>
    %cst_23 = arith.constant 1.000000e+00 : f32
    %63 = vector.broadcast %cst_23 : f32 to vector<2x32xf32>
    %64 = arith.addf %63, %62 : vector<2x32xf32>
    %65 = arith.divf %63, %64 : vector<2x32xf32>
    %66 = vector.extract_strided_slice %59 {offsets = [0, 32], sizes = [2, 32], strides = [1, 1]} : vector<2x128xf32> to vector<2x32xf32>
    %67 = arith.negf %66 : vector<2x32xf32>
    %68 = math.exp %67 : vector<2x32xf32>
    %cst_24 = arith.constant 1.000000e+00 : f32
    %69 = vector.broadcast %cst_24 : f32 to vector<2x32xf32>
    %70 = arith.addf %69, %68 : vector<2x32xf32>
    %71 = arith.divf %69, %70 : vector<2x32xf32>
    %72 = vector.extract_strided_slice %59 {offsets = [0, 64], sizes = [2, 32], strides = [1, 1]} : vector<2x128xf32> to vector<2x32xf32>
    %73 = math.tanh %72 : vector<2x32xf32>
    %74 = vector.extract_strided_slice %59 {offsets = [0, 96], sizes = [2, 32], strides = [1, 1]} : vector<2x128xf32> to vector<2x32xf32>
    %75 = arith.negf %74 : vector<2x32xf32>
    %76 = math.exp %75 : vector<2x32xf32>
    %cst_25 = arith.constant 1.000000e+00 : f32
    %77 = vector.broadcast %cst_25 : f32 to vector<2x32xf32>
    %78 = arith.addf %77, %76 : vector<2x32xf32>
    %79 = arith.divf %77, %78 : vector<2x32xf32>
    %80 = arith.mulf %71, %49 : vector<2x32xf32>
    %81 = arith.mulf %65, %73 : vector<2x32xf32>
    %82 = arith.addf %80, %81 : vector<2x32xf32>
    %83 = math.tanh %82 : vector<2x32xf32>
    %84 = arith.mulf %79, %83 : vector<2x32xf32>
    %c0_26 = arith.constant 0 : index
    %c1 = arith.constant 1 : index
    %c0_27 = arith.constant 0 : index
    %85 = vector.load %arg34[%c0_26, %c1, %c0_27] : memref<2x6x32xf32, #tpu.memory_space<vmem>>, vector<2x1x32xf32>
    %86 = vector.shape_cast %85 : vector<2x1x32xf32> to vector<2x32xf32>
    %87 = vector.shape_cast %84 : vector<2x32xf32> to vector<2x1x32xf32>
    tpu.vector_store %arg34[%c0_26, %c1, %c0_27], %87 {strides = array<i32>} : memref<2x6x32xf32, #tpu.memory_space<vmem>>, vector<2x1x32xf32>,
    %88 = vector.extract_strided_slice %19 {offsets = [0, 2, 0], sizes = [2, 1, 128], strides = [1, 1, 1]} : vector<2x6x128xf32> to vector<2x1x128xf32>
    %89 = vector.shape_cast %88 : vector<2x1x128xf32> to vector<2x128xf32>
    %90 = arith.truncf %84 : vector<2x32xf32> to vector<2x32xbf16>
    %cst_28 = arith.constant dense<0.000000e+00> : vector<2x128xf32>
    %91 = tpu.matmul %90, %13, %cst_28 {dimension_numbers = #tpu.dot_dimension_numbers<[1], [0], [0], [1], [0, 0, 1, 1], [], []>} : vector<2x32xbf16>, vector<32x128xbf16>, vector<2x128xf32> -> vector<2x128xf32>
    %92 = arith.addf %89, %91 : vector<2x128xf32>
    %93 = vector.extract_strided_slice %92 {offsets = [0, 0], sizes = [2, 32], strides = [1, 1]} : vector<2x128xf32> to vector<2x32xf32>
    %94 = arith.negf %93 : vector<2x32xf32>
    %95 = math.exp %94 : vector<2x32xf32>
    %cst_29 = arith.constant 1.000000e+00 : f32
    %96 = vector.broadcast %cst_29 : f32 to vector<2x32xf32>
    %97 = arith.addf %96, %95 : vector<2x32xf32>
    %98 = arith.divf %96, %97 : vector<2x32xf32>
    %99 = vector.extract_strided_slice %92 {offsets = [0, 32], sizes = [2, 32], strides = [1, 1]} : vector<2x128xf32> to vector<2x32xf32>
    %100 = arith.negf %99 : vector<2x32xf32>
    %101 = math.exp %100 : vector<2x32xf32>
    %cst_30 = arith.constant 1.000000e+00 : f32
    %102 = vector.broadcast %cst_30 : f32 to vector<2x32xf32>
    %103 = arith.addf %102, %101 : vector<2x32xf32>
    %104 = arith.divf %102, %103 : vector<2x32xf32>
    %105 = vector.extract_strided_slice %92 {offsets = [0, 64], sizes = [2, 32], strides = [1, 1]} : vector<2x128xf32> to vector<2x32xf32>
    %106 = math.tanh %105 : vector<2x32xf32>
    %107 = vector.extract_strided_slice %92 {offsets = [0, 96], sizes = [2, 32], strides = [1, 1]} : vector<2x128xf32> to vector<2x32xf32>
    %108 = arith.negf %107 : vector<2x32xf32>
    %109 = math.exp %108 : vector<2x32xf32>
    %cst_31 = arith.constant 1.000000e+00 : f32
    %110 = vector.broadcast %cst_31 : f32 to vector<2x32xf32>
    %111 = arith.addf %110, %109 : vector<2x32xf32>
    %112 = arith.divf %110, %111 : vector<2x32xf32>
    %113 = arith.mulf %104, %82 : vector<2x32xf32>
    %114 = arith.mulf %98, %106 : vector<2x32xf32>
    %115 = arith.addf %113, %114 : vector<2x32xf32>
    %116 = math.tanh %115 : vector<2x32xf32>
    %117 = arith.mulf %112, %116 : vector<2x32xf32>
    %c0_32 = arith.constant 0 : index
    %c2 = arith.constant 2 : index
    %c0_33 = arith.constant 0 : index
    %118 = vector.load %arg34[%c0_32, %c2, %c0_33] : memref<2x6x32xf32, #tpu.memory_space<vmem>>, vector<2x1x32xf32>
    %119 = vector.shape_cast %118 : vector<2x1x32xf32> to vector<2x32xf32>
    %120 = vector.shape_cast %117 : vector<2x32xf32> to vector<2x1x32xf32>
    tpu.vector_store %arg34[%c0_32, %c2, %c0_33], %120 {strides = array<i32>} : memref<2x6x32xf32, #tpu.memory_space<vmem>>, vector<2x1x32xf32>,
    %121 = vector.extract_strided_slice %19 {offsets = [0, 3, 0], sizes = [2, 1, 128], strides = [1, 1, 1]} : vector<2x6x128xf32> to vector<2x1x128xf32>
    %122 = vector.shape_cast %121 : vector<2x1x128xf32> to vector<2x128xf32>
    %123 = arith.truncf %117 : vector<2x32xf32> to vector<2x32xbf16>
    %cst_34 = arith.constant dense<0.000000e+00> : vector<2x128xf32>
    %124 = tpu.matmul %123, %13, %cst_34 {dimension_numbers = #tpu.dot_dimension_numbers<[1], [0], [0], [1], [0, 0, 1, 1], [], []>} : vector<2x32xbf16>, vector<32x128xbf16>, vector<2x128xf32> -> vector<2x128xf32>
    %125 = arith.addf %122, %124 : vector<2x128xf32>
    %126 = vector.extract_strided_slice %125 {offsets = [0, 0], sizes = [2, 32], strides = [1, 1]} : vector<2x128xf32> to vector<2x32xf32>
    %127 = arith.negf %126 : vector<2x32xf32>
    %128 = math.exp %127 : vector<2x32xf32>
    %cst_35 = arith.constant 1.000000e+00 : f32
    %129 = vector.broadcast %cst_35 : f32 to vector<2x32xf32>
    %130 = arith.addf %129, %128 : vector<2x32xf32>
    %131 = arith.divf %129, %130 : vector<2x32xf32>
    %132 = vector.extract_strided_slice %125 {offsets = [0, 32], sizes = [2, 32], strides = [1, 1]} : vector<2x128xf32> to vector<2x32xf32>
    %133 = arith.negf %132 : vector<2x32xf32>
    %134 = math.exp %133 : vector<2x32xf32>
    %cst_36 = arith.constant 1.000000e+00 : f32
    %135 = vector.broadcast %cst_36 : f32 to vector<2x32xf32>
    %136 = arith.addf %135, %134 : vector<2x32xf32>
    %137 = arith.divf %135, %136 : vector<2x32xf32>
    %138 = vector.extract_strided_slice %125 {offsets = [0, 64], sizes = [2, 32], strides = [1, 1]} : vector<2x128xf32> to vector<2x32xf32>
    %139 = math.tanh %138 : vector<2x32xf32>
    %140 = vector.extract_strided_slice %125 {offsets = [0, 96], sizes = [2, 32], strides = [1, 1]} : vector<2x128xf32> to vector<2x32xf32>
    %141 = arith.negf %140 : vector<2x32xf32>
    %142 = math.exp %141 : vector<2x32xf32>
    %cst_37 = arith.constant 1.000000e+00 : f32
    %143 = vector.broadcast %cst_37 : f32 to vector<2x32xf32>
    %144 = arith.addf %143, %142 : vector<2x32xf32>
    %145 = arith.divf %143, %144 : vector<2x32xf32>
    %146 = arith.mulf %137, %115 : vector<2x32xf32>
    %147 = arith.mulf %131, %139 : vector<2x32xf32>
    %148 = arith.addf %146, %147 : vector<2x32xf32>
    %149 = math.tanh %148 : vector<2x32xf32>
    %150 = arith.mulf %145, %149 : vector<2x32xf32>
    %c0_38 = arith.constant 0 : index
    %c3 = arith.constant 3 : index
    %c0_39 = arith.constant 0 : index
    %151 = vector.load %arg34[%c0_38, %c3, %c0_39] : memref<2x6x32xf32, #tpu.memory_space<vmem>>, vector<2x1x32xf32>
    %152 = vector.shape_cast %151 : vector<2x1x32xf32> to vector<2x32xf32>
    %153 = vector.shape_cast %150 : vector<2x32xf32> to vector<2x1x32xf32>
    tpu.vector_store %arg34[%c0_38, %c3, %c0_39], %153 {strides = array<i32>} : memref<2x6x32xf32, #tpu.memory_space<vmem>>, vector<2x1x32xf32>,
    %154 = vector.extract_strided_slice %19 {offsets = [0, 4, 0], sizes = [2, 1, 128], strides = [1, 1, 1]} : vector<2x6x128xf32> to vector<2x1x128xf32>
    %155 = vector.shape_cast %154 : vector<2x1x128xf32> to vector<2x128xf32>
    %156 = arith.truncf %150 : vector<2x32xf32> to vector<2x32xbf16>
    %cst_40 = arith.constant dense<0.000000e+00> : vector<2x128xf32>
    %157 = tpu.matmul %156, %13, %cst_40 {dimension_numbers = #tpu.dot_dimension_numbers<[1], [0], [0], [1], [0, 0, 1, 1], [], []>} : vector<2x32xbf16>, vector<32x128xbf16>, vector<2x128xf32> -> vector<2x128xf32>
    %158 = arith.addf %155, %157 : vector<2x128xf32>
    %159 = vector.extract_strided_slice %158 {offsets = [0, 0], sizes = [2, 32], strides = [1, 1]} : vector<2x128xf32> to vector<2x32xf32>
    %160 = arith.negf %159 : vector<2x32xf32>
    %161 = math.exp %160 : vector<2x32xf32>
    %cst_41 = arith.constant 1.000000e+00 : f32
    %162 = vector.broadcast %cst_41 : f32 to vector<2x32xf32>
    %163 = arith.addf %162, %161 : vector<2x32xf32>
    %164 = arith.divf %162, %163 : vector<2x32xf32>
    %165 = vector.extract_strided_slice %158 {offsets = [0, 32], sizes = [2, 32], strides = [1, 1]} : vector<2x128xf32> to vector<2x32xf32>
    %166 = arith.negf %165 : vector<2x32xf32>
    %167 = math.exp %166 : vector<2x32xf32>
    %cst_42 = arith.constant 1.000000e+00 : f32
    %168 = vector.broadcast %cst_42 : f32 to vector<2x32xf32>
    %169 = arith.addf %168, %167 : vector<2x32xf32>
    %170 = arith.divf %168, %169 : vector<2x32xf32>
    %171 = vector.extract_strided_slice %158 {offsets = [0, 64], sizes = [2, 32], strides = [1, 1]} : vector<2x128xf32> to vector<2x32xf32>
    %172 = math.tanh %171 : vector<2x32xf32>
    %173 = vector.extract_strided_slice %158 {offsets = [0, 96], sizes = [2, 32], strides = [1, 1]} : vector<2x128xf32> to vector<2x32xf32>
    %174 = arith.negf %173 : vector<2x32xf32>
    %175 = math.exp %174 : vector<2x32xf32>
    %cst_43 = arith.constant 1.000000e+00 : f32
    %176 = vector.broadcast %cst_43 : f32 to vector<2x32xf32>
    %177 = arith.addf %176, %175 : vector<2x32xf32>
    %178 = arith.divf %176, %177 : vector<2x32xf32>
    %179 = arith.mulf %170, %148 : vector<2x32xf32>
    %180 = arith.mulf %164, %172 : vector<2x32xf32>
    %181 = arith.addf %179, %180 : vector<2x32xf32>
    %182 = math.tanh %181 : vector<2x32xf32>
    %183 = arith.mulf %178, %182 : vector<2x32xf32>
    %c0_44 = arith.constant 0 : index
    %c4 = arith.constant 4 : index
    %c0_45 = arith.constant 0 : index
    %184 = vector.load %arg34[%c0_44, %c4, %c0_45] : memref<2x6x32xf32, #tpu.memory_space<vmem>>, vector<2x1x32xf32>
    %185 = vector.shape_cast %184 : vector<2x1x32xf32> to vector<2x32xf32>
    %186 = vector.shape_cast %183 : vector<2x32xf32> to vector<2x1x32xf32>
    tpu.vector_store %arg34[%c0_44, %c4, %c0_45], %186 {strides = array<i32>} : memref<2x6x32xf32, #tpu.memory_space<vmem>>, vector<2x1x32xf32>,
    %187 = vector.extract_strided_slice %19 {offsets = [0, 5, 0], sizes = [2, 1, 128], strides = [1, 1, 1]} : vector<2x6x128xf32> to vector<2x1x128xf32>
    %188 = vector.shape_cast %187 : vector<2x1x128xf32> to vector<2x128xf32>
    %189 = arith.truncf %183 : vector<2x32xf32> to vector<2x32xbf16>
    %cst_46 = arith.constant dense<0.000000e+00> : vector<2x128xf32>
    %190 = tpu.matmul %189, %13, %cst_46 {dimension_numbers = #tpu.dot_dimension_numbers<[1], [0], [0], [1], [0, 0, 1, 1], [], []>} : vector<2x32xbf16>, vector<32x128xbf16>, vector<2x128xf32> -> vector<2x128xf32>
    %191 = arith.addf %188, %190 : vector<2x128xf32>
    %192 = vector.extract_strided_slice %191 {offsets = [0, 0], sizes = [2, 32], strides = [1, 1]} : vector<2x128xf32> to vector<2x32xf32>
    %193 = arith.negf %192 : vector<2x32xf32>
    %194 = math.exp %193 : vector<2x32xf32>
    %cst_47 = arith.constant 1.000000e+00 : f32
    %195 = vector.broadcast %cst_47 : f32 to vector<2x32xf32>
    %196 = arith.addf %195, %194 : vector<2x32xf32>
    %197 = arith.divf %195, %196 : vector<2x32xf32>
    %198 = vector.extract_strided_slice %191 {offsets = [0, 32], sizes = [2, 32], strides = [1, 1]} : vector<2x128xf32> to vector<2x32xf32>
    %199 = arith.negf %198 : vector<2x32xf32>
    %200 = math.exp %199 : vector<2x32xf32>
    %cst_48 = arith.constant 1.000000e+00 : f32
    %201 = vector.broadcast %cst_48 : f32 to vector<2x32xf32>
    %202 = arith.addf %201, %200 : vector<2x32xf32>
    %203 = arith.divf %201, %202 : vector<2x32xf32>
    %204 = vector.extract_strided_slice %191 {offsets = [0, 64], sizes = [2, 32], strides = [1, 1]} : vector<2x128xf32> to vector<2x32xf32>
    %205 = math.tanh %204 : vector<2x32xf32>
    %206 = vector.extract_strided_slice %191 {offsets = [0, 96], sizes = [2, 32], strides = [1, 1]} : vector<2x128xf32> to vector<2x32xf32>
    %207 = arith.negf %206 : vector<2x32xf32>
    %208 = math.exp %207 : vector<2x32xf32>
    %cst_49 = arith.constant 1.000000e+00 : f32
    %209 = vector.broadcast %cst_49 : f32 to vector<2x32xf32>
    %210 = arith.addf %209, %208 : vector<2x32xf32>
    %211 = arith.divf %209, %210 : vector<2x32xf32>
    %212 = arith.mulf %203, %181 : vector<2x32xf32>
    %213 = arith.mulf %197, %205 : vector<2x32xf32>
    %214 = arith.addf %212, %213 : vector<2x32xf32>
    %215 = math.tanh %214 : vector<2x32xf32>
    %216 = arith.mulf %211, %215 : vector<2x32xf32>
    %c0_50 = arith.constant 0 : index
    %c5 = arith.constant 5 : index
    %c0_51 = arith.constant 0 : index
    %217 = vector.load %arg34[%c0_50, %c5, %c0_51] : memref<2x6x32xf32, #tpu.memory_space<vmem>>, vector<2x1x32xf32>
    %218 = vector.shape_cast %217 : vector<2x1x32xf32> to vector<2x32xf32>
    %219 = vector.shape_cast %216 : vector<2x32xf32> to vector<2x1x32xf32>
    tpu.vector_store %arg34[%c0_50, %c5, %c0_51], %219 {strides = array<i32>} : memref<2x6x32xf32, #tpu.memory_space<vmem>>, vector<2x1x32xf32>,
    %c0_52 = arith.constant 0 : index
    %c0_53 = arith.constant 0 : index
    %c0_54 = arith.constant 0 : index
    %220 = vector.load %arg34[%c0_52, %c0_53, %c0_54] : memref<2x6x32xf32, #tpu.memory_space<vmem>>, vector<2x6x32xf32>
    %c0_55 = arith.constant 0 : index
    %c0_56 = arith.constant 0 : index
    %221 = vector.load %arg1[%c0_55, %c0_56] : memref<6x32xf32, #tpu.memory_space<vmem>>, vector<6x32xf32>
    %222 = vector.shape_cast %221 : vector<6x32xf32> to vector<1x6x32xf32>
    %223 = vector.broadcast %222 : vector<1x6x32xf32> to vector<2x6x32xf32>
    %224 = arith.addf %220, %223 : vector<2x6x32xf32>
    %c0_57 = arith.constant 0 : index
    %c0_58 = arith.constant 0 : index
    %225 = vector.load %arg9[%c0_57, %c0_58] : memref<32x32xbf16, #tpu.memory_space<vmem>>, vector<32x32xbf16>
    %c0_59 = arith.constant 0 : index
    %c0_60 = arith.constant 0 : index
    %226 = vector.load %arg7[%c0_59, %c0_60] : memref<32x96xbf16, #tpu.memory_space<vmem>>, vector<32x96xbf16>
    %227 = arith.truncf %224 : vector<2x6x32xf32> to vector<2x6x32xbf16>
    %cst_61 = arith.constant dense<0.000000e+00> : vector<2x6x96xf32>
    %228 = tpu.matmul %227, %226, %cst_61 {dimension_numbers = #tpu.dot_dimension_numbers<[2], [0], [0, 1], [1], [0, 0, 0, 1, 1, 1], [], []>} : vector<2x6x32xbf16>, vector<32x96xbf16>, vector<2x6x96xf32> -> vector<2x6x96xf32>
    %c0_62 = arith.constant 0 : index
    %c0_63 = arith.constant 0 : index
    %229 = vector.load %arg8[%c0_62, %c0_63] : memref<1x96xf32, #tpu.memory_space<vmem>>, vector<1x96xf32>
    %230 = vector.shape_cast %229 : vector<1x96xf32> to vector<1x1x96xf32>
    %231 = vector.broadcast %230 : vector<1x1x96xf32> to vector<2x6x96xf32>
    %232 = arith.addf %228, %231 : vector<2x6x96xf32>
    %233 = vector.extract_strided_slice %232 {offsets = [0, 0, 0], sizes = [2, 6, 32], strides = [1, 1, 1]} : vector<2x6x96xf32> to vector<2x6x32xf32>
    %234 = vector.extract_strided_slice %232 {offsets = [0, 0, 32], sizes = [2, 6, 32], strides = [1, 1, 1]} : vector<2x6x96xf32> to vector<2x6x32xf32>
    %235 = vector.extract_strided_slice %232 {offsets = [0, 0, 64], sizes = [2, 6, 32], strides = [1, 1, 1]} : vector<2x6x96xf32> to vector<2x6x32xf32>
    %cst_64 = arith.constant 0.000000e+00 : f32
    %236 = vector.broadcast %cst_64 : f32 to vector<2x6x32xf32>
    %237 = vector.extract_strided_slice %233 {offsets = [0, 0, 0], sizes = [2, 6, 8], strides = [1, 1, 1]} : vector<2x6x32xf32> to vector<2x6x8xf32>
    %238 = arith.truncf %237 : vector<2x6x8xf32> to vector<2x6x8xbf16>
    %239 = vector.extract_strided_slice %234 {offsets = [0, 0, 0], sizes = [2, 6, 8], strides = [1, 1, 1]} : vector<2x6x32xf32> to vector<2x6x8xf32>
    %240 = arith.truncf %239 : vector<2x6x8xf32> to vector<2x6x8xbf16>
    "tpu.trace_start"() <{level = 10 : i32, message = "btd,bsd->bts"}> : () -> ()
    %cst_65 = arith.constant dense<0.000000e+00> : vector<2x6x6xf32>
    %241 = tpu.matmul %238, %240, %cst_65 {dimension_numbers = #tpu.dot_dimension_numbers<[2], [2], [1], [1], [0, 0, 0, 1, 1, 1], [0], [0]>} : vector<2x6x8xbf16>, vector<2x6x8xbf16>, vector<2x6x6xf32> -> vector<2x6x6xf32>
    "tpu.trace_stop"() : () -> ()
    %cst_66 = arith.constant 0.353553385 : f32
    %242 = vector.broadcast %cst_66 : f32 to vector<2x6x6xf32>
    %243 = arith.mulf %241, %242 : vector<2x6x6xf32>
    %cst_67 = arith.constant dense<0xFF800000> : vector<2x6xf32>
    %244 = vector.multi_reduction <maximumf>, %243, %cst_67 [2] : vector<2x6x6xf32> to vector<2x6xf32>
    %245 = vector.shape_cast %244 : vector<2x6xf32> to vector<2x6x1xf32>
    %246 = vector.broadcast %245 : vector<2x6x1xf32> to vector<2x6x6xf32>
    %247 = arith.subf %243, %246 : vector<2x6x6xf32>
    %248 = math.exp %247 : vector<2x6x6xf32>
    %cst_68 = arith.constant dense<0.000000e+00> : vector<2x6xf32>
    %249 = vector.multi_reduction <add>, %248, %cst_68 [2] : vector<2x6x6xf32> to vector<2x6xf32>
    %250 = vector.shape_cast %249 : vector<2x6xf32> to vector<2x6x1xf32>
    %251 = tpu.reciprocal %250 {approx = true} : vector<2x6x1xf32> -> vector<2x6x1xf32>
    %252 = vector.broadcast %251 : vector<2x6x1xf32> to vector<2x6x6xf32>
    %253 = arith.mulf %248, %252 : vector<2x6x6xf32>
    %254 = arith.truncf %253 : vector<2x6x6xf32> to vector<2x6x6xbf16>
    %255 = vector.extract_strided_slice %235 {offsets = [0, 0, 0], sizes = [2, 6, 8], strides = [1, 1, 1]} : vector<2x6x32xf32> to vector<2x6x8xf32>
    %256 = arith.truncf %255 : vector<2x6x8xf32> to vector<2x6x8xbf16>
    "tpu.trace_start"() <{level = 10 : i32, message = "bts,bsd->btd"}> : () -> ()
    %cst_69 = arith.constant dense<0.000000e+00> : vector<2x6x8xf32>
    %257 = tpu.matmul %254, %256, %cst_69 {dimension_numbers = #tpu.dot_dimension_numbers<[2], [1], [1], [2], [0, 0, 0, 1, 1, 2], [0], [0]>} : vector<2x6x6xbf16>, vector<2x6x8xbf16>, vector<2x6x8xf32> -> vector<2x6x8xf32>
    "tpu.trace_stop"() : () -> ()
    %258 = vector.extract_strided_slice %225 {offsets = [0, 0], sizes = [8, 32], strides = [1, 1]} : vector<32x32xbf16> to vector<8x32xbf16>
    %259 = arith.truncf %257 : vector<2x6x8xf32> to vector<2x6x8xbf16>
    %cst_70 = arith.constant dense<0.000000e+00> : vector<2x6x32xf32>
    %260 = tpu.matmul %259, %258, %cst_70 {dimension_numbers = #tpu.dot_dimension_numbers<[2], [0], [0, 1], [1], [0, 0, 0, 1, 1, 1], [], []>} : vector<2x6x8xbf16>, vector<8x32xbf16>, vector<2x6x32xf32> -> vector<2x6x32xf32>
    %261 = arith.addf %236, %260 : vector<2x6x32xf32>
    %262 = vector.extract_strided_slice %233 {offsets = [0, 0, 8], sizes = [2, 6, 8], strides = [1, 1, 1]} : vector<2x6x32xf32> to vector<2x6x8xf32>
    %263 = arith.truncf %262 : vector<2x6x8xf32> to vector<2x6x8xbf16>
    %264 = vector.extract_strided_slice %234 {offsets = [0, 0, 8], sizes = [2, 6, 8], strides = [1, 1, 1]} : vector<2x6x32xf32> to vector<2x6x8xf32>
    %265 = arith.truncf %264 : vector<2x6x8xf32> to vector<2x6x8xbf16>
    "tpu.trace_start"() <{level = 10 : i32, message = "btd,bsd->bts"}> : () -> ()
    %cst_71 = arith.constant dense<0.000000e+00> : vector<2x6x6xf32>
    %266 = tpu.matmul %263, %265, %cst_71 {dimension_numbers = #tpu.dot_dimension_numbers<[2], [2], [1], [1], [0, 0, 0, 1, 1, 1], [0], [0]>} : vector<2x6x8xbf16>, vector<2x6x8xbf16>, vector<2x6x6xf32> -> vector<2x6x6xf32>
    "tpu.trace_stop"() : () -> ()
    %cst_72 = arith.constant 0.353553385 : f32
    %267 = vector.broadcast %cst_72 : f32 to vector<2x6x6xf32>
    %268 = arith.mulf %266, %267 : vector<2x6x6xf32>
    %cst_73 = arith.constant dense<0xFF800000> : vector<2x6xf32>
    %269 = vector.multi_reduction <maximumf>, %268, %cst_73 [2] : vector<2x6x6xf32> to vector<2x6xf32>
    %270 = vector.shape_cast %269 : vector<2x6xf32> to vector<2x6x1xf32>
    %271 = vector.broadcast %270 : vector<2x6x1xf32> to vector<2x6x6xf32>
    %272 = arith.subf %268, %271 : vector<2x6x6xf32>
    %273 = math.exp %272 : vector<2x6x6xf32>
    %cst_74 = arith.constant dense<0.000000e+00> : vector<2x6xf32>
    %274 = vector.multi_reduction <add>, %273, %cst_74 [2] : vector<2x6x6xf32> to vector<2x6xf32>
    %275 = vector.shape_cast %274 : vector<2x6xf32> to vector<2x6x1xf32>
    %276 = tpu.reciprocal %275 {approx = true} : vector<2x6x1xf32> -> vector<2x6x1xf32>
    %277 = vector.broadcast %276 : vector<2x6x1xf32> to vector<2x6x6xf32>
    %278 = arith.mulf %273, %277 : vector<2x6x6xf32>
    %279 = arith.truncf %278 : vector<2x6x6xf32> to vector<2x6x6xbf16>
    %280 = vector.extract_strided_slice %235 {offsets = [0, 0, 8], sizes = [2, 6, 8], strides = [1, 1, 1]} : vector<2x6x32xf32> to vector<2x6x8xf32>
    %281 = arith.truncf %280 : vector<2x6x8xf32> to vector<2x6x8xbf16>
    "tpu.trace_start"() <{level = 10 : i32, message = "bts,bsd->btd"}> : () -> ()
    %cst_75 = arith.constant dense<0.000000e+00> : vector<2x6x8xf32>
    %282 = tpu.matmul %279, %281, %cst_75 {dimension_numbers = #tpu.dot_dimension_numbers<[2], [1], [1], [2], [0, 0, 0, 1, 1, 2], [0], [0]>} : vector<2x6x6xbf16>, vector<2x6x8xbf16>, vector<2x6x8xf32> -> vector<2x6x8xf32>
    "tpu.trace_stop"() : () -> ()
    %283 = vector.extract_strided_slice %225 {offsets = [8, 0], sizes = [8, 32], strides = [1, 1]} : vector<32x32xbf16> to vector<8x32xbf16>
    %284 = arith.truncf %282 : vector<2x6x8xf32> to vector<2x6x8xbf16>
    %cst_76 = arith.constant dense<0.000000e+00> : vector<2x6x32xf32>
    %285 = tpu.matmul %284, %283, %cst_76 {dimension_numbers = #tpu.dot_dimension_numbers<[2], [0], [0, 1], [1], [0, 0, 0, 1, 1, 1], [], []>} : vector<2x6x8xbf16>, vector<8x32xbf16>, vector<2x6x32xf32> -> vector<2x6x32xf32>
    %286 = arith.addf %261, %285 : vector<2x6x32xf32>
    %287 = vector.extract_strided_slice %233 {offsets = [0, 0, 16], sizes = [2, 6, 8], strides = [1, 1, 1]} : vector<2x6x32xf32> to vector<2x6x8xf32>
    %288 = arith.truncf %287 : vector<2x6x8xf32> to vector<2x6x8xbf16>
    %289 = vector.extract_strided_slice %234 {offsets = [0, 0, 16], sizes = [2, 6, 8], strides = [1, 1, 1]} : vector<2x6x32xf32> to vector<2x6x8xf32>
    %290 = arith.truncf %289 : vector<2x6x8xf32> to vector<2x6x8xbf16>
    "tpu.trace_start"() <{level = 10 : i32, message = "btd,bsd->bts"}> : () -> ()
    %cst_77 = arith.constant dense<0.000000e+00> : vector<2x6x6xf32>
    %291 = tpu.matmul %288, %290, %cst_77 {dimension_numbers = #tpu.dot_dimension_numbers<[2], [2], [1], [1], [0, 0, 0, 1, 1, 1], [0], [0]>} : vector<2x6x8xbf16>, vector<2x6x8xbf16>, vector<2x6x6xf32> -> vector<2x6x6xf32>
    "tpu.trace_stop"() : () -> ()
    %cst_78 = arith.constant 0.353553385 : f32
    %292 = vector.broadcast %cst_78 : f32 to vector<2x6x6xf32>
    %293 = arith.mulf %291, %292 : vector<2x6x6xf32>
    %cst_79 = arith.constant dense<0xFF800000> : vector<2x6xf32>
    %294 = vector.multi_reduction <maximumf>, %293, %cst_79 [2] : vector<2x6x6xf32> to vector<2x6xf32>
    %295 = vector.shape_cast %294 : vector<2x6xf32> to vector<2x6x1xf32>
    %296 = vector.broadcast %295 : vector<2x6x1xf32> to vector<2x6x6xf32>
    %297 = arith.subf %293, %296 : vector<2x6x6xf32>
    %298 = math.exp %297 : vector<2x6x6xf32>
    %cst_80 = arith.constant dense<0.000000e+00> : vector<2x6xf32>
    %299 = vector.multi_reduction <add>, %298, %cst_80 [2] : vector<2x6x6xf32> to vector<2x6xf32>
    %300 = vector.shape_cast %299 : vector<2x6xf32> to vector<2x6x1xf32>
    %301 = tpu.reciprocal %300 {approx = true} : vector<2x6x1xf32> -> vector<2x6x1xf32>
    %302 = vector.broadcast %301 : vector<2x6x1xf32> to vector<2x6x6xf32>
    %303 = arith.mulf %298, %302 : vector<2x6x6xf32>
    %304 = arith.truncf %303 : vector<2x6x6xf32> to vector<2x6x6xbf16>
    %305 = vector.extract_strided_slice %235 {offsets = [0, 0, 16], sizes = [2, 6, 8], strides = [1, 1, 1]} : vector<2x6x32xf32> to vector<2x6x8xf32>
    %306 = arith.truncf %305 : vector<2x6x8xf32> to vector<2x6x8xbf16>
    "tpu.trace_start"() <{level = 10 : i32, message = "bts,bsd->btd"}> : () -> ()
    %cst_81 = arith.constant dense<0.000000e+00> : vector<2x6x8xf32>
    %307 = tpu.matmul %304, %306, %cst_81 {dimension_numbers = #tpu.dot_dimension_numbers<[2], [1], [1], [2], [0, 0, 0, 1, 1, 2], [0], [0]>} : vector<2x6x6xbf16>, vector<2x6x8xbf16>, vector<2x6x8xf32> -> vector<2x6x8xf32>
    "tpu.trace_stop"() : () -> ()
    %308 = vector.extract_strided_slice %225 {offsets = [16, 0], sizes = [8, 32], strides = [1, 1]} : vector<32x32xbf16> to vector<8x32xbf16>
    %309 = arith.truncf %307 : vector<2x6x8xf32> to vector<2x6x8xbf16>
    %cst_82 = arith.constant dense<0.000000e+00> : vector<2x6x32xf32>
    %310 = tpu.matmul %309, %308, %cst_82 {dimension_numbers = #tpu.dot_dimension_numbers<[2], [0], [0, 1], [1], [0, 0, 0, 1, 1, 1], [], []>} : vector<2x6x8xbf16>, vector<8x32xbf16>, vector<2x6x32xf32> -> vector<2x6x32xf32>
    %311 = arith.addf %286, %310 : vector<2x6x32xf32>
    %312 = vector.extract_strided_slice %233 {offsets = [0, 0, 24], sizes = [2, 6, 8], strides = [1, 1, 1]} : vector<2x6x32xf32> to vector<2x6x8xf32>
    %313 = arith.truncf %312 : vector<2x6x8xf32> to vector<2x6x8xbf16>
    %314 = vector.extract_strided_slice %234 {offsets = [0, 0, 24], sizes = [2, 6, 8], strides = [1, 1, 1]} : vector<2x6x32xf32> to vector<2x6x8xf32>
    %315 = arith.truncf %314 : vector<2x6x8xf32> to vector<2x6x8xbf16>
    "tpu.trace_start"() <{level = 10 : i32, message = "btd,bsd->bts"}> : () -> ()
    %cst_83 = arith.constant dense<0.000000e+00> : vector<2x6x6xf32>
    %316 = tpu.matmul %313, %315, %cst_83 {dimension_numbers = #tpu.dot_dimension_numbers<[2], [2], [1], [1], [0, 0, 0, 1, 1, 1], [0], [0]>} : vector<2x6x8xbf16>, vector<2x6x8xbf16>, vector<2x6x6xf32> -> vector<2x6x6xf32>
    "tpu.trace_stop"() : () -> ()
    %cst_84 = arith.constant 0.353553385 : f32
    %317 = vector.broadcast %cst_84 : f32 to vector<2x6x6xf32>
    %318 = arith.mulf %316, %317 : vector<2x6x6xf32>
    %cst_85 = arith.constant dense<0xFF800000> : vector<2x6xf32>
    %319 = vector.multi_reduction <maximumf>, %318, %cst_85 [2] : vector<2x6x6xf32> to vector<2x6xf32>
    %320 = vector.shape_cast %319 : vector<2x6xf32> to vector<2x6x1xf32>
    %321 = vector.broadcast %320 : vector<2x6x1xf32> to vector<2x6x6xf32>
    %322 = arith.subf %318, %321 : vector<2x6x6xf32>
    %323 = math.exp %322 : vector<2x6x6xf32>
    %cst_86 = arith.constant dense<0.000000e+00> : vector<2x6xf32>
    %324 = vector.multi_reduction <add>, %323, %cst_86 [2] : vector<2x6x6xf32> to vector<2x6xf32>
    %325 = vector.shape_cast %324 : vector<2x6xf32> to vector<2x6x1xf32>
    %326 = tpu.reciprocal %325 {approx = true} : vector<2x6x1xf32> -> vector<2x6x1xf32>
    %327 = vector.broadcast %326 : vector<2x6x1xf32> to vector<2x6x6xf32>
    %328 = arith.mulf %323, %327 : vector<2x6x6xf32>
    %329 = arith.truncf %328 : vector<2x6x6xf32> to vector<2x6x6xbf16>
    %330 = vector.extract_strided_slice %235 {offsets = [0, 0, 24], sizes = [2, 6, 8], strides = [1, 1, 1]} : vector<2x6x32xf32> to vector<2x6x8xf32>
    %331 = arith.truncf %330 : vector<2x6x8xf32> to vector<2x6x8xbf16>
    "tpu.trace_start"() <{level = 10 : i32, message = "bts,bsd->btd"}> : () -> ()
    %cst_87 = arith.constant dense<0.000000e+00> : vector<2x6x8xf32>
    %332 = tpu.matmul %329, %331, %cst_87 {dimension_numbers = #tpu.dot_dimension_numbers<[2], [1], [1], [2], [0, 0, 0, 1, 1, 2], [0], [0]>} : vector<2x6x6xbf16>, vector<2x6x8xbf16>, vector<2x6x8xf32> -> vector<2x6x8xf32>
    "tpu.trace_stop"() : () -> ()
    %333 = vector.extract_strided_slice %225 {offsets = [24, 0], sizes = [8, 32], strides = [1, 1]} : vector<32x32xbf16> to vector<8x32xbf16>
    %334 = arith.truncf %332 : vector<2x6x8xf32> to vector<2x6x8xbf16>
    %cst_88 = arith.constant dense<0.000000e+00> : vector<2x6x32xf32>
    %335 = tpu.matmul %334, %333, %cst_88 {dimension_numbers = #tpu.dot_dimension_numbers<[2], [0], [0, 1], [1], [0, 0, 0, 1, 1, 1], [], []>} : vector<2x6x8xbf16>, vector<8x32xbf16>, vector<2x6x32xf32> -> vector<2x6x32xf32>
    %336 = arith.addf %311, %335 : vector<2x6x32xf32>
    %c0_89 = arith.constant 0 : index
    %c0_90 = arith.constant 0 : index
    %337 = vector.load %arg10[%c0_89, %c0_90] : memref<1x32xf32, #tpu.memory_space<vmem>>, vector<1x32xf32>
    %338 = vector.shape_cast %337 : vector<1x32xf32> to vector<1x1x32xf32>
    %339 = vector.broadcast %338 : vector<1x1x32xf32> to vector<2x6x32xf32>
    %340 = arith.addf %336, %339 : vector<2x6x32xf32>
    %341 = arith.addf %224, %340 : vector<2x6x32xf32>
    %c0_91 = arith.constant 0 : index
    %c0_92 = arith.constant 0 : index
    %342 = vector.load %arg11[%c0_91, %c0_92] : memref<1x32xf32, #tpu.memory_space<vmem>>, vector<1x32xf32>
    %c0_93 = arith.constant 0 : index
    %c0_94 = arith.constant 0 : index
    %343 = vector.load %arg12[%c0_93, %c0_94] : memref<1x32xf32, #tpu.memory_space<vmem>>, vector<1x32xf32>
    %cst_95 = arith.constant dense<0.000000e+00> : vector<2x6xf32>
    %344 = vector.multi_reduction <add>, %341, %cst_95 [2] : vector<2x6x32xf32> to vector<2x6xf32>
    %345 = vector.shape_cast %344 : vector<2x6xf32> to vector<2x6x1xf32>
    %cst_96 = arith.constant 3.200000e+01 : f32
    %346 = vector.broadcast %cst_96 : f32 to vector<2x6x1xf32>
    %347 = arith.divf %345, %346 : vector<2x6x1xf32>
    %348 = vector.broadcast %347 : vector<2x6x1xf32> to vector<2x6x32xf32>
    %349 = arith.subf %341, %348 : vector<2x6x32xf32>
    %350 = arith.mulf %349, %349 : vector<2x6x32xf32>
    %cst_97 = arith.constant dense<0.000000e+00> : vector<2x6xf32>
    %351 = vector.multi_reduction <add>, %350, %cst_97 [2] : vector<2x6x32xf32> to vector<2x6xf32>
    %352 = vector.shape_cast %351 : vector<2x6xf32> to vector<2x6x1xf32>
    %cst_98 = arith.constant 3.200000e+01 : f32
    %353 = vector.broadcast %cst_98 : f32 to vector<2x6x1xf32>
    %354 = arith.divf %352, %353 : vector<2x6x1xf32>
    %355 = vector.broadcast %347 : vector<2x6x1xf32> to vector<2x6x32xf32>
    %356 = arith.subf %341, %355 : vector<2x6x32xf32>
    %cst_99 = arith.constant 9.99999974E-6 : f32
    %357 = vector.broadcast %cst_99 : f32 to vector<2x6x1xf32>
    %358 = arith.addf %354, %357 : vector<2x6x1xf32>
    %359 = math.rsqrt %358 : vector<2x6x1xf32>
    %360 = vector.broadcast %359 : vector<2x6x1xf32> to vector<2x6x32xf32>
    %361 = arith.mulf %356, %360 : vector<2x6x32xf32>
    %362 = vector.shape_cast %342 : vector<1x32xf32> to vector<1x1x32xf32>
    %363 = vector.broadcast %362 : vector<1x1x32xf32> to vector<2x6x32xf32>
    %364 = arith.mulf %361, %363 : vector<2x6x32xf32>
    %365 = vector.shape_cast %343 : vector<1x32xf32> to vector<1x1x32xf32>
    %366 = vector.broadcast %365 : vector<1x1x32xf32> to vector<2x6x32xf32>
    %367 = arith.addf %364, %366 : vector<2x6x32xf32>
    %c0_100 = arith.constant 0 : index
    %c0_101 = arith.constant 0 : index
    %368 = vector.load %arg13[%c0_100, %c0_101] : memref<32x64xbf16, #tpu.memory_space<vmem>>, vector<32x64xbf16>
    %369 = arith.truncf %367 : vector<2x6x32xf32> to vector<2x6x32xbf16>
    %cst_102 = arith.constant dense<0.000000e+00> : vector<2x6x64xf32>
    %370 = tpu.matmul %369, %368, %cst_102 {dimension_numbers = #tpu.dot_dimension_numbers<[2], [0], [0, 1], [1], [0, 0, 0, 1, 1, 1], [], []>} : vector<2x6x32xbf16>, vector<32x64xbf16>, vector<2x6x64xf32> -> vector<2x6x64xf32>
    %c0_103 = arith.constant 0 : index
    %c0_104 = arith.constant 0 : index
    %371 = vector.load %arg14[%c0_103, %c0_104] : memref<1x64xf32, #tpu.memory_space<vmem>>, vector<1x64xf32>
    %372 = vector.shape_cast %371 : vector<1x64xf32> to vector<1x1x64xf32>
    %373 = vector.broadcast %372 : vector<1x1x64xf32> to vector<2x6x64xf32>
    %374 = arith.addf %370, %373 : vector<2x6x64xf32>
    %cst_105 = arith.constant 0.000000e+00 : f32
    %375 = vector.broadcast %cst_105 : f32 to vector<2x6x64xf32>
    %376 = arith.maximumf %374, %375 : vector<2x6x64xf32>
    %c0_106 = arith.constant 0 : index
    %c0_107 = arith.constant 0 : index
    %377 = vector.load %arg15[%c0_106, %c0_107] : memref<64x32xbf16, #tpu.memory_space<vmem>>, vector<64x32xbf16>
    %378 = arith.truncf %376 : vector<2x6x64xf32> to vector<2x6x64xbf16>
    %cst_108 = arith.constant dense<0.000000e+00> : vector<2x6x32xf32>
    %379 = tpu.matmul %378, %377, %cst_108 {dimension_numbers = #tpu.dot_dimension_numbers<[2], [0], [0, 1], [1], [0, 0, 0, 1, 1, 1], [], []>} : vector<2x6x64xbf16>, vector<64x32xbf16>, vector<2x6x32xf32> -> vector<2x6x32xf32>
    %c0_109 = arith.constant 0 : index
    %c0_110 = arith.constant 0 : index
    %380 = vector.load %arg16[%c0_109, %c0_110] : memref<1x32xf32, #tpu.memory_space<vmem>>, vector<1x32xf32>
    %381 = vector.shape_cast %380 : vector<1x32xf32> to vector<1x1x32xf32>
    %382 = vector.broadcast %381 : vector<1x1x32xf32> to vector<2x6x32xf32>
    %383 = arith.addf %379, %382 : vector<2x6x32xf32>
    %384 = arith.addf %367, %383 : vector<2x6x32xf32>
    %c0_111 = arith.constant 0 : index
    %c0_112 = arith.constant 0 : index
    %385 = vector.load %arg17[%c0_111, %c0_112] : memref<1x32xf32, #tpu.memory_space<vmem>>, vector<1x32xf32>
    %c0_113 = arith.constant 0 : index
    %c0_114 = arith.constant 0 : index
    %386 = vector.load %arg18[%c0_113, %c0_114] : memref<1x32xf32, #tpu.memory_space<vmem>>, vector<1x32xf32>
    %cst_115 = arith.constant dense<0.000000e+00> : vector<2x6xf32>
    %387 = vector.multi_reduction <add>, %384, %cst_115 [2] : vector<2x6x32xf32> to vector<2x6xf32>
    %388 = vector.shape_cast %387 : vector<2x6xf32> to vector<2x6x1xf32>
    %cst_116 = arith.constant 3.200000e+01 : f32
    %389 = vector.broadcast %cst_116 : f32 to vector<2x6x1xf32>
    %390 = arith.divf %388, %389 : vector<2x6x1xf32>
    %391 = vector.broadcast %390 : vector<2x6x1xf32> to vector<2x6x32xf32>
    %392 = arith.subf %384, %391 : vector<2x6x32xf32>
    %393 = arith.mulf %392, %392 : vector<2x6x32xf32>
    %cst_117 = arith.constant dense<0.000000e+00> : vector<2x6xf32>
    %394 = vector.multi_reduction <add>, %393, %cst_117 [2] : vector<2x6x32xf32> to vector<2x6xf32>
    %395 = vector.shape_cast %394 : vector<2x6xf32> to vector<2x6x1xf32>
    %cst_118 = arith.constant 3.200000e+01 : f32
    %396 = vector.broadcast %cst_118 : f32 to vector<2x6x1xf32>
    %397 = arith.divf %395, %396 : vector<2x6x1xf32>
    %398 = vector.broadcast %390 : vector<2x6x1xf32> to vector<2x6x32xf32>
    %399 = arith.subf %384, %398 : vector<2x6x32xf32>
    %cst_119 = arith.constant 9.99999974E-6 : f32
    %400 = vector.broadcast %cst_119 : f32 to vector<2x6x1xf32>
    %401 = arith.addf %397, %400 : vector<2x6x1xf32>
    %402 = math.rsqrt %401 : vector<2x6x1xf32>
    %403 = vector.broadcast %402 : vector<2x6x1xf32> to vector<2x6x32xf32>
    %404 = arith.mulf %399, %403 : vector<2x6x32xf32>
    %405 = vector.shape_cast %385 : vector<1x32xf32> to vector<1x1x32xf32>
    %406 = vector.broadcast %405 : vector<1x1x32xf32> to vector<2x6x32xf32>
    %407 = arith.mulf %404, %406 : vector<2x6x32xf32>
    %408 = vector.shape_cast %386 : vector<1x32xf32> to vector<1x1x32xf32>
    %409 = vector.broadcast %408 : vector<1x1x32xf32> to vector<2x6x32xf32>
    %410 = arith.addf %407, %409 : vector<2x6x32xf32>
    %c0_120 = arith.constant 0 : index
    %c0_121 = arith.constant 0 : index
    %411 = vector.load %arg21[%c0_120, %c0_121] : memref<32x32xbf16, #tpu.memory_space<vmem>>, vector<32x32xbf16>
    %c0_122 = arith.constant 0 : index
    %c0_123 = arith.constant 0 : index
    %412 = vector.load %arg19[%c0_122, %c0_123] : memref<32x96xbf16, #tpu.memory_space<vmem>>, vector<32x96xbf16>
    %413 = arith.truncf %410 : vector<2x6x32xf32> to vector<2x6x32xbf16>
    %cst_124 = arith.constant dense<0.000000e+00> : vector<2x6x96xf32>
    %414 = tpu.matmul %413, %412, %cst_124 {dimension_numbers = #tpu.dot_dimension_numbers<[2], [0], [0, 1], [1], [0, 0, 0, 1, 1, 1], [], []>} : vector<2x6x32xbf16>, vector<32x96xbf16>, vector<2x6x96xf32> -> vector<2x6x96xf32>
    %c0_125 = arith.constant 0 : index
    %c0_126 = arith.constant 0 : index
    %415 = vector.load %arg20[%c0_125, %c0_126] : memref<1x96xf32, #tpu.memory_space<vmem>>, vector<1x96xf32>
    %416 = vector.shape_cast %415 : vector<1x96xf32> to vector<1x1x96xf32>
    %417 = vector.broadcast %416 : vector<1x1x96xf32> to vector<2x6x96xf32>
    %418 = arith.addf %414, %417 : vector<2x6x96xf32>
    %419 = vector.extract_strided_slice %418 {offsets = [0, 0, 0], sizes = [2, 6, 32], strides = [1, 1, 1]} : vector<2x6x96xf32> to vector<2x6x32xf32>
    %420 = vector.extract_strided_slice %418 {offsets = [0, 0, 32], sizes = [2, 6, 32], strides = [1, 1, 1]} : vector<2x6x96xf32> to vector<2x6x32xf32>
    %421 = vector.extract_strided_slice %418 {offsets = [0, 0, 64], sizes = [2, 6, 32], strides = [1, 1, 1]} : vector<2x6x96xf32> to vector<2x6x32xf32>
    %cst_127 = arith.constant 0.000000e+00 : f32
    %422 = vector.broadcast %cst_127 : f32 to vector<2x6x32xf32>
    %423 = vector.extract_strided_slice %419 {offsets = [0, 0, 0], sizes = [2, 6, 8], strides = [1, 1, 1]} : vector<2x6x32xf32> to vector<2x6x8xf32>
    %424 = arith.truncf %423 : vector<2x6x8xf32> to vector<2x6x8xbf16>
    %425 = vector.extract_strided_slice %420 {offsets = [0, 0, 0], sizes = [2, 6, 8], strides = [1, 1, 1]} : vector<2x6x32xf32> to vector<2x6x8xf32>
    %426 = arith.truncf %425 : vector<2x6x8xf32> to vector<2x6x8xbf16>
    "tpu.trace_start"() <{level = 10 : i32, message = "btd,bsd->bts"}> : () -> ()
    %cst_128 = arith.constant dense<0.000000e+00> : vector<2x6x6xf32>
    %427 = tpu.matmul %424, %426, %cst_128 {dimension_numbers = #tpu.dot_dimension_numbers<[2], [2], [1], [1], [0, 0, 0, 1, 1, 1], [0], [0]>} : vector<2x6x8xbf16>, vector<2x6x8xbf16>, vector<2x6x6xf32> -> vector<2x6x6xf32>
    "tpu.trace_stop"() : () -> ()
    %cst_129 = arith.constant 0.353553385 : f32
    %428 = vector.broadcast %cst_129 : f32 to vector<2x6x6xf32>
    %429 = arith.mulf %427, %428 : vector<2x6x6xf32>
    %cst_130 = arith.constant dense<0xFF800000> : vector<2x6xf32>
    %430 = vector.multi_reduction <maximumf>, %429, %cst_130 [2] : vector<2x6x6xf32> to vector<2x6xf32>
    %431 = vector.shape_cast %430 : vector<2x6xf32> to vector<2x6x1xf32>
    %432 = vector.broadcast %431 : vector<2x6x1xf32> to vector<2x6x6xf32>
    %433 = arith.subf %429, %432 : vector<2x6x6xf32>
    %434 = math.exp %433 : vector<2x6x6xf32>
    %cst_131 = arith.constant dense<0.000000e+00> : vector<2x6xf32>
    %435 = vector.multi_reduction <add>, %434, %cst_131 [2] : vector<2x6x6xf32> to vector<2x6xf32>
    %436 = vector.shape_cast %435 : vector<2x6xf32> to vector<2x6x1xf32>
    %437 = tpu.reciprocal %436 {approx = true} : vector<2x6x1xf32> -> vector<2x6x1xf32>
    %438 = vector.broadcast %437 : vector<2x6x1xf32> to vector<2x6x6xf32>
    %439 = arith.mulf %434, %438 : vector<2x6x6xf32>
    %440 = arith.truncf %439 : vector<2x6x6xf32> to vector<2x6x6xbf16>
    %441 = vector.extract_strided_slice %421 {offsets = [0, 0, 0], sizes = [2, 6, 8], strides = [1, 1, 1]} : vector<2x6x32xf32> to vector<2x6x8xf32>
    %442 = arith.truncf %441 : vector<2x6x8xf32> to vector<2x6x8xbf16>
    "tpu.trace_start"() <{level = 10 : i32, message = "bts,bsd->btd"}> : () -> ()
    %cst_132 = arith.constant dense<0.000000e+00> : vector<2x6x8xf32>
    %443 = tpu.matmul %440, %442, %cst_132 {dimension_numbers = #tpu.dot_dimension_numbers<[2], [1], [1], [2], [0, 0, 0, 1, 1, 2], [0], [0]>} : vector<2x6x6xbf16>, vector<2x6x8xbf16>, vector<2x6x8xf32> -> vector<2x6x8xf32>
    "tpu.trace_stop"() : () -> ()
    %444 = vector.extract_strided_slice %411 {offsets = [0, 0], sizes = [8, 32], strides = [1, 1]} : vector<32x32xbf16> to vector<8x32xbf16>
    %445 = arith.truncf %443 : vector<2x6x8xf32> to vector<2x6x8xbf16>
    %cst_133 = arith.constant dense<0.000000e+00> : vector<2x6x32xf32>
    %446 = tpu.matmul %445, %444, %cst_133 {dimension_numbers = #tpu.dot_dimension_numbers<[2], [0], [0, 1], [1], [0, 0, 0, 1, 1, 1], [], []>} : vector<2x6x8xbf16>, vector<8x32xbf16>, vector<2x6x32xf32> -> vector<2x6x32xf32>
    %447 = arith.addf %422, %446 : vector<2x6x32xf32>
    %448 = vector.extract_strided_slice %419 {offsets = [0, 0, 8], sizes = [2, 6, 8], strides = [1, 1, 1]} : vector<2x6x32xf32> to vector<2x6x8xf32>
    %449 = arith.truncf %448 : vector<2x6x8xf32> to vector<2x6x8xbf16>
    %450 = vector.extract_strided_slice %420 {offsets = [0, 0, 8], sizes = [2, 6, 8], strides = [1, 1, 1]} : vector<2x6x32xf32> to vector<2x6x8xf32>
    %451 = arith.truncf %450 : vector<2x6x8xf32> to vector<2x6x8xbf16>
    "tpu.trace_start"() <{level = 10 : i32, message = "btd,bsd->bts"}> : () -> ()
    %cst_134 = arith.constant dense<0.000000e+00> : vector<2x6x6xf32>
    %452 = tpu.matmul %449, %451, %cst_134 {dimension_numbers = #tpu.dot_dimension_numbers<[2], [2], [1], [1], [0, 0, 0, 1, 1, 1], [0], [0]>} : vector<2x6x8xbf16>, vector<2x6x8xbf16>, vector<2x6x6xf32> -> vector<2x6x6xf32>
    "tpu.trace_stop"() : () -> ()
    %cst_135 = arith.constant 0.353553385 : f32
    %453 = vector.broadcast %cst_135 : f32 to vector<2x6x6xf32>
    %454 = arith.mulf %452, %453 : vector<2x6x6xf32>
    %cst_136 = arith.constant dense<0xFF800000> : vector<2x6xf32>
    %455 = vector.multi_reduction <maximumf>, %454, %cst_136 [2] : vector<2x6x6xf32> to vector<2x6xf32>
    %456 = vector.shape_cast %455 : vector<2x6xf32> to vector<2x6x1xf32>
    %457 = vector.broadcast %456 : vector<2x6x1xf32> to vector<2x6x6xf32>
    %458 = arith.subf %454, %457 : vector<2x6x6xf32>
    %459 = math.exp %458 : vector<2x6x6xf32>
    %cst_137 = arith.constant dense<0.000000e+00> : vector<2x6xf32>
    %460 = vector.multi_reduction <add>, %459, %cst_137 [2] : vector<2x6x6xf32> to vector<2x6xf32>
    %461 = vector.shape_cast %460 : vector<2x6xf32> to vector<2x6x1xf32>
    %462 = tpu.reciprocal %461 {approx = true} : vector<2x6x1xf32> -> vector<2x6x1xf32>
    %463 = vector.broadcast %462 : vector<2x6x1xf32> to vector<2x6x6xf32>
    %464 = arith.mulf %459, %463 : vector<2x6x6xf32>
    %465 = arith.truncf %464 : vector<2x6x6xf32> to vector<2x6x6xbf16>
    %466 = vector.extract_strided_slice %421 {offsets = [0, 0, 8], sizes = [2, 6, 8], strides = [1, 1, 1]} : vector<2x6x32xf32> to vector<2x6x8xf32>
    %467 = arith.truncf %466 : vector<2x6x8xf32> to vector<2x6x8xbf16>
    "tpu.trace_start"() <{level = 10 : i32, message = "bts,bsd->btd"}> : () -> ()
    %cst_138 = arith.constant dense<0.000000e+00> : vector<2x6x8xf32>
    %468 = tpu.matmul %465, %467, %cst_138 {dimension_numbers = #tpu.dot_dimension_numbers<[2], [1], [1], [2], [0, 0, 0, 1, 1, 2], [0], [0]>} : vector<2x6x6xbf16>, vector<2x6x8xbf16>, vector<2x6x8xf32> -> vector<2x6x8xf32>
    "tpu.trace_stop"() : () -> ()
    %469 = vector.extract_strided_slice %411 {offsets = [8, 0], sizes = [8, 32], strides = [1, 1]} : vector<32x32xbf16> to vector<8x32xbf16>
    %470 = arith.truncf %468 : vector<2x6x8xf32> to vector<2x6x8xbf16>
    %cst_139 = arith.constant dense<0.000000e+00> : vector<2x6x32xf32>
    %471 = tpu.matmul %470, %469, %cst_139 {dimension_numbers = #tpu.dot_dimension_numbers<[2], [0], [0, 1], [1], [0, 0, 0, 1, 1, 1], [], []>} : vector<2x6x8xbf16>, vector<8x32xbf16>, vector<2x6x32xf32> -> vector<2x6x32xf32>
    %472 = arith.addf %447, %471 : vector<2x6x32xf32>
    %473 = vector.extract_strided_slice %419 {offsets = [0, 0, 16], sizes = [2, 6, 8], strides = [1, 1, 1]} : vector<2x6x32xf32> to vector<2x6x8xf32>
    %474 = arith.truncf %473 : vector<2x6x8xf32> to vector<2x6x8xbf16>
    %475 = vector.extract_strided_slice %420 {offsets = [0, 0, 16], sizes = [2, 6, 8], strides = [1, 1, 1]} : vector<2x6x32xf32> to vector<2x6x8xf32>
    %476 = arith.truncf %475 : vector<2x6x8xf32> to vector<2x6x8xbf16>
    "tpu.trace_start"() <{level = 10 : i32, message = "btd,bsd->bts"}> : () -> ()
    %cst_140 = arith.constant dense<0.000000e+00> : vector<2x6x6xf32>
    %477 = tpu.matmul %474, %476, %cst_140 {dimension_numbers = #tpu.dot_dimension_numbers<[2], [2], [1], [1], [0, 0, 0, 1, 1, 1], [0], [0]>} : vector<2x6x8xbf16>, vector<2x6x8xbf16>, vector<2x6x6xf32> -> vector<2x6x6xf32>
    "tpu.trace_stop"() : () -> ()
    %cst_141 = arith.constant 0.353553385 : f32
    %478 = vector.broadcast %cst_141 : f32 to vector<2x6x6xf32>
    %479 = arith.mulf %477, %478 : vector<2x6x6xf32>
    %cst_142 = arith.constant dense<0xFF800000> : vector<2x6xf32>
    %480 = vector.multi_reduction <maximumf>, %479, %cst_142 [2] : vector<2x6x6xf32> to vector<2x6xf32>
    %481 = vector.shape_cast %480 : vector<2x6xf32> to vector<2x6x1xf32>
    %482 = vector.broadcast %481 : vector<2x6x1xf32> to vector<2x6x6xf32>
    %483 = arith.subf %479, %482 : vector<2x6x6xf32>
    %484 = math.exp %483 : vector<2x6x6xf32>
    %cst_143 = arith.constant dense<0.000000e+00> : vector<2x6xf32>
    %485 = vector.multi_reduction <add>, %484, %cst_143 [2] : vector<2x6x6xf32> to vector<2x6xf32>
    %486 = vector.shape_cast %485 : vector<2x6xf32> to vector<2x6x1xf32>
    %487 = tpu.reciprocal %486 {approx = true} : vector<2x6x1xf32> -> vector<2x6x1xf32>
    %488 = vector.broadcast %487 : vector<2x6x1xf32> to vector<2x6x6xf32>
    %489 = arith.mulf %484, %488 : vector<2x6x6xf32>
    %490 = arith.truncf %489 : vector<2x6x6xf32> to vector<2x6x6xbf16>
    %491 = vector.extract_strided_slice %421 {offsets = [0, 0, 16], sizes = [2, 6, 8], strides = [1, 1, 1]} : vector<2x6x32xf32> to vector<2x6x8xf32>
    %492 = arith.truncf %491 : vector<2x6x8xf32> to vector<2x6x8xbf16>
    "tpu.trace_start"() <{level = 10 : i32, message = "bts,bsd->btd"}> : () -> ()
    %cst_144 = arith.constant dense<0.000000e+00> : vector<2x6x8xf32>
    %493 = tpu.matmul %490, %492, %cst_144 {dimension_numbers = #tpu.dot_dimension_numbers<[2], [1], [1], [2], [0, 0, 0, 1, 1, 2], [0], [0]>} : vector<2x6x6xbf16>, vector<2x6x8xbf16>, vector<2x6x8xf32> -> vector<2x6x8xf32>
    "tpu.trace_stop"() : () -> ()
    %494 = vector.extract_strided_slice %411 {offsets = [16, 0], sizes = [8, 32], strides = [1, 1]} : vector<32x32xbf16> to vector<8x32xbf16>
    %495 = arith.truncf %493 : vector<2x6x8xf32> to vector<2x6x8xbf16>
    %cst_145 = arith.constant dense<0.000000e+00> : vector<2x6x32xf32>
    %496 = tpu.matmul %495, %494, %cst_145 {dimension_numbers = #tpu.dot_dimension_numbers<[2], [0], [0, 1], [1], [0, 0, 0, 1, 1, 1], [], []>} : vector<2x6x8xbf16>, vector<8x32xbf16>, vector<2x6x32xf32> -> vector<2x6x32xf32>
    %497 = arith.addf %472, %496 : vector<2x6x32xf32>
    %498 = vector.extract_strided_slice %419 {offsets = [0, 0, 24], sizes = [2, 6, 8], strides = [1, 1, 1]} : vector<2x6x32xf32> to vector<2x6x8xf32>
    %499 = arith.truncf %498 : vector<2x6x8xf32> to vector<2x6x8xbf16>
    %500 = vector.extract_strided_slice %420 {offsets = [0, 0, 24], sizes = [2, 6, 8], strides = [1, 1, 1]} : vector<2x6x32xf32> to vector<2x6x8xf32>
    %501 = arith.truncf %500 : vector<2x6x8xf32> to vector<2x6x8xbf16>
    "tpu.trace_start"() <{level = 10 : i32, message = "btd,bsd->bts"}> : () -> ()
    %cst_146 = arith.constant dense<0.000000e+00> : vector<2x6x6xf32>
    %502 = tpu.matmul %499, %501, %cst_146 {dimension_numbers = #tpu.dot_dimension_numbers<[2], [2], [1], [1], [0, 0, 0, 1, 1, 1], [0], [0]>} : vector<2x6x8xbf16>, vector<2x6x8xbf16>, vector<2x6x6xf32> -> vector<2x6x6xf32>
    "tpu.trace_stop"() : () -> ()
    %cst_147 = arith.constant 0.353553385 : f32
    %503 = vector.broadcast %cst_147 : f32 to vector<2x6x6xf32>
    %504 = arith.mulf %502, %503 : vector<2x6x6xf32>
    %cst_148 = arith.constant dense<0xFF800000> : vector<2x6xf32>
    %505 = vector.multi_reduction <maximumf>, %504, %cst_148 [2] : vector<2x6x6xf32> to vector<2x6xf32>
    %506 = vector.shape_cast %505 : vector<2x6xf32> to vector<2x6x1xf32>
    %507 = vector.broadcast %506 : vector<2x6x1xf32> to vector<2x6x6xf32>
    %508 = arith.subf %504, %507 : vector<2x6x6xf32>
    %509 = math.exp %508 : vector<2x6x6xf32>
    %cst_149 = arith.constant dense<0.000000e+00> : vector<2x6xf32>
    %510 = vector.multi_reduction <add>, %509, %cst_149 [2] : vector<2x6x6xf32> to vector<2x6xf32>
    %511 = vector.shape_cast %510 : vector<2x6xf32> to vector<2x6x1xf32>
    %512 = tpu.reciprocal %511 {approx = true} : vector<2x6x1xf32> -> vector<2x6x1xf32>
    %513 = vector.broadcast %512 : vector<2x6x1xf32> to vector<2x6x6xf32>
    %514 = arith.mulf %509, %513 : vector<2x6x6xf32>
    %515 = arith.truncf %514 : vector<2x6x6xf32> to vector<2x6x6xbf16>
    %516 = vector.extract_strided_slice %421 {offsets = [0, 0, 24], sizes = [2, 6, 8], strides = [1, 1, 1]} : vector<2x6x32xf32> to vector<2x6x8xf32>
    %517 = arith.truncf %516 : vector<2x6x8xf32> to vector<2x6x8xbf16>
    "tpu.trace_start"() <{level = 10 : i32, message = "bts,bsd->btd"}> : () -> ()
    %cst_150 = arith.constant dense<0.000000e+00> : vector<2x6x8xf32>
    %518 = tpu.matmul %515, %517, %cst_150 {dimension_numbers = #tpu.dot_dimension_numbers<[2], [1], [1], [2], [0, 0, 0, 1, 1, 2], [0], [0]>} : vector<2x6x6xbf16>, vector<2x6x8xbf16>, vector<2x6x8xf32> -> vector<2x6x8xf32>
    "tpu.trace_stop"() : () -> ()
    %519 = vector.extract_strided_slice %411 {offsets = [24, 0], sizes = [8, 32], strides = [1, 1]} : vector<32x32xbf16> to vector<8x32xbf16>
    %520 = arith.truncf %518 : vector<2x6x8xf32> to vector<2x6x8xbf16>
    %cst_151 = arith.constant dense<0.000000e+00> : vector<2x6x32xf32>
    %521 = tpu.matmul %520, %519, %cst_151 {dimension_numbers = #tpu.dot_dimension_numbers<[2], [0], [0, 1], [1], [0, 0, 0, 1, 1, 1], [], []>} : vector<2x6x8xbf16>, vector<8x32xbf16>, vector<2x6x32xf32> -> vector<2x6x32xf32>
    %522 = arith.addf %497, %521 : vector<2x6x32xf32>
    %c0_152 = arith.constant 0 : index
    %c0_153 = arith.constant 0 : index
    %523 = vector.load %arg22[%c0_152, %c0_153] : memref<1x32xf32, #tpu.memory_space<vmem>>, vector<1x32xf32>
    %524 = vector.shape_cast %523 : vector<1x32xf32> to vector<1x1x32xf32>
    %525 = vector.broadcast %524 : vector<1x1x32xf32> to vector<2x6x32xf32>
    %526 = arith.addf %522, %525 : vector<2x6x32xf32>
    %527 = arith.addf %410, %526 : vector<2x6x32xf32>
    %c0_154 = arith.constant 0 : index
    %c0_155 = arith.constant 0 : index
    %528 = vector.load %arg23[%c0_154, %c0_155] : memref<1x32xf32, #tpu.memory_space<vmem>>, vector<1x32xf32>
    %c0_156 = arith.constant 0 : index
    %c0_157 = arith.constant 0 : index
    %529 = vector.load %arg24[%c0_156, %c0_157] : memref<1x32xf32, #tpu.memory_space<vmem>>, vector<1x32xf32>
    %cst_158 = arith.constant dense<0.000000e+00> : vector<2x6xf32>
    %530 = vector.multi_reduction <add>, %527, %cst_158 [2] : vector<2x6x32xf32> to vector<2x6xf32>
    %531 = vector.shape_cast %530 : vector<2x6xf32> to vector<2x6x1xf32>
    %cst_159 = arith.constant 3.200000e+01 : f32
    %532 = vector.broadcast %cst_159 : f32 to vector<2x6x1xf32>
    %533 = arith.divf %531, %532 : vector<2x6x1xf32>
    %534 = vector.broadcast %533 : vector<2x6x1xf32> to vector<2x6x32xf32>
    %535 = arith.subf %527, %534 : vector<2x6x32xf32>
    %536 = arith.mulf %535, %535 : vector<2x6x32xf32>
    %cst_160 = arith.constant dense<0.000000e+00> : vector<2x6xf32>
    %537 = vector.multi_reduction <add>, %536, %cst_160 [2] : vector<2x6x32xf32> to vector<2x6xf32>
    %538 = vector.shape_cast %537 : vector<2x6xf32> to vector<2x6x1xf32>
    %cst_161 = arith.constant 3.200000e+01 : f32
    %539 = vector.broadcast %cst_161 : f32 to vector<2x6x1xf32>
    %540 = arith.divf %538, %539 : vector<2x6x1xf32>
    %541 = vector.broadcast %533 : vector<2x6x1xf32> to vector<2x6x32xf32>
    %542 = arith.subf %527, %541 : vector<2x6x32xf32>
    %cst_162 = arith.constant 9.99999974E-6 : f32
    %543 = vector.broadcast %cst_162 : f32 to vector<2x6x1xf32>
    %544 = arith.addf %540, %543 : vector<2x6x1xf32>
    %545 = math.rsqrt %544 : vector<2x6x1xf32>
    %546 = vector.broadcast %545 : vector<2x6x1xf32> to vector<2x6x32xf32>
    %547 = arith.mulf %542, %546 : vector<2x6x32xf32>
    %548 = vector.shape_cast %528 : vector<1x32xf32> to vector<1x1x32xf32>
    %549 = vector.broadcast %548 : vector<1x1x32xf32> to vector<2x6x32xf32>
    %550 = arith.mulf %547, %549 : vector<2x6x32xf32>
    %551 = vector.shape_cast %529 : vector<1x32xf32> to vector<1x1x32xf32>
    %552 = vector.broadcast %551 : vector<1x1x32xf32> to vector<2x6x32xf32>
    %553 = arith.addf %550, %552 : vector<2x6x32xf32>
    %c0_163 = arith.constant 0 : index
    %c0_164 = arith.constant 0 : index
    %554 = vector.load %arg25[%c0_163, %c0_164] : memref<32x64xbf16, #tpu.memory_space<vmem>>, vector<32x64xbf16>
    %555 = arith.truncf %553 : vector<2x6x32xf32> to vector<2x6x32xbf16>
    %cst_165 = arith.constant dense<0.000000e+00> : vector<2x6x64xf32>
    %556 = tpu.matmul %555, %554, %cst_165 {dimension_numbers = #tpu.dot_dimension_numbers<[2], [0], [0, 1], [1], [0, 0, 0, 1, 1, 1], [], []>} : vector<2x6x32xbf16>, vector<32x64xbf16>, vector<2x6x64xf32> -> vector<2x6x64xf32>
    %c0_166 = arith.constant 0 : index
    %c0_167 = arith.constant 0 : index
    %557 = vector.load %arg26[%c0_166, %c0_167] : memref<1x64xf32, #tpu.memory_space<vmem>>, vector<1x64xf32>
    %558 = vector.shape_cast %557 : vector<1x64xf32> to vector<1x1x64xf32>
    %559 = vector.broadcast %558 : vector<1x1x64xf32> to vector<2x6x64xf32>
    %560 = arith.addf %556, %559 : vector<2x6x64xf32>
    %cst_168 = arith.constant 0.000000e+00 : f32
    %561 = vector.broadcast %cst_168 : f32 to vector<2x6x64xf32>
    %562 = arith.maximumf %560, %561 : vector<2x6x64xf32>
    %c0_169 = arith.constant 0 : index
    %c0_170 = arith.constant 0 : index
    %563 = vector.load %arg27[%c0_169, %c0_170] : memref<64x32xbf16, #tpu.memory_space<vmem>>, vector<64x32xbf16>
    %564 = arith.truncf %562 : vector<2x6x64xf32> to vector<2x6x64xbf16>
    %cst_171 = arith.constant dense<0.000000e+00> : vector<2x6x32xf32>
    %565 = tpu.matmul %564, %563, %cst_171 {dimension_numbers = #tpu.dot_dimension_numbers<[2], [0], [0, 1], [1], [0, 0, 0, 1, 1, 1], [], []>} : vector<2x6x64xbf16>, vector<64x32xbf16>, vector<2x6x32xf32> -> vector<2x6x32xf32>
    %c0_172 = arith.constant 0 : index
    %c0_173 = arith.constant 0 : index
    %566 = vector.load %arg28[%c0_172, %c0_173] : memref<1x32xf32, #tpu.memory_space<vmem>>, vector<1x32xf32>
    %567 = vector.shape_cast %566 : vector<1x32xf32> to vector<1x1x32xf32>
    %568 = vector.broadcast %567 : vector<1x1x32xf32> to vector<2x6x32xf32>
    %569 = arith.addf %565, %568 : vector<2x6x32xf32>
    %570 = arith.addf %553, %569 : vector<2x6x32xf32>
    %c0_174 = arith.constant 0 : index
    %c0_175 = arith.constant 0 : index
    %571 = vector.load %arg29[%c0_174, %c0_175] : memref<1x32xf32, #tpu.memory_space<vmem>>, vector<1x32xf32>
    %c0_176 = arith.constant 0 : index
    %c0_177 = arith.constant 0 : index
    %572 = vector.load %arg30[%c0_176, %c0_177] : memref<1x32xf32, #tpu.memory_space<vmem>>, vector<1x32xf32>
    %cst_178 = arith.constant dense<0.000000e+00> : vector<2x6xf32>
    %573 = vector.multi_reduction <add>, %570, %cst_178 [2] : vector<2x6x32xf32> to vector<2x6xf32>
    %574 = vector.shape_cast %573 : vector<2x6xf32> to vector<2x6x1xf32>
    %cst_179 = arith.constant 3.200000e+01 : f32
    %575 = vector.broadcast %cst_179 : f32 to vector<2x6x1xf32>
    %576 = arith.divf %574, %575 : vector<2x6x1xf32>
    %577 = vector.broadcast %576 : vector<2x6x1xf32> to vector<2x6x32xf32>
    %578 = arith.subf %570, %577 : vector<2x6x32xf32>
    %579 = arith.mulf %578, %578 : vector<2x6x32xf32>
    %cst_180 = arith.constant dense<0.000000e+00> : vector<2x6xf32>
    %580 = vector.multi_reduction <add>, %579, %cst_180 [2] : vector<2x6x32xf32> to vector<2x6xf32>
    %581 = vector.shape_cast %580 : vector<2x6xf32> to vector<2x6x1xf32>
    %cst_181 = arith.constant 3.200000e+01 : f32
    %582 = vector.broadcast %cst_181 : f32 to vector<2x6x1xf32>
    %583 = arith.divf %581, %582 : vector<2x6x1xf32>
    %584 = vector.broadcast %576 : vector<2x6x1xf32> to vector<2x6x32xf32>
    %585 = arith.subf %570, %584 : vector<2x6x32xf32>
    %cst_182 = arith.constant 9.99999974E-6 : f32
    %586 = vector.broadcast %cst_182 : f32 to vector<2x6x1xf32>
    %587 = arith.addf %583, %586 : vector<2x6x1xf32>
    %588 = math.rsqrt %587 : vector<2x6x1xf32>
    %589 = vector.broadcast %588 : vector<2x6x1xf32> to vector<2x6x32xf32>
    %590 = arith.mulf %585, %589 : vector<2x6x32xf32>
    %591 = vector.shape_cast %571 : vector<1x32xf32> to vector<1x1x32xf32>
    %592 = vector.broadcast %591 : vector<1x1x32xf32> to vector<2x6x32xf32>
    %593 = arith.mulf %590, %592 : vector<2x6x32xf32>
    %594 = vector.shape_cast %572 : vector<1x32xf32> to vector<1x1x32xf32>
    %595 = vector.broadcast %594 : vector<1x1x32xf32> to vector<2x6x32xf32>
    %596 = arith.addf %593, %595 : vector<2x6x32xf32>
    %597 = vector.extract_strided_slice %596 {offsets = [0, 5, 0], sizes = [2, 1, 32], strides = [1, 1, 1]} : vector<2x6x32xf32> to vector<2x1x32xf32>
    %598 = vector.shape_cast %597 : vector<2x1x32xf32> to vector<2x32xf32>
    %c0_183 = arith.constant 0 : index
    %c0_184 = arith.constant 0 : index
    %599 = vector.load %arg31[%c0_183, %c0_184] : memref<32x1xbf16, #tpu.memory_space<vmem>>, vector<32x1xbf16>
    %600 = arith.truncf %598 : vector<2x32xf32> to vector<2x32xbf16>
    %cst_185 = arith.constant dense<0.000000e+00> : vector<2x1xf32>
    %601 = tpu.matmul %600, %599, %cst_185 {dimension_numbers = #tpu.dot_dimension_numbers<[1], [0], [0], [1], [0, 0, 1, 1], [], []>} : vector<2x32xbf16>, vector<32x1xbf16>, vector<2x1xf32> -> vector<2x1xf32>
    %c0_186 = arith.constant 0 : index
    %c0_187 = arith.constant 0 : index
    %602 = vector.load %arg32[%c0_186, %c0_187] : memref<1x1xf32, #tpu.memory_space<vmem>>, vector<1x1xf32>
    %603 = vector.broadcast %602 : vector<1x1xf32> to vector<2x1xf32>
    %604 = arith.addf %601, %603 : vector<2x1xf32>
    %c0_188 = arith.constant 0 : index
    %c0_189 = arith.constant 0 : index
    %605 = vector.load %arg33[%c0_188, %c0_189] : memref<2x1xf32, #tpu.memory_space<vmem>>, vector<2x1xf32>
    tpu.vector_store %arg33[%c0_188, %c0_189], %604 {strides = array<i32>} : memref<2x1xf32, #tpu.memory_space<vmem>>, vector<2x1xf32>,
    return
  }
}

</mosaic_0001>

<bundles_post_ra>
// kernel: cnn_lstm_transformer_forward.1
= control target key start
LH: loop header
LB: loop body
LE: loop exit
PB: predicated region body
PF: predicated region fallthrough
CT: control target
= control target key end

     0   :  { %s7519_s6 = smov 8   ;;  %s7520_s7 = smov 2   ;;  %v7522_v7 = vmov 0.0   ;;  %vm317_vm0 = vcmask 1045504   ;;  %vm7523_vm1 = vmmov 0   ;;  %v182_v10 = vlaneseq  ;;  %s8735_s0 = inlined_call_operand.smem [shape: u32[34], index: -1, kind: input, shape index: {}] }
   0x1   :  { %s1_s5 = sld [smem:[%s8735_s0]]   ;;  %s7521_s11 = smov 4   ;;  %6904 = vmatprep.subr.bf16.mxu0 %v7522_v7  ;;  %6906 = vmatprep.mubr.msk.bf16.mxu0 %vm7523_vm1, %v7522_v7  ;;  %v7524_v11 = vmov 1966171168   ;;  %vm161_vm2 = vcmask 31744   ;;  %vm164_vm3 = vcmask 64512   ;;  %vm313_vm4 = vcmask 97280  }
   0x2   :  { %s6635_s10 = sld [smem:[%s8735_s0 + %s7520_s7]]   ;;  %6910 = vmatprep.subr.bf16.mxu1 %v7522_v7  ;;  %6912 = vmatprep.mubr.msk.bf16.mxu1 %vm7523_vm1, %v7522_v7  ;;  %v180_v12 = vunpack.c.l.s4 %v7524_v11  ;;  %v7589_v13 = vshrl.u32 %v182_v10, 7  ;;  %s7525_s15 = smov 5   ;;  %vm570_vm5 = vcmask 1043456   ;;  %v7526_v51 = vmov 0  }
   0x3   :  { %s6637_s14 = sld [smem:[%s8735_s0 + %s7521_s11]]   ;;  %v7527_v52 = vmov 1983009808   ;;  %s7528_s19 = smov 3   ;;  %vm791_vm6 = vcmask 1041409   ;;  %vm660_vm7 = vcmask 261120   ;;  %vm922_vm8 = vcmask 254977  }
   0x4   :  { %v181_v14 = vunpack.c.0.s8 %v180_v12  ;;  %s6638_s18 = sld [smem:[%s8735_s0 + %s7525_s15]]   ;;  %v227_v53 = vunpack.c.l.s4 %v7527_v52  ;;  %s7529_s23 = smov 6   ;;  %vm781_vm9 = vcmask 253952   ;;  %vm1856_vm10 = vcmask 46080  }
   0x5   :  { %s6636_s22 = sld [smem:[%s8735_s0 + %s7528_s19]]   ;;  %s7530_s27 = smov 64   ;;  %vm1887_vm11 = vcmask 1042432   ;;  %vm1883_vm12 = vcmask 48128   ;;  %vm3379_vm13 = vcmask 259072   ;;  %vm3872_vm14 = vcmask 523264  }
   0x6   :  { %v7592_v19 = vsub.s32 %v181_v14, %v7589_v13  ;;  %v228_v54 = vunpack.c.0.s8 %v227_v53  ;;  %s6639_s26 = sld [smem:[%s8735_s0 + %s7529_s23]]   ;;  %s7531_s28 = smov 32   ;;  %vm6628_vm15 = vcmask 1024  }
   0x7   :  { %v141_v0 = vld [vmem:[%s1_s5] sm:$0xff]  ;;  %v142_v1 = vld [vmem:[%s1_s5 + $0x8] sm:$0xff]  ;;  %s7532_s29 = smov 7   ;;  %s7533_s3 = smov 1  }
   0x8   :  { %v145_v2 = vrot.slane %v141_v0, 1  ;;  %v146_v3 = vrot.slane %v142_v1, 1  ;;  %v154_v4 = vrot.slane %v142_v1, 2  ;;  %v153_v6 = vrot.slane %v141_v0, 2  ;;  %v7322_v8 = vld [vmem:[%s6635_s10] sm:$0x3f]   ;;  %s6640_s2 = sld [smem:[%s8735_s0 + %s7532_s29]]  }
   0x9   :  { %v319_v9 = vsel %vm317_vm0, %v7322_v8, 0  ;;  %v389_v49 = vld [vmem:[%s6637_s14] sm:$0xf]  ;;  %v7636_v55 = vsub.s32 %v228_v54, %v7589_v13  ;;  %s6634_s7 = sld [smem:[%s8735_s0 + %s7533_s3]]   ;;  %s7536_s12 = smov 120  }
   0xa   :  { %v7317_v5 = vpack.i.bf16 %v146_v3, %v145_v2  ;;  %157 = vrot.lane.b32.xlu1 %v154_v4, %s7519_s6  ;;  %6905 = vmatpush3.bf16.msra.mxu0 %v319_v9  ;;  %v7616_v47 = vld [vmem:[%s6638_s18 + $0x8] sm:$0xff]   ;;  %v7619_v48 = vld [vmem:[%s6638_s18] sm:$0xff]   ;;  %v572_v50 = vsel %vm570_vm5, %v389_v49, 0  ;;  %s6641_s10 = sld [smem:[%s8735_s0 + %s7519_s6]]   ;;  %s7537_s13 = smov 56  }
   0xb   :  { %6916 = vmatprep.subr.bf16.mxu0 %v7522_v7  ;;  %6911 = vmatpush3.bf16.msra.mxu1 %v572_v50  ;;  %v6667_v56 = vld [vmem:[%s6636_s22] ss:$0 sm:$0xff]  ;;  %s7538_s14 = smov 80   ;;  %s7539_s15 = smov 112  }
   0xc   :  { %7318 = vrot.lane.b32.xlu0 %v7317_v5, %s7521_s11  ;;  %6924 = vmatprep.subr.bf16.mxu1 %v7522_v7  ;;  %v225_v57 = vcombine.high %v6667_v56, %v6667_v56  ;;  %v232_v58 = vrot.slane %v6667_v56, %v7636_v55  ;;  %s7535_s11 = smov 88   ;;  %s7540_s16 = smov 9  }
   0xd   :  { %s8034_s19 = sld [smem:[%s8735_s0 + %s7540_s16]]   ;;  %s7541_s20 = smov 48  }
   0xe   :  { %v239_v59 = vrot.slane %v225_v57, %v7636_v55  ;;  %v240_v60 = vcombine.high %v232_v58, %v232_v58  ;;  %v6670_v57 = vld [vmem:[%s6639_s26] ss:$0 sm:$0xff]  ;;  %s7542_s21 = smov 72   ;;  %s7543_s22 = smov 104  }
   0xf   :  { %s7544_s23 = smov 40   ;;  %s7545_s24 = smov 10  }
  0x10   :  { %155 = vrot.lane.b32.xlu0 %v153_v6, %s7519_s6  ;;  %v286_v61 = vcombine.low %v232_v58, %v240_v60  ;;  %v287_v62 = vcombine.low %v239_v59, %v232_v58  ;;  %v303_v2 = vcombine.low %v240_v60, %v239_v59  ;;  %v484_v58 = vcombine.high %v6670_v57, %v6670_v57  ;;  %s7534_s6 = smov 96   ;;  %s6643_s29 = sld [smem:[%s8735_s0 + %s7545_s24]]  }
  0x11   :  { %v491_v59 = vrot.slane %v6670_v57, %v7636_v55  ;;  %s7546_s30 = smov 13   ;;  %s7547_s4 = smov 11  }
  0x12   :  { %v294_v63 = vrot.slane %v286_v61, %v7636_v55  ;;  %v310_v5 = vrot.slane %v303_v2, %v7636_v55  ;;  %v7673_v60 = vrot.slane %v484_v58, %v7636_v55  ;;  %s6646_s3 = sld [smem:[%s8735_s0 + %s7546_s30]]   ;;  %s7548_s9 = smov 12  }
  0x13   :  { %v7675_v61 = vcombine.high %v491_v59, %v491_v59  ;;  %s6644_s8 = sld [smem:[%s8735_s0 + %s7547_s4]]   ;;  %s7549_s18 = smov 15  }
  0x14   :  { %s6645_s17 = sld [smem:[%s8735_s0 + %s7548_s9]]   ;;  %s7550_s26 = smov 14  }
  0x15   :  { %s6648_s25 = sld [smem:[%s8735_s0 + %s7549_s18]]   ;;  %s7553_s16 = smov 17  }
  0x16   :  { %s6647_s1 = sld [smem:[%s8735_s0 + %s7550_s26]]   ;;  %s7554_s24 = smov 18  }
  0x17   :  { %s7555_s30 = smov 20  }
  0x7c   :  { %v158_v18 = vpop.permute.xlu1 %157 }
  0x7e   :  { %v7319_v15 = vpop.permute.xlu0 %7318 }
  0x7f   :  { %v7321_v16 = vunpack.i.h.bf16 %v7319_v15  ;;  %v7320_v17 = vunpack.i.l.bf16 %v7319_v15 }
  0x81   :  { %v163_v20 = vsel %vm161_vm2, %v142_v1, %v7321_v16  ;;  %v162_v21 = vsel %vm161_vm2, %v141_v0, %v7320_v17  ;;  %v301_v0 = vrot.slane %v287_v62, %v7636_v55  ;;  %v540_v62 = vcombine.low %v491_v59, %v7675_v61 }
  0x82   :  { %v166_v22 = vsel %vm164_vm3, %v163_v20, %v158_v18  ;;  %v156_v23 = vpop.permute.xlu0 %155 }
  0x83   :  { %v170_v24 = vpack.c.bf16 %v166_v22, %v166_v22  ;;  %v165_v25 = vsel %vm164_vm3, %v162_v21, %v156_v23  ;;  %v302_v1 = vcombine.low %v294_v63, %v301_v0  ;;  %v541_v63 = vcombine.low %v7673_v60, %v491_v59 }
  0x84   :  { %v169_v26 = vpack.c.bf16 %v165_v25, %v165_v25  ;;  %v548_v0 = vrot.slane %v540_v62, %v7636_v55 }
  0x85   :  { %v208_v27 = vrot.slane %v170_v24, %v7592_v19 }
  0x86   :  { %v185_v28 = vrot.slane %v169_v26, %v7592_v19 }
  0x87   :  { %v209_v29 = vcombine.high %v208_v27, %v208_v27  ;;  %v216_v30 = vrot.slane %v208_v27, %v7592_v19 }
  0x88   :  { %v186_v31 = vcombine.high %v185_v28, %v185_v28  ;;  %v193_v32 = vrot.slane %v185_v28, %v7592_v19 }
  0x89   :  { %v223_v33 = vrot.slane %v209_v29, %v7592_v19  ;;  %v224_v34 = vcombine.high %v216_v30, %v216_v30 }
  0x8a   :  { %v200_v35 = vrot.slane %v186_v31, %v7592_v19  ;;  %v201_v36 = vcombine.high %v193_v32, %v193_v32 }
  0x8b   :  { %v243_v37 = vcombine.low %v223_v33, %v224_v34 }
  0x8c   :  { %v241_v38 = vcombine.low %v193_v32, %v200_v35  ;;  %v242_v39 = vcombine.low %v201_v36, %v216_v30 }
  0x8d   :  { %v264_v42 = vrot.slane %v243_v37, %v7592_v19 }
  0x8e   :  { %v250_v40 = vrot.slane %v241_v38, %v7592_v19  ;;  %v257_v41 = vrot.slane %v242_v39, %v7592_v19 }
  0x8f   :  { %v279_v45 = vrot.slane %v264_v42, %v7592_v19 }
  0x90   :  { %v265_v43 = vcombine.low %v250_v40, %v257_v41 }
  0x92   :  { %v272_v44 = vrot.slane %v265_v43, %v7592_v19 }
  0x94   :  { %v280_v46 = vcombine.low %v272_v44, %v279_v45 }
  0x96   :  { %6907 = vmatmul.mubr.msk.bf16.vlgmr.msra.gmra.mxu0 %vm313_vm4, %v280_v46 }
  0x97   :  { %6920 = vmatprep.mubr.msk.bf16.mxu0 %vm7523_vm1, %v7522_v7  ;;  %6917 = vmatpush3.bf16.msra.mxu0 %v7616_v47 }
  0x98   :  { %6918 = vmatprep.subr.bf16.mxu0 %v7522_v7 }
  0x9b   :  { %6919 = vmatpush3.bf16.msra.mxu0 %v7619_v48 }
  0x9c   :  { %6932 = vmatprep.subr.bf16.mxu0 %v7522_v7 }
  0x9e   :  { %6921 = vmatmul.mubr.bf16.vlgmr.msra.gmra.mxu0 %v7526_v51 }
  0x9f   :  { %6933 = vmatpush3.bf16.msra.mxu0 %v7616_v47  ;;  %6936 = vmatprep.mubr.msk.bf16.mxu0 %vm7523_vm1, %v7522_v7 }
  0xa0   :  { %6934 = vmatprep.subr.bf16.mxu0 %v7522_v7 }
  0xa3   :  { %6935 = vmatpush3.bf16.msra.mxu0 %v7619_v48 }
  0xa4   :  { %6948 = vmatprep.subr.bf16.mxu0 %v7522_v7 }
 0x156   :  { %v355_v3 = vpop.f32.mrf.mxu0 }
 0x157   :  { %v356_v4 = vadd.f32 %v355_v3, %v302_v1  ;;  %v555_v1 = vrot.slane %v541_v63, %v7636_v55 }
 0x158   :  { %v6908_v6 = vpop.f32.mrf.mxu0 }
 0x159   :  { %v364_v8 = vcombine.high %v356_v4, %v356_v4  ;;  %v371_v9 = vrot.slane %v356_v4, %v7636_v55  ;;  %v556_v2 = vcombine.low %v548_v0, %v555_v1 }
 0x15a   :  { %v358_v10 = vpop.f32.mrf.mxu0 }
 0x15b   :  { %v378_v11 = vrot.slane %v364_v8, %v7636_v55  ;;  %v379_v12 = vcombine.high %v371_v9, %v371_v9  ;;  %v359_v14 = vadd.f32 %v358_v10, %v310_v5 }
 0x15c   :  { %v6909_v15 = vpop.f32.mrf.mxu0 }
 0x15d   :  { %v394_v16 = vcombine.low %v371_v9, %v379_v12  ;;  %v380_v17 = vcombine.high %v378_v11, %v378_v11  ;;  %v387_v18 = vrot.slane %v359_v14, %v7636_v55  ;;  %v408_v21 = vrot.slane %v378_v11, %v7636_v55 }
 0x15e   :  { %v698_v52 = vpop.f32.mrf.mxu0 }
 0x15f   :  { %v401_v20 = vrot.slane %v394_v16, %v7636_v55  ;;  %v388_v22 = vcombine.high %v387_v18, %v387_v18  ;;  %v410_v23 = vcombine.low %v380_v17, %v387_v18  ;;  %v711_v4 = vrot.slane %v698_v52, %v7636_v55 }
 0x160   :  { %v6922_v53 = vpop.f32.mrf.mxu0 }
 0x161   :  { %v409_v24 = vcombine.low %v401_v20, %v408_v21  ;;  %v417_v25 = vrot.slane %v410_v23, %v7636_v55  ;;  %v424_v26 = vrot.slane %v388_v22, %v7636_v55  ;;  %v712_v11 = vrot.slane %v711_v4, 1 }
 0x162   :  { %v701_v54 = vpop.f32.mrf.mxu0 }
 0x163   :  { %v428_v27 = vpack.c.bf16 %v409_v24, %v409_v24  ;;  %v425_v28 = vcombine.low %v417_v25, %v424_v26 }
 0x164   :  { %v6923_v56 = vpop.f32.mrf.mxu0 }
 0x165   :  { %v444_v29 = vrot.slane %v428_v27, %v7592_v19  ;;  %v429_v30 = vpack.c.bf16 %v425_v28, %v425_v28 }
 0x167   :  { %v445_v31 = vcombine.high %v444_v29, %v444_v29  ;;  %v452_v32 = vrot.slane %v444_v29, %v7592_v19  ;;  %v467_v33 = vrot.slane %v429_v30, %v7592_v19 }
 0x169   :  { %v459_v34 = vrot.slane %v445_v31, %v7592_v19  ;;  %v460_v35 = vcombine.high %v452_v32, %v452_v32  ;;  %v468_v36 = vcombine.high %v467_v33, %v467_v33  ;;  %v475_v37 = vrot.slane %v467_v33, %v7592_v19 }
 0x16b   :  { %v500_v38 = vcombine.low %v452_v32, %v459_v34  ;;  %v482_v39 = vrot.slane %v468_v36, %v7592_v19  ;;  %v483_v40 = vcombine.high %v475_v37, %v475_v37  ;;  %v501_v41 = vcombine.low %v460_v35, %v475_v37 }
 0x16d   :  { %v502_v42 = vcombine.low %v482_v39, %v483_v40  ;;  %v509_v43 = vrot.slane %v500_v38, %v7592_v19  ;;  %v516_v44 = vrot.slane %v501_v41, %v7592_v19 }
 0x16f   :  { %v523_v45 = vrot.slane %v502_v42, %v7592_v19  ;;  %v524_v46 = vcombine.low %v509_v43, %v516_v44 }
 0x171   :  { %v531_v49 = vrot.slane %v524_v46, %v7592_v19  ;;  %v538_v50 = vrot.slane %v523_v45, %v7592_v19 }
 0x173   :  { %v539_v51 = vcombine.low %v531_v49, %v538_v50 }
 0x175   :  { %6913 = vmatmul.mubr.msk.bf16.vlgmr.msra.gmra.mxu1 %vm164_vm3, %v539_v51 }
 0x176   :  { %6925 = vmatpush3.bf16.msra.mxu1 %v7616_v47  ;;  %6928 = vmatprep.mubr.msk.bf16.mxu1 %vm7523_vm1, %v7522_v7 }
 0x177   :  { %6926 = vmatprep.subr.bf16.mxu1 %v7522_v7 }
 0x17a   :  { %6927 = vmatpush3.bf16.msra.mxu1 %v7619_v48 }
 0x17b   :  { %6940 = vmatprep.subr.bf16.mxu1 %v7522_v7 }
 0x235   :  { %v608_v3 = vpop.f32.mrf.mxu1 }
 0x236   :  { %v609_v5 = vadd.f32 %v608_v3, %v556_v2 }
 0x237   :  { %v6914_v6 = vpop.f32.mrf.mxu1 }
 0x238   :  { %v617_v8 = vcombine.high %v609_v5, %v609_v5  ;;  %v7683_v9 = vrot.slane %v609_v5, %v7636_v55 }
 0x239   :  { %v7685_v10 = vpop.f32.mrf.mxu1 }
 0x23a   :  { %v7688_v12 = vrot.slane %v617_v8, %v7636_v55  ;;  %v715_v14 = vadd.f32 %v711_v4, %v7683_v9 }
 0x23b   :  { %v6915_v15 = vpop.f32.mrf.mxu1 }
 0x23c   :  { %v7693_v16 = vcombine.high %v7688_v12, %v7688_v12  ;;  %7343 = vtanh.f32 %v715_v14  ;;  %v6674_v21 = vmul.f32 -1.442695, %v715_v14 }
 0x23e   :  { %v716_v17 = vadd.f32 %v712_v11, %v7693_v16 }
 0x240   :  { %7345 = vtanh.f32 %v716_v17  ;;  %v6675_v22 = vmul.f32 -1.442695, %v716_v17 }
 0x241   :  { %7347 = vpow2.f32 %v6674_v21 }
 0x242   :  { %7349 = vpow2.f32 %v6675_v22 }
 0x249   :  { %v7344_v18 = vpop.eup %7343 }
 0x24a   :  { %735 = vrot.lane.b32.xlu0 %v7344_v18, %s7530_s27 }
 0x24d   :  { %v7346_v20 = vpop.eup %7345 }
 0x24e   :  { %737 = vrot.lane.b32.xlu1 %v7346_v20, %s7530_s27  ;;  %v7348_v23 = vpop.eup %7347 }
 0x24f   :  { %v723_v24 = vadd.f32 1.0, %v7348_v23  ;;  %v7350_v25 = vpop.eup %7349 }
 0x250   :  { %v724_v26 = vadd.f32 1.0, %v7350_v25 }
 0x251   :  { %7351 = vrcp.f32 %v723_v24 }
 0x252   :  { %7353 = vrcp.f32 %v724_v26 }
 0x25e   :  { %v7352_v27 = vpop.eup %7351 }
 0x25f   :  { %v7354_v30 = vpop.eup %7353  ;;  %v731_v33 = vmul.f32 0.0, %v7352_v27 }
 0x260   :  { %v732_v36 = vmul.f32 0.0, %v7354_v30 }
 0x2bc   :  { %v736_v28 = vpop.permute.xlu0 %735 }
 0x2bd   :  { %v741_v29 = vmul.f32 %v7352_v27, %v736_v28 }
 0x2bf   :  { %745 = vrot.lane.b32.xlu0 %v741_v29, %s7531_s28 }
 0x2c0   :  { %v738_v31 = vpop.permute.xlu1 %737 }
 0x2c1   :  { %v742_v32 = vmul.f32 %v7354_v30, %v738_v31 }
 0x2c3   :  { %747 = vrot.lane.b32.xlu1 %v742_v32, %s7531_s28 }
 0x331   :  { %v746_v34 = vpop.permute.xlu0 %745 }
 0x332   :  { %v7700_v35 = vadd.f32 %v746_v34, %v731_v33 }
 0x334   :  { %7355 = vtanh.f32 %v7700_v35  ;;  %v868_v24 = vrot.slane %v7700_v35, 7 }
 0x335   :  { %v748_v37 = vpop.permute.xlu1 %747 }
 0x336   :  { %v752_v38 = vadd.f32 %v748_v37, %v732_v36 }
 0x338   :  { %7357 = vtanh.f32 %v752_v38  ;;  %v869_v22 = vrot.slane %v752_v38, 7 }
 0x341   :  { %v7356_v39 = vpop.eup %7355 }
 0x342   :  { %757 = vrot.lane.b32.xlu0 %v7356_v39, %s7530_s27 }
 0x345   :  { %v7358_v40 = vpop.eup %7357 }
 0x346   :  { %759 = vrot.lane.b32.xlu1 %v7358_v40, %s7530_s27 }
 0x3b4   :  { %v758_v41 = vpop.permute.xlu0 %757 }
 0x3b5   :  { %v7705_v42 = vmul.f32 %v7352_v27, %v758_v41 }
 0x3b7   :  { %v784_v45 = vpack.c.bf16 %v7705_v42, %v7705_v42 }
 0x3b8   :  { %v760_v43 = vpop.permute.xlu1 %759 }
 0x3b9   :  { %v7707_v44 = vmul.f32 %v7354_v30, %v760_v43  ;;  %v788_v50 = vunpack.c.l.b16 %v784_v45 }
 0x3bb   :  { %v785_v46 = vpack.c.bf16 %v7707_v44, %v7707_v44 }
 0x3bd   :  { %v789_v49 = vunpack.c.l.b16 %v785_v46  ;;  %v557_v46 = vcombine.low %v7675_v61, %v7673_v60 }
 0x3bf   :  { %v790_v51 = vrot.slane %v789_v49, 7  ;;  %v564_v49 = vrot.slane %v557_v46, %v7636_v55 }
 0x3c1   :  { %v792_v52 = vsel %vm791_vm6, %v790_v51, %v788_v50  ;;  %v612_v50 = vadd.f32 %v7685_v10, %v564_v49 }
 0x3c2   :  { %v793_v53 = vpack.c.b16 %v792_v52, %v792_v52  ;;  %v7761_v52 = vcombine.high %v7683_v9, %v7683_v9 }
 0x3c4   :  { %794 = vrot.lane.b32.xlu1 %v793_v53, %s7531_s28 }
 0x436   :  { %v795_v54 = vpop.permute.xlu1 %794 }
 0x437   :  { %6929 = vmatmul.mubr.msk.bf16.vlgmr.msra.gmra.mxu1 %vm660_vm7, %v795_v54 }
 0x438   :  { %6941 = vmatpush3.bf16.msra.mxu1 %v7616_v47  ;;  %6944 = vmatprep.mubr.msk.bf16.mxu1 %vm7523_vm1, %v7522_v7 }
 0x439   :  { %6942 = vmatprep.subr.bf16.mxu1 %v7522_v7 }
 0x43c   :  { %6943 = vmatpush3.bf16.msra.mxu1 %v7619_v48 }
 0x43d   :  { %6956 = vmatprep.subr.bf16.mxu1 %v7522_v7 }
 0x4f7   :  { %v833_v56 = vpop.f32.mrf.mxu1 }
 0x4f8   :  { %v846_v57 = vrot.slane %v833_v56, %v7636_v55  ;;  %v7765_v56 = vrot.slane %v612_v50, %v7636_v55 }
 0x4f9   :  { %v6930_v58 = vpop.f32.mrf.mxu1 }
 0x4fa   :  { %v847_v59 = vrot.slane %v846_v57, 7  ;;  %v851_v62 = vadd.f32 %v846_v57, %v7693_v16 }
 0x4fb   :  { %v836_v63 = vpop.f32.mrf.mxu1 }
 0x4fc   :  { %v850_v0 = vadd.f32 %v847_v59, %v7683_v9  ;;  %7359 = vtanh.f32 %v851_v62  ;;  %v6678_v4 = vmul.f32 -1.442695, %v851_v62 }
 0x4fd   :  { %v6931_v1 = vpop.f32.mrf.mxu1 }
 0x4fe   :  { %7361 = vtanh.f32 %v850_v0  ;;  %v6677_v5 = vmul.f32 -1.442695, %v850_v0 }
 0x4ff   :  { %7363 = vpow2.f32 %v6678_v4 }
 0x500   :  { %7365 = vpow2.f32 %v6677_v5 }
 0x509   :  { %v7360_v2 = vpop.eup %7359 }
 0x50a   :  { %878 = vrot.lane.b32.xlu1 %v7360_v2, %s7530_s27 }
 0x50b   :  { %v7362_v3 = vpop.eup %7361 }
 0x50c   :  { %876 = vrot.lane.b32.xlu0 %v7362_v3, %s7530_s27  ;;  %v7364_v6 = vpop.eup %7363 }
 0x50d   :  { %v7366_v8 = vpop.eup %7365  ;;  %v859_v11 = vadd.f32 1.0, %v7364_v6 }
 0x50e   :  { %v858_v14 = vadd.f32 1.0, %v7366_v8 }
 0x50f   :  { %7367 = vrcp.f32 %v859_v11 }
 0x510   :  { %7369 = vrcp.f32 %v858_v14 }
 0x51c   :  { %v7368_v15 = vpop.eup %7367 }
 0x51d   :  { %v7370_v18 = vpop.eup %7369  ;;  %v873_v23 = vmul.f32 %v7368_v15, %v869_v22 }
 0x51e   :  { %v872_v27 = vmul.f32 %v7370_v18, %v868_v24 }
 0x57c   :  { %v879_v16 = vpop.permute.xlu1 %878 }
 0x57d   :  { %v883_v17 = vmul.f32 %v7368_v15, %v879_v16 }
 0x57e   :  { %v877_v20 = vpop.permute.xlu0 %876 }
 0x57f   :  { %888 = vrot.lane.b32.xlu1 %v883_v17, %s7531_s28  ;;  %v882_v21 = vmul.f32 %v7370_v18, %v877_v20 }
 0x581   :  { %886 = vrot.lane.b32.xlu0 %v882_v21, %s7531_s28 }
 0x5f1   :  { %v889_v25 = vpop.permute.xlu1 %888 }
 0x5f2   :  { %v7730_v26 = vadd.f32 %v889_v25, %v873_v23 }
 0x5f3   :  { %v887_v28 = vpop.permute.xlu0 %886 }
 0x5f4   :  { %7371 = vtanh.f32 %v7730_v26  ;;  %v7733_v29 = vadd.f32 %v887_v28, %v872_v27  ;;  %v6683_v17 = vrot.slane %v7730_v26, 9 }
 0x5f6   :  { %7373 = vtanh.f32 %v7733_v29 }
 0x601   :  { %v7372_v30 = vpop.eup %7371 }
 0x602   :  { %900 = vrot.lane.b32.xlu1 %v7372_v30, %s7530_s27 }
 0x603   :  { %v7374_v31 = vpop.eup %7373 }
 0x604   :  { %898 = vrot.lane.b32.xlu0 %v7374_v31, %s7530_s27 }
 0x674   :  { %v901_v32 = vpop.permute.xlu1 %900 }
 0x675   :  { %v7738_v33 = vmul.f32 %v7368_v15, %v901_v32  ;;  %v6682_v15 = vrot.slane %v7733_v29, 9 }
 0x676   :  { %v899_v34 = vpop.permute.xlu0 %898 }
 0x677   :  { %v7740_v35 = vmul.f32 %v7370_v18, %v899_v34  ;;  %v926_v36 = vpack.c.bf16 %v7738_v33, %v7738_v33 }
 0x679   :  { %v925_v37 = vpack.c.bf16 %v7740_v35, %v7740_v35  ;;  %v930_v39 = vunpack.c.l.b16 %v926_v36 }
 0x67b   :  { %v929_v38 = vunpack.c.l.b16 %v925_v37 }
 0x67d   :  { %v931_v40 = vrot.slane %v929_v38, 1 }
 0x67f   :  { %v932_v41 = vsel %vm791_vm6, %v930_v39, %v931_v40 }
 0x680   :  { %v933_v43 = vpack.c.b16 %v932_v41, %v932_v41 }
 0x682   :  { %934 = vrot.lane.b32.xlu0 %v933_v43, %s7531_s28 }
 0x6f4   :  { %v935_v45 = vpop.permute.xlu0 %934 }
 0x6f5   :  { %6937 = vmatmul.mubr.msk.bf16.vlgmr.msra.gmra.mxu0 %vm660_vm7, %v935_v45 }
 0x6f6   :  { %6949 = vmatpush3.bf16.msra.mxu0 %v7616_v47  ;;  %6952 = vmatprep.mubr.msk.bf16.mxu0 %vm7523_vm1, %v7522_v7 }
 0x6f7   :  { %6950 = vmatprep.subr.bf16.mxu0 %v7522_v7 }
 0x6fa   :  { %6951 = vmatpush3.bf16.msra.mxu0 %v7619_v48 }
 0x6fb   :  { %6964 = vmatprep.subr.bf16.mxu0 %v7522_v7 }
 0x7b5   :  { %v973_v51 = vpop.f32.mrf.mxu0 }
 0x7b6   :  { %v986_v53 = vrot.slane %v973_v51, %v7636_v55 }
 0x7b7   :  { %v6938_v54 = vpop.f32.mrf.mxu0 }
 0x7b8   :  { %v987_v57 = vrot.slane %v986_v53, 1  ;;  %v990_v58 = vadd.f32 %v986_v53, %v7761_v52 }
 0x7b9   :  { %v976_v59 = vpop.f32.mrf.mxu0 }
 0x7ba   :  { %v991_v60 = vadd.f32 %v987_v57, %v7765_v56  ;;  %7375 = vtanh.f32 %v990_v58  ;;  %v6680_v62 = vmul.f32 -1.442695, %v990_v58 }
 0x7bb   :  { %v6939_v61 = vpop.f32.mrf.mxu0 }
 0x7bc   :  { %7377 = vtanh.f32 %v991_v60  ;;  %v6681_v63 = vmul.f32 -1.442695, %v991_v60 }
 0x7bd   :  { %7379 = vpow2.f32 %v6680_v62 }
 0x7be   :  { %7381 = vpow2.f32 %v6681_v63 }
 0x7c7   :  { %v7376_v10 = vpop.eup %7375 }
 0x7c8   :  { %1018 = vrot.lane.b32.xlu0 %v7376_v10, %s7530_s27 }
 0x7c9   :  { %v7378_v9 = vpop.eup %7377 }
 0x7ca   :  { %1020 = vrot.lane.b32.xlu1 %v7378_v9, %s7530_s27  ;;  %v7380_v0 = vpop.eup %7379 }
 0x7cb   :  { %v7382_v1 = vpop.eup %7381  ;;  %v998_v2 = vadd.f32 1.0, %v7380_v0 }
 0x7cc   :  { %v999_v3 = vadd.f32 1.0, %v7382_v1 }
 0x7cd   :  { %7383 = vrcp.f32 %v998_v2 }
 0x7ce   :  { %7385 = vrcp.f32 %v999_v3 }
 0x7da   :  { %v7384_v4 = vpop.eup %7383 }
 0x7db   :  { %v7386_v8 = vpop.eup %7385  ;;  %v1014_v16 = vmul.f32 %v7384_v4, %v6682_v15 }
 0x7dc   :  { %v1015_v21 = vmul.f32 %v7386_v8, %v6683_v17 }
 0x83a   :  { %v1019_v5 = vpop.permute.xlu0 %1018 }
 0x83b   :  { %v1024_v6 = vmul.f32 %v7384_v4, %v1019_v5 }
 0x83c   :  { %v1021_v11 = vpop.permute.xlu1 %1020 }
 0x83d   :  { %1028 = vrot.lane.b32.xlu0 %v1024_v6, %s7531_s28  ;;  %v1025_v14 = vmul.f32 %v7386_v8, %v1021_v11 }
 0x83f   :  { %1030 = vrot.lane.b32.xlu1 %v1025_v14, %s7531_s28 }
 0x8af   :  { %v1029_v18 = vpop.permute.xlu0 %1028 }
 0x8b0   :  { %v7775_v20 = vadd.f32 %v1029_v18, %v1014_v16 }
 0x8b1   :  { %v1031_v22 = vpop.permute.xlu1 %1030 }
 0x8b2   :  { %7387 = vtanh.f32 %v7775_v20  ;;  %v1035_v23 = vadd.f32 %v1031_v22, %v1015_v21  ;;  %v1149_v2 = vrot.slane %v7775_v20, 7 }
 0x8b4   :  { %7389 = vtanh.f32 %v1035_v23  ;;  %v1150_v0 = vrot.slane %v1035_v23, 7 }
 0x8bf   :  { %v7388_v24 = vpop.eup %7387 }
 0x8c0   :  { %1040 = vrot.lane.b32.xlu0 %v7388_v24, %s7530_s27 }
 0x8c1   :  { %v7390_v25 = vpop.eup %7389 }
 0x8c2   :  { %1042 = vrot.lane.b32.xlu1 %v7390_v25, %s7530_s27 }
 0x932   :  { %v1041_v27 = vpop.permute.xlu0 %1040 }
 0x933   :  { %v7780_v28 = vmul.f32 %v7384_v4, %v1041_v27 }
 0x934   :  { %v1043_v29 = vpop.permute.xlu1 %1042 }
 0x935   :  { %v7782_v26 = vmul.f32 %v7386_v8, %v1043_v29  ;;  %v1066_v30 = vpack.c.bf16 %v7780_v28, %v7780_v28 }
 0x937   :  { %v1067_v31 = vpack.c.bf16 %v7782_v26, %v7782_v26  ;;  %v1070_v34 = vunpack.c.l.b16 %v1066_v30 }
 0x939   :  { %v1071_v32 = vunpack.c.l.b16 %v1067_v31 }
 0x93b   :  { %v1072_v36 = vrot.slane %v1071_v32, 7 }
 0x93d   :  { %v1073_v37 = vsel %vm791_vm6, %v1072_v36, %v1070_v34  ;;  %v7826_v34 = vcombine.high %v7765_v56, %v7765_v56 }
 0x93e   :  { %v1074_v38 = vpack.c.b16 %v1073_v37, %v1073_v37 }
 0x940   :  { %1075 = vrot.lane.b32.xlu1 %v1074_v38, %s7531_s28 }
 0x9b2   :  { %v1076_v39 = vpop.permute.xlu1 %1075 }
 0x9b3   :  { %6945 = vmatmul.mubr.msk.bf16.vlgmr.msra.gmra.mxu1 %vm660_vm7, %v1076_v39 }
 0x9b4   :  { %6957 = vmatpush3.bf16.msra.mxu1 %v7616_v47  ;;  %6960 = vmatprep.mubr.msk.bf16.mxu1 %vm7523_vm1, %v7522_v7 }
 0x9b5   :  { %6958 = vmatprep.subr.bf16.mxu1 %v7522_v7 }
 0x9b8   :  { %6959 = vmatpush3.bf16.msra.mxu1 %v7619_v48 }
 0x9b9   :  { %6972 = vmatprep.subr.bf16.mxu1 %v7522_v7 }
 0xa73   :  { %v1114_v40 = vpop.f32.mrf.mxu1 }
 0xa74   :  { %v1127_v41 = vrot.slane %v1114_v40, %v7636_v55 }
 0xa75   :  { %v6946_v43 = vpop.f32.mrf.mxu1 }
 0xa76   :  { %v1128_v45 = vrot.slane %v1127_v41, 7  ;;  %v1132_v46 = vadd.f32 %v1127_v41, %v7765_v56 }
 0xa77   :  { %v1117_v49 = vpop.f32.mrf.mxu1 }
 0xa78   :  { %v1131_v50 = vadd.f32 %v1128_v45, %v7761_v52  ;;  %7391 = vtanh.f32 %v1132_v46  ;;  %v6686_v48 = vmul.f32 -1.442695, %v1132_v46 }
 0xa79   :  { %v6947_v47 = vpop.f32.mrf.mxu1 }
 0xa7a   :  { %7393 = vtanh.f32 %v1131_v50  ;;  %v6685_v54 = vmul.f32 -1.442695, %v1131_v50 }
 0xa7b   :  { %7395 = vpow2.f32 %v6686_v48 }
 0xa7c   :  { %7397 = vpow2.f32 %v6685_v54 }
 0xa85   :  { %v7392_v51 = vpop.eup %7391 }
 0xa86   :  { %1159 = vrot.lane.b32.xlu1 %v7392_v51, %s7530_s27 }
 0xa87   :  { %v7394_v53 = vpop.eup %7393 }
 0xa88   :  { %1157 = vrot.lane.b32.xlu0 %v7394_v53, %s7530_s27  ;;  %v7396_v57 = vpop.eup %7395 }
 0xa89   :  { %v7398_v58 = vpop.eup %7397  ;;  %v1140_v59 = vadd.f32 1.0, %v7396_v57 }
 0xa8a   :  { %v1139_v60 = vadd.f32 1.0, %v7398_v58 }
 0xa8b   :  { %7399 = vrcp.f32 %v1140_v59 }
 0xa8c   :  { %7401 = vrcp.f32 %v1139_v60 }
 0xa98   :  { %v7400_v52 = vpop.eup %7399 }
 0xa99   :  { %v7402_v9 = vpop.eup %7401  ;;  %v1154_v1 = vmul.f32 %v7400_v52, %v1150_v0 }
 0xa9a   :  { %v1153_v5 = vmul.f32 %v7402_v9, %v1149_v2 }
 0xaf8   :  { %v1160_v61 = vpop.permute.xlu1 %1159 }
 0xaf9   :  { %v1164_v10 = vmul.f32 %v7400_v52, %v1160_v61 }
 0xafa   :  { %v1158_v62 = vpop.permute.xlu0 %1157 }
 0xafb   :  { %1169 = vrot.lane.b32.xlu1 %v1164_v10, %s7531_s28  ;;  %v1163_v63 = vmul.f32 %v7402_v9, %v1158_v62 }
 0xafd   :  { %1167 = vrot.lane.b32.xlu0 %v1163_v63, %s7531_s28 }
 0xb6d   :  { %v1170_v3 = vpop.permute.xlu1 %1169 }
 0xb6e   :  { %v7805_v4 = vadd.f32 %v1170_v3, %v1154_v1 }
 0xb6f   :  { %v1168_v6 = vpop.permute.xlu0 %1167 }
 0xb70   :  { %7403 = vtanh.f32 %v7805_v4  ;;  %v1173_v8 = vadd.f32 %v1168_v6, %v1153_v5 }
 0xb72   :  { %7405 = vtanh.f32 %v1173_v8  ;;  %v6690_v59 = vrot.slane %v1173_v8, 9 }
 0xb7d   :  { %v7404_v11 = vpop.eup %7403 }
 0xb7e   :  { %1181 = vrot.lane.b32.xlu1 %v7404_v11, %s7530_s27 }
 0xb7f   :  { %v7406_v14 = vpop.eup %7405 }
 0xb80   :  { %1179 = vrot.lane.b32.xlu0 %v7406_v14, %s7530_s27 }
 0xbf0   :  { %v1182_v15 = vpop.permute.xlu1 %1181 }
 0xbf1   :  { %v7810_v16 = vmul.f32 %v7400_v52, %v1182_v15  ;;  %v6691_v52 = vrot.slane %v7805_v4, 9 }
 0xbf2   :  { %v1180_v17 = vpop.permute.xlu0 %1179 }
 0xbf3   :  { %v7812_v18 = vmul.f32 %v7402_v9, %v1180_v17  ;;  %v1206_v20 = vpack.c.bf16 %v7810_v16, %v7810_v16 }
 0xbf5   :  { %v1205_v21 = vpack.c.bf16 %v7812_v18, %v7812_v18  ;;  %v1210_v23 = vunpack.c.l.b16 %v1206_v20 }
 0xbf7   :  { %v1209_v22 = vunpack.c.l.b16 %v1205_v21 }
 0xbf9   :  { %v1211_v24 = vrot.slane %v1209_v22, 1 }
 0xbfb   :  { %v1212_v25 = vsel %vm791_vm6, %v1210_v23, %v1211_v24 }
 0xbfc   :  { %v1213_v27 = vpack.c.b16 %v1212_v25, %v1212_v25 }
 0xbfe   :  { %1214 = vrot.lane.b32.xlu0 %v1213_v27, %s7531_s28 }
 0xc70   :  { %v1215_v29 = vpop.permute.xlu0 %1214 }
 0xc71   :  { %6953 = vmatmul.mubr.msk.bf16.vlgmr.msra.gmra.mxu0 %vm660_vm7, %v1215_v29 }
 0xc72   :  { %6968 = vmatprep.mubr.msk.bf16.mxu0 %vm7523_vm1, %v7522_v7 }
 0xd31   :  { %v1253_v30 = vpop.f32.mrf.mxu0 }
 0xd32   :  { %v1266_v31 = vrot.slane %v1253_v30, %v7636_v55 }
 0xd33   :  { %v6954_v32 = vpop.f32.mrf.mxu0 }
 0xd34   :  { %v1267_v36 = vrot.slane %v1266_v31, 1  ;;  %v1270_v37 = vadd.f32 %v1266_v31, %v7688_v12 }
 0xd35   :  { %v1256_v38 = vpop.f32.mrf.mxu0 }
 0xd36   :  { %v1271_v39 = vadd.f32 %v1267_v36, %v7826_v34  ;;  %7407 = vtanh.f32 %v1270_v37  ;;  %v6688_v45 = vmul.f32 -1.442695, %v1270_v37 }
 0xd37   :  { %v6955_v40 = vpop.f32.mrf.mxu0 }
 0xd38   :  { %7409 = vtanh.f32 %v1271_v39  ;;  %v6689_v46 = vmul.f32 -1.442695, %v1271_v39 }
 0xd39   :  { %7411 = vpow2.f32 %v6688_v45 }
 0xd3a   :  { %7413 = vpow2.f32 %v6689_v46 }
 0xd43   :  { %v7408_v41 = vpop.eup %7407 }
 0xd44   :  { %1298 = vrot.lane.b32.xlu0 %v7408_v41, %s7530_s27 }
 0xd45   :  { %v7410_v43 = vpop.eup %7409 }
 0xd46   :  { %1300 = vrot.lane.b32.xlu1 %v7410_v43, %s7530_s27  ;;  %v7412_v56 = vpop.eup %7411 }
 0xd47   :  { %v7414_v49 = vpop.eup %7413  ;;  %v1278_v50 = vadd.f32 1.0, %v7412_v56 }
 0xd48   :  { %v1279_v47 = vadd.f32 1.0, %v7414_v49 }
 0xd49   :  { %7415 = vrcp.f32 %v1278_v50 }
 0xd4a   :  { %7417 = vrcp.f32 %v1279_v47 }
 0xd56   :  { %v7416_v51 = vpop.eup %7415 }
 0xd57   :  { %v7418_v54 = vpop.eup %7417  ;;  %v1294_v60 = vmul.f32 %v7416_v51, %v6690_v59 }
 0xd58   :  { %v1295_v9 = vmul.f32 %v7418_v54, %v6691_v52  ;;  %v769_v52 = vsub.s32 0, %v7589_v13 }
 0xdb6   :  { %v1299_v53 = vpop.permute.xlu0 %1298 }
 0xdb7   :  { %v1304_v48 = vmul.f32 %v7416_v51, %v1299_v53 }
 0xdb8   :  { %v1301_v57 = vpop.permute.xlu1 %1300 }
 0xdb9   :  { %1308 = vrot.lane.b32.xlu0 %v1304_v48, %s7531_s28  ;;  %v1305_v58 = vmul.f32 %v7418_v54, %v1301_v57 }
 0xdbb   :  { %1310 = vrot.lane.b32.xlu1 %v1305_v58, %s7531_s28 }
 0xe2b   :  { %v1309_v61 = vpop.permute.xlu0 %1308 }
 0xe2c   :  { %v7835_v10 = vadd.f32 %v1309_v61, %v1294_v60  ;;  %v910_v60 = vsub.s32 1, %v7589_v13 }
 0xe2d   :  { %v1311_v62 = vpop.permute.xlu1 %1310 }
 0xe2e   :  { %7419 = vtanh.f32 %v7835_v10  ;;  %v1315_v63 = vadd.f32 %v1311_v62, %v1295_v9  ;;  %v911_v9 = vrot.slane %v7740_v35, %v910_v60  ;;  %v1192_v62 = vrot.slane %v7812_v18, %v910_v60 }
 0xe2f   :  { %v1196_v35 = vrot.slane %v7810_v16, %v910_v60 }
 0xe30   :  { %7421 = vtanh.f32 %v1315_v63  ;;  %v1430_v50 = vrot.slane %v1315_v63, 7  ;;  %v1053_v63 = vrot.slane %v7780_v28, %v769_v52  ;;  %v1057_v28 = vrot.slane %v7782_v26, %v769_v52 }
 0xe3b   :  { %v7420_v0 = vpop.eup %7419 }
 0xe3c   :  { %1320 = vrot.lane.b32.xlu0 %v7420_v0, %s7530_s27  ;;  %v915_v0 = vrot.slane %v7738_v33, %v910_v60 }
 0xe3d   :  { %v7422_v1 = vpop.eup %7421 }
 0xe3e   :  { %1322 = vrot.lane.b32.xlu1 %v7422_v1, %s7530_s27 }
 0xeae   :  { %v1321_v2 = vpop.permute.xlu0 %1320 }
 0xeaf   :  { %v7840_v3 = vmul.f32 %v7416_v51, %v1321_v2  ;;  %v1429_v51 = vrot.slane %v7835_v10, 7  ;;  %v770_v10 = vrot.slane %v7705_v42, %v769_v52  ;;  %v774_v42 = vrot.slane %v7707_v44, %v769_v52 }
 0xeb0   :  { %v1323_v5 = vpop.permute.xlu1 %1322 }
 0xeb1   :  { %v7842_v4 = vmul.f32 %v7418_v54, %v1323_v5  ;;  %v1346_v6 = vpack.c.bf16 %v7840_v3, %v7840_v3  ;;  %v1333_v13 = vrot.slane %v7840_v3, %v769_v52  ;;  %v7325_v3 = vld [vmem:[%s6640_s2 + $0x8] sm:$0xff]  }
 0xeb2   :  { %6965 = vmatpush3.bf16.msra.mxu0 %v7325_v3 }
 0xeb3   :  { %v1347_v8 = vpack.c.bf16 %v7842_v4, %v7842_v4  ;;  %v1350_v14 = vunpack.c.l.b16 %v1346_v6  ;;  %v1337_v33 = vrot.slane %v7842_v4, %v769_v52  ;;  %v7326_v6 = vld [vmem:[%s6640_s2] sm:$0xff]   ;;  %6966 = vmatprep.subr.bf16.mxu0 %v7522_v7  ;;  %s7551_s2 = smov 16  }
 0xeb4   :  { %s6649_s5 = sld [smem:[%s8735_s0 + %s7551_s2]]  }
 0xeb5   :  { %v1351_v11 = vunpack.c.l.b16 %v1347_v8 }
 0xeb6   :  { %6967 = vmatpush3.bf16.msra.mxu0 %v7326_v6 }
 0xeb7   :  { %v1352_v15 = vrot.slane %v1351_v11, 7  ;;  %6978 = vmatprep.subr.bf16.mxu0 %v7522_v7 }
 0xeb9   :  { %v1353_v17 = vsel %vm791_vm6, %v1352_v15, %v1350_v14 }
 0xeba   :  { %v1354_v20 = vpack.c.b16 %v1353_v17, %v1353_v17 }
 0xebc   :  { %1355 = vrot.lane.b32.xlu1 %v1354_v20, %s7531_s28 }
 0xf2e   :  { %v1356_v21 = vpop.permute.xlu1 %1355 }
 0xf2f   :  { %6961 = vmatmul.mubr.msk.bf16.vlgmr.msra.gmra.mxu1 %vm660_vm7, %v1356_v21 }
 0xf30   :  { %6974 = vmatprep.mubr.msk.bf16.mxu1 %vm7523_vm1, %v7522_v7 }
 0xfef   :  { %v1394_v22 = vpop.f32.mrf.mxu1 }
 0xff0   :  { %v1407_v23 = vrot.slane %v1394_v22, %v7636_v55 }
 0xff1   :  { %v6962_v24 = vpop.f32.mrf.mxu1 }
 0xff2   :  { %v1408_v25 = vrot.slane %v1407_v23, 7  ;;  %v1412_v27 = vadd.f32 %v1407_v23, %v7826_v34 }
 0xff3   :  { %v1397_v29 = vpop.f32.mrf.mxu1 }
 0xff4   :  { %v1411_v30 = vadd.f32 %v1408_v25, %v7688_v12  ;;  %7423 = vtanh.f32 %v1412_v27  ;;  %v6694_v37 = vmul.f32 -1.442695, %v1412_v27  ;;  %v1487_v25 = vld [vmem:[%s6634_s7] sm:$0x3f]  ;;  %s7552_s7 = smov 19  }
 0xff5   :  { %v6963_v31 = vpop.f32.mrf.mxu1 }
 0xff6   :  { %7425 = vtanh.f32 %v1411_v30  ;;  %v6693_v38 = vmul.f32 -1.442695, %v1411_v30 }
 0xff7   :  { %7427 = vpow2.f32 %v6694_v37 }
 0xff8   :  { %7429 = vpow2.f32 %v6693_v38 }
0x1001   :  { %v7424_v32 = vpop.eup %7423 }
0x1002   :  { %1439 = vrot.lane.b32.xlu1 %v7424_v32, %s7530_s27 }
0x1003   :  { %v7426_v36 = vpop.eup %7425 }
0x1004   :  { %1437 = vrot.lane.b32.xlu0 %v7426_v36, %s7530_s27  ;;  %v7428_v39 = vpop.eup %7427 }
0x1005   :  { %v7430_v40 = vpop.eup %7429  ;;  %v1420_v41 = vadd.f32 1.0, %v7428_v39 }
0x1006   :  { %v1419_v34 = vadd.f32 1.0, %v7430_v40 }
0x1007   :  { %7431 = vrcp.f32 %v1420_v41 }
0x1008   :  { %7433 = vrcp.f32 %v1419_v34 }
0x1014   :  { %v7432_v12 = vpop.eup %7431 }
0x1015   :  { %v7434_v46 = vpop.eup %7433  ;;  %v1434_v47 = vmul.f32 %v7432_v12, %v1430_v50 }
0x1016   :  { %v1433_v54 = vmul.f32 %v7434_v46, %v1429_v51 }
0x1074   :  { %v1440_v43 = vpop.permute.xlu1 %1439 }
0x1075   :  { %v1444_v45 = vmul.f32 %v7432_v12, %v1440_v43 }
0x1076   :  { %v1438_v56 = vpop.permute.xlu0 %1437 }
0x1077   :  { %1449 = vrot.lane.b32.xlu1 %v1444_v45, %s7531_s28  ;;  %v1443_v49 = vmul.f32 %v7434_v46, %v1438_v56 }
0x1079   :  { %1447 = vrot.lane.b32.xlu0 %v1443_v49, %s7531_s28 }
0x10e9   :  { %v1450_v53 = vpop.permute.xlu1 %1449 }
0x10ea   :  { %v1454_v48 = vadd.f32 %v1450_v53, %v1434_v47 }
0x10eb   :  { %v1448_v57 = vpop.permute.xlu0 %1447 }
0x10ec   :  { %7435 = vtanh.f32 %v1454_v48  ;;  %v1453_v58 = vadd.f32 %v1448_v57, %v1433_v54 }
0x10ee   :  { %7437 = vtanh.f32 %v1453_v58 }
0x10f9   :  { %v7436_v59 = vpop.eup %7435 }
0x10fa   :  { %1461 = vrot.lane.b32.xlu1 %v7436_v59, %s7530_s27  ;;  %v6695_v59 = vld [vmem:[%s6641_s10] ss:$0 sm:$0xff]  ;;  %s6652_s10 = sld [smem:[%s8735_s0 + %s7552_s7]]  }
0x10fb   :  { %v7438_v61 = vpop.eup %7437  ;;  %v1561_v52 = vrot.slane %v6695_v59, %v7636_v55 }
0x10fc   :  { %1459 = vrot.lane.b32.xlu0 %v7438_v61, %s7530_s27 }
0x10fe   :  { %916 = vrot.lane.b32.xlu1 %v911_v9, %s7531_s28  ;;  %v1569_v9 = vcombine.high %v1561_v52, %v1561_v52 }
0x1100   :  { %775 = vrot.lane.b32.xlu0 %v770_v10, %s7531_s28  ;;  %v1622_v10 = vcombine.low %v1561_v52, %v1569_v9 }
0x1102   :  { %1197 = vrot.lane.b32.xlu1 %v1192_v62, %s7531_s28 }
0x1104   :  { %1058 = vrot.lane.b32.xlu0 %v1053_v63, %s7531_s28  ;;  %v1630_v63 = vrot.slane %v1622_v10, %v7636_v55 }
0x1106   :  { %918 = vrot.lane.b32.xlu1 %v915_v0, %s7531_s28 }
0x1108   :  { %1338 = vrot.lane.b32.xlu0 %v1333_v13, %s7531_s28 }
0x110a   :  { %1199 = vrot.lane.b32.xlu1 %v1196_v35, %s7531_s28 }
0x110c   :  { %777 = vrot.lane.b32.xlu0 %v774_v42, %s7531_s28 }
0x1110   :  { %1060 = vrot.lane.b32.xlu0 %v1057_v28, %s7531_s28 }
0x1114   :  { %1340 = vrot.lane.b32.xlu0 %v1337_v33, %s7531_s28 }
0x116c   :  { %v1462_v18 = vpop.permute.xlu1 %1461 }
0x116d   :  { %v1466_v26 = vmul.f32 %v7432_v12, %v1462_v18 }
0x116e   :  { %v1460_v16 = vpop.permute.xlu0 %1459 }
0x116f   :  { %v1465_v1 = vmul.f32 %v7434_v46, %v1460_v16  ;;  %v1476_v8 = vrot.slane %v1466_v26, %v910_v60 }
0x1170   :  { %v917_v44 = vpop.permute.xlu1 %916 }
0x1171   :  { %923 = vst.msk [vmem:[#allocation2] sm:$0x2] %vm922_vm8, %v917_v44  ;;  %v1472_v2 = vrot.slane %v1465_v1, %v910_v60  ;;  %v1554_v60 = vcombine.high %v6695_v59, %v6695_v59 }
0x1172   :  { %v776_v5 = vpop.permute.xlu0 %775 }
0x1173   :  { %782 = vst.msk [vmem:[#allocation2] sm:$0x1] %vm781_vm9, %v776_v5  ;;  %1477 = vrot.lane.b32.xlu1 %v1472_v2, %s7531_s28  ;;  %v1568_v61 = vrot.slane %v1554_v60, %v7636_v55 }
0x1174   :  { %v1198_v4 = vpop.permute.xlu1 %1197 }
0x1175   :  { %1203 = vst.msk [vmem:[#allocation2 + $0x2] sm:$0x2] %vm922_vm8, %v1198_v4  ;;  %v1623_v62 = vcombine.low %v1568_v61, %v1561_v52  ;;  %v1639_v35 = vcombine.low %v1569_v9, %v1568_v61 }
0x1176   :  { %v1059_v11 = vpop.permute.xlu0 %1058 }
0x1177   :  { %1064 = vst.msk [vmem:[#allocation2 + $0x2] sm:$0x1] %vm781_vm9, %v1059_v11  ;;  %1479 = vrot.lane.b32.xlu1 %v1476_v8, %s7531_s28  ;;  %v1637_v0 = vrot.slane %v1623_v62, %v7636_v55  ;;  %v1646_v33 = vrot.slane %v1639_v35, %v7636_v55 }
0x1178   :  { %v919_v14 = vpop.permute.xlu1 %918 }
0x1179   :  { %924 = vst.msk [vmem:[#allocation2 + $0x8] sm:$0x2] %vm922_vm8, %v919_v14  ;;  %v1638_v13 = vcombine.low %v1630_v63, %v1637_v0 }
0x117a   :  { %v1339_v15 = vpop.permute.xlu0 %1338 }
0x117b   :  { %1344 = vst.msk [vmem:[#allocation2 + $0x4] sm:$0x1] %vm781_vm9, %v1339_v15 }
0x117c   :  { %v1200_v17 = vpop.permute.xlu1 %1199 }
0x117d   :  { %1204 = vst.msk [vmem:[#allocation2 + $0xa] sm:$0x2] %vm922_vm8, %v1200_v17 }
0x117e   :  { %v778_v20 = vpop.permute.xlu0 %777 }
0x117f   :  { %783 = vst.msk [vmem:[#allocation2 + $0x8] sm:$0x1] %vm781_vm9, %v778_v20 }
0x1182   :  { %v1061_v21 = vpop.permute.xlu0 %1060 }
0x1183   :  { %1065 = vst.msk [vmem:[#allocation2 + $0xa] sm:$0x1] %vm781_vm9, %v1061_v21 }
0x1186   :  { %v1341_v22 = vpop.permute.xlu0 %1340 }
0x1187   :  { %1345 = vst.msk [vmem:[#allocation2 + $0xc] sm:$0x1] %vm781_vm9, %v1341_v22 }
0x11e5   :  { %v1478_v23 = vpop.permute.xlu1 %1477 }
0x11e6   :  { %1483 = vst.msk [vmem:[#allocation2 + $0x4] sm:$0x2] %vm922_vm8, %v1478_v23 }
0x11e9   :  { %v1480_v24 = vpop.permute.xlu1 %1479 }
0x11ea   :  { %1484 = vst.msk [vmem:[#allocation2 + $0xc] sm:$0x2] %vm922_vm8, %v1480_v24 }
0x11ed   :  { %v1485_v27 = vld [vmem:[#allocation2] sm:$0x3f] }
0x11ee   :  { %v7907_v29 = vadd.f32 %v1487_v25, %v1485_v27 }
0x11f0   :  { %v1498_v30 = vpack.c.bf16 %v7907_v29, %v7907_v29 }
0x11f1   :  { %v1486_v31 = vld [vmem:[#allocation2 + $0x8] sm:$0x3f] }
0x11f2   :  { %v7911_v32 = vadd.f32 %v1487_v25, %v1486_v31  ;;  %v1514_v36 = vrot.slane %v1498_v30, %v7592_v19 }
0x11f4   :  { %v1499_v37 = vpack.c.bf16 %v7911_v32, %v7911_v32  ;;  %v1515_v38 = vcombine.high %v1514_v36, %v1514_v36  ;;  %v1522_v39 = vrot.slane %v1514_v36, %v7592_v19 }
0x11f6   :  { %v1529_v40 = vrot.slane %v1515_v38, %v7592_v19  ;;  %v1537_v41 = vrot.slane %v1499_v37, %v7592_v19  ;;  %v1530_v34 = vcombine.high %v1522_v39, %v1522_v39 }
0x11f8   :  { %v1538_v12 = vcombine.high %v1537_v41, %v1537_v41  ;;  %v1545_v43 = vrot.slane %v1537_v41, %v7592_v19  ;;  %v1570_v45 = vcombine.low %v1522_v39, %v1529_v40 }
0x11fa   :  { %v1552_v46 = vrot.slane %v1538_v12, %v7592_v19  ;;  %v1553_v56 = vcombine.high %v1545_v43, %v1545_v43  ;;  %v1571_v49 = vcombine.low %v1530_v34, %v1545_v43  ;;  %v1579_v47 = vrot.slane %v1570_v45, %v7592_v19 }
0x11fc   :  { %v1572_v50 = vcombine.low %v1552_v46, %v1553_v56  ;;  %v1586_v51 = vrot.slane %v1571_v49, %v7592_v19 }
0x11fe   :  { %v1593_v53 = vrot.slane %v1572_v50, %v7592_v19  ;;  %v1594_v48 = vcombine.low %v1579_v47, %v1586_v51 }
0x1200   :  { %v1601_v54 = vrot.slane %v1594_v48, %v7592_v19  ;;  %v1608_v57 = vrot.slane %v1593_v53, %v7592_v19 }
0x1202   :  { %v1609_v58 = vcombine.low %v1601_v54, %v1608_v57 }
0x1204   :  { %6969 = vmatmul.mubr.msk.bf16.vlgmr.msra.gmra.mxu0 %vm660_vm7, %v1609_v58 }
0x1205   :  { %6980 = vmatprep.mubr.msk.bf16.mxu0 %vm7523_vm1, %v7522_v7 }
0x12c4   :  { %v1686_v42 = vpop.f32.mrf.mxu0 }
0x12c5   :  { %v1687_v28 = vadd.f32 %v1686_v42, %v1638_v13 }
0x12c6   :  { %v6970_v18 = vpop.f32.mrf.mxu0 }
0x12c7   :  { %v1695_v16 = vcombine.high %v1687_v28, %v1687_v28  ;;  %v1702_v1 = vrot.slane %v1687_v28, %v7636_v55 }
0x12c8   :  { %v1689_v44 = vpop.f32.mrf.mxu0 }
0x12c9   :  { %v1709_v26 = vrot.slane %v1695_v16, %v7636_v55  ;;  %v1710_v2 = vcombine.high %v1702_v1, %v1702_v1  ;;  %v1690_v3 = vadd.f32 %v1689_v44, %v1646_v33 }
0x12ca   :  { %v6971_v5 = vpop.f32.mrf.mxu0 }
0x12cb   :  { %v1720_v4 = vcombine.low %v1702_v1, %v1710_v2  ;;  %v1711_v6 = vcombine.high %v1709_v26, %v1709_v26  ;;  %v1718_v8 = vrot.slane %v1690_v3, %v7636_v55  ;;  %v1734_v14 = vrot.slane %v1709_v26, %v7636_v55 }
0x12cd   :  { %v1727_v11 = vrot.slane %v1720_v4, %v7636_v55  ;;  %v1719_v15 = vcombine.high %v1718_v8, %v1718_v8  ;;  %v1736_v17 = vcombine.low %v1711_v6, %v1718_v8 }
0x12cf   :  { %v1735_v20 = vcombine.low %v1727_v11, %v1734_v14  ;;  %v1743_v21 = vrot.slane %v1736_v17, %v7636_v55  ;;  %v1750_v22 = vrot.slane %v1719_v15, %v7636_v55 }
0x12d1   :  { %v7945_v23 = vpack.c.bf16 %v1735_v20, %v1735_v20  ;;  %v1751_v24 = vcombine.low %v1743_v21, %v1750_v22 }
0x12d3   :  { %v7947_v25 = vpack.c.bf16 %v1751_v24, %v1751_v24  ;;  %1757 = vrot.lane.b32.xlu0 %v7945_v23, %s7534_s6 }
0x12d5   :  { %1806 = vrot.lane.b32.xlu1 %v7947_v25, %s7534_s6 }
0x1345   :  { %v1758_v27 = vpop.permute.xlu0 %1757 }
0x1346   :  { %v1763_v30 = vsel %vm164_vm3, %v1758_v27, 0 }
0x1347   :  { %6973 = vmatpush3.bf16.xpose.msra.mxu1 %v1763_v30  ;;  %v1807_v31 = vpop.permute.xlu1 %1806 }
0x1348   :  { %v1812_v36 = vsel %vm164_vm3, %v1807_v31, 0  ;;  %6984 = vmatprep.subr.bf16.mxu1 %v7522_v7 }
0x1349   :  { %6979 = vmatpush3.bf16.xpose.msra.mxu0 %v1812_v36 }
0x134a   :  { %6990 = vmatprep.subr.bf16.mxu0 %v7522_v7 }
0x134e   :  { %6975 = vmatmul.mubr.msk.bf16.vlgmr.msra.gmra.mxu1 %vm164_vm3, %v7945_v23 }
0x134f   :  { %6986 = vmatprep.mubr.msk.bf16.mxu1 %vm7523_vm1, %v7522_v7 }
0x1350   :  { %6981 = vmatmul.mubr.msk.bf16.vlgmr.msra.gmra.mxu0 %vm164_vm3, %v7947_v25 }
0x1351   :  { %6992 = vmatprep.mubr.msk.bf16.mxu0 %vm7523_vm1, %v7522_v7 }
0x140e   :  { %v1799_v37 = vpop.f32.mrf.mxu1 }
0x140f   :  { %v1854_v38 = vmul.f32 0.35355338, %v1799_v37 }
0x1410   :  { %v6976_v39 = vpop.f32.mrf.mxu1  ;;  %v1848_v40 = vpop.f32.mrf.mxu0 }
0x1411   :  { %v1855_v41 = vmul.f32 0.35355338, %v1848_v40  ;;  %v1857_v34 = vsel %vm1856_vm10, %v1854_v38, -inf }
0x1412   :  { %1858 = vmax.xlane.f32.xlu0 %v1857_v34  ;;  %v1802_v12 = vpop.f32.mrf.mxu1  ;;  %v6982_v43 = vpop.f32.mrf.mxu0 }
0x1413   :  { %v1860_v45 = vsel %vm1856_vm10, %v1855_v41, -inf }
0x1414   :  { %v6977_v46 = vpop.f32.mrf.mxu1  ;;  %1861 = vmax.xlane.f32.xlu1 %v1860_v45  ;;  %v1851_v56 = vpop.f32.mrf.mxu0 }
0x1416   :  { %v6983_v49 = vpop.f32.mrf.mxu0 }
0x1425   :  { %1881 = vrot.lane.b32.xlu1 %v7945_v23, %s7530_s27 }
0x1429   :  { %1983 = vrot.lane.b32.xlu1 %v7945_v23, %s7535_s11 }
0x142d   :  { %2033 = vrot.lane.b32.xlu1 %v7947_v25, %s7535_s11 }
0x1431   :  { %2031 = vrot.lane.b32.xlu1 %v7947_v25, %s7536_s12 }
0x149b   :  { %v1859_v50 = vpop.xlane.xlu0 %1858 }
0x149c   :  { %v1863_v47 = vsub.f32 %v1854_v38, %v1859_v50 }
0x149d   :  { %v1862_v51 = vpop.xlane.xlu1 %1861 }
0x149e   :  { %v1865_v53 = vmul.f32 1.442695, %v1863_v47  ;;  %v1864_v48 = vsub.f32 %v1855_v41, %v1862_v51 }
0x14a0   :  { %7439 = vpow2.f32 %v1865_v53  ;;  %v1867_v54 = vmul.f32 1.442695, %v1864_v48 }
0x14a1   :  { %v1882_v57 = vpop.permute.xlu1 %1881 }
0x14a2   :  { %7441 = vpow2.f32 %v1867_v54  ;;  %v1889_v58 = vsel %vm1887_vm11, %v1882_v57, 0 }
0x14a3   :  { %6985 = vmatpush3.bf16.msra.mxu1 %v1889_v58 }
0x14a4   :  { %6996 = vmatprep.subr.bf16.mxu1 %v7522_v7 }
0x14a5   :  { %v1984_v13 = vpop.permute.xlu1 %1983 }
0x14a6   :  { %v1989_v33 = vsel %vm164_vm3, %v1984_v13, 0 }
0x14a9   :  { %v2034_v16 = vpop.permute.xlu1 %2033 }
0x14aa   :  { %v2039_v44 = vsel %vm164_vm3, %v2034_v16, 0 }
0x14ad   :  { %v7440_v59 = vpop.eup %7439  ;;  %v2032_v2 = vpop.permute.xlu1 %2031 }
0x14ae   :  { %v1869_v60 = vsel %vm1856_vm10, %v7440_v59, 0.0 }
0x14af   :  { %v7442_v52 = vpop.eup %7441  ;;  %1870 = vadd.xlane.f32.xlu0 %v1869_v60 }
0x14b0   :  { %v1872_v61 = vsel %vm1856_vm10, %v7442_v52, 0.0 }
0x14b3   :  { %1873 = vadd.xlane.f32.xlu0 %v1872_v61 }
0x14c9   :  { %1931 = vrot.lane.b32.xlu0 %v7947_v25, %s7530_s27 }
0x14cd   :  { %1981 = vrot.lane.b32.xlu0 %v7945_v23, %s7536_s12 }
0x1538   :  { %v1871_v9 = vpop.xlane.xlu0 %1870 }
0x1539   :  { %7443 = vrcp.f32 %v1871_v9 }
0x153c   :  { %v1874_v10 = vpop.xlane.xlu0 %1873 }
0x153d   :  { %7445 = vrcp.f32 %v1874_v10 }
0x1540   :  { %v1932_v62 = vpop.permute.xlu0 %1931 }
0x1541   :  { %v1937_v63 = vsel %vm1887_vm11, %v1932_v62, 0 }
0x1542   :  { %6991 = vmatpush3.bf16.msra.mxu0 %v1937_v63 }
0x1543   :  { %7002 = vmatprep.subr.bf16.mxu0 %v7522_v7 }
0x1544   :  { %v1982_v26 = vpop.permute.xlu0 %1981 }
0x1546   :  { %v7444_v0 = vpop.eup %7443 }
0x1547   :  { %v1877_v35 = vmul.f32 %v7444_v0, %v7440_v59 }
0x1549   :  { %v1879_v42 = vpack.c.bf16 %v1877_v35, %v1877_v35 }
0x154a   :  { %v7446_v28 = vpop.eup %7445 }
0x154b   :  { %6987 = vmatmul.mubr.msk.bf16.vlgmr.msra.gmra.mxu1 %vm1883_vm12, %v1879_v42  ;;  %v1878_v18 = vmul.f32 %v7446_v28, %v7442_v52 }
0x154c   :  { %6997 = vmatpush3.bf16.xpose.msra.mxu1 %v1989_v33  ;;  %6998 = vmatprep.mubr.msk.bf16.mxu1 %vm7523_vm1, %v7522_v7 }
0x154d   :  { %v1880_v1 = vpack.c.bf16 %v1878_v18, %v1878_v18  ;;  %7008 = vmatprep.subr.bf16.mxu1 %v7522_v7 }
0x154f   :  { %6993 = vmatmul.mubr.msk.bf16.vlgmr.msra.gmra.mxu0 %vm1883_vm12, %v1880_v1 }
0x1550   :  { %7003 = vmatpush3.bf16.xpose.msra.mxu0 %v2039_v44  ;;  %7004 = vmatprep.mubr.msk.bf16.mxu0 %vm7523_vm1, %v7522_v7 }
0x1551   :  { %7014 = vmatprep.subr.bf16.mxu0 %v7522_v7 }
0x1553   :  { %6999 = vmatmul.mubr.msk.bf16.vlgmr.msra.gmra.mxu1 %vm164_vm3, %v1982_v26 }
0x1554   :  { %7010 = vmatprep.mubr.msk.bf16.mxu1 %vm7523_vm1, %v7522_v7 }
0x1557   :  { %7005 = vmatmul.mubr.msk.bf16.vlgmr.msra.gmra.mxu0 %vm164_vm3, %v2032_v2 }
0x1558   :  { %7016 = vmatprep.mubr.msk.bf16.mxu0 %vm7523_vm1, %v7522_v7 }
0x160b   :  { %v1925_v3 = vpop.f32.mrf.mxu1 }
0x160c   :  { %v1979_v5 = vpack.c.bf16 %v1925_v3, %v1925_v3 }
0x160d   :  { %v6988_v4 = vpop.f32.mrf.mxu1 }
0x160e   :  { %v2348_v6 = vrot.slane %v1979_v5, %v7592_v19 }
0x160f   :  { %v1928_v8 = vpop.f32.mrf.mxu1  ;;  %v1973_v11 = vpop.f32.mrf.mxu0 }
0x1610   :  { %v2349_v14 = vcombine.high %v2348_v6, %v2348_v6  ;;  %v2356_v15 = vrot.slane %v2348_v6, %v7592_v19  ;;  %v1980_v17 = vpack.c.bf16 %v1973_v11, %v1973_v11  ;;  %v1490_v11 = vld [vmem:[%s8034_s19] sm:$0xf] }
0x1611   :  { %v6989_v20 = vpop.f32.mrf.mxu1  ;;  %v6994_v21 = vpop.f32.mrf.mxu0 }
0x1612   :  { %v2363_v22 = vrot.slane %v2349_v14, %v7592_v19  ;;  %v2371_v24 = vrot.slane %v1980_v17, %v7592_v19  ;;  %v2364_v27 = vcombine.high %v2356_v15, %v2356_v15  ;;  %v2432_v17 = vsel %vm570_vm5, %v1490_v11, 0 }
0x1613   :  { %v1976_v30 = vpop.f32.mrf.mxu0  ;;  %v2025_v31 = vpop.f32.mrf.mxu1 }
0x1614   :  { %v2388_v36 = vcombine.low %v2356_v15, %v2363_v22  ;;  %v2372_v37 = vcombine.high %v2371_v24, %v2371_v24  ;;  %v2379_v38 = vrot.slane %v2371_v24, %v7592_v19  ;;  %v2081_v39 = vmul.f32 0.35355338, %v2025_v31 }
0x1615   :  { %v6995_v40 = vpop.f32.mrf.mxu0  ;;  %v7000_v41 = vpop.f32.mrf.mxu1 }
0x1616   :  { %v2386_v34 = vrot.slane %v2372_v37, %v7592_v19  ;;  %v2387_v12 = vcombine.high %v2379_v38, %v2379_v38  ;;  %v2389_v43 = vcombine.low %v2364_v27, %v2379_v38  ;;  %v2083_v45 = vsel %vm1856_vm10, %v2081_v39, -inf  ;;  %v1491_v27 = vld [vmem:[%s8034_s19 + $0x4] sm:$0xf] }
0x1617   :  { %v2028_v46 = vpop.f32.mrf.mxu1  ;;  %v2075_v56 = vpop.f32.mrf.mxu0  ;;  %v2397_v49 = vrot.slane %v2388_v36, %v7592_v19  ;;  %2084 = vmax.xlane.f32.xlu0 %v2083_v45  ;;  %v2297_v30 = vsel %vm570_vm5, %v1491_v27, 0 }
0x1618   :  { %v2390_v50 = vcombine.low %v2386_v34, %v2387_v12  ;;  %v2404_v47 = vrot.slane %v2389_v43, %v7592_v19  ;;  %v2082_v51 = vmul.f32 0.35355338, %v2075_v56 }
0x1619   :  { %v7001_v53 = vpop.f32.mrf.mxu1  ;;  %v7006_v48 = vpop.f32.mrf.mxu0 }
0x161a   :  { %v2411_v54 = vrot.slane %v2390_v50, %v7592_v19  ;;  %v2412_v57 = vcombine.low %v2397_v49, %v2404_v47  ;;  %v2086_v58 = vsel %vm1856_vm10, %v2082_v51, -inf }
0x161b   :  { %2087 = vmax.xlane.f32.xlu1 %v2086_v58  ;;  %v2078_v59 = vpop.f32.mrf.mxu0 }
0x161c   :  { %v2419_v60 = vrot.slane %v2412_v57, %v7592_v19  ;;  %v2426_v52 = vrot.slane %v2411_v54, %v7592_v19 }
0x161d   :  { %v7007_v61 = vpop.f32.mrf.mxu0 }
0x161e   :  { %v2427_v9 = vcombine.low %v2419_v60, %v2426_v52 }
0x162c   :  { %2107 = vrot.lane.b32.xlu1 %v7945_v23, %s7537_s13 }
0x1630   :  { %2510 = vrot.lane.b32.xlu1 %v7945_v23, %s7538_s14 }
0x1634   :  { %2560 = vrot.lane.b32.xlu1 %v7947_v25, %s7538_s14 }
0x1638   :  { %2558 = vrot.lane.b32.xlu1 %v7947_v25, %s7539_s15 }
0x16a0   :  { %v2085_v10 = vpop.xlane.xlu0 %2084 }
0x16a1   :  { %v2089_v62 = vsub.f32 %v2081_v39, %v2085_v10 }
0x16a3   :  { %v2091_v63 = vmul.f32 1.442695, %v2089_v62 }
0x16a4   :  { %v2088_v0 = vpop.xlane.xlu1 %2087 }
0x16a5   :  { %v2090_v13 = vsub.f32 %v2082_v51, %v2088_v0  ;;  %7447 = vpow2.f32 %v2091_v63 }
0x16a7   :  { %v2093_v35 = vmul.f32 1.442695, %v2090_v13 }
0x16a8   :  { %v2108_v42 = vpop.permute.xlu1 %2107 }
0x16a9   :  { %7449 = vpow2.f32 %v2093_v35  ;;  %v2113_v28 = vsel %vm1887_vm11, %v2108_v42, 0 }
0x16aa   :  { %7009 = vmatpush3.bf16.msra.mxu1 %v2113_v28 }
0x16ab   :  { %7020 = vmatprep.subr.bf16.mxu1 %v7522_v7 }
0x16ac   :  { %v2511_v20 = vpop.permute.xlu1 %2510 }
0x16b0   :  { %v2561_v21 = vpop.permute.xlu1 %2560 }
0x16b1   :  { %v2566_v22 = vsel %vm164_vm3, %v2561_v21, 0 }
0x16b2   :  { %v7448_v33 = vpop.eup %7447 }
0x16b3   :  { %v2095_v18 = vsel %vm1856_vm10, %v7448_v33, 0.0 }
0x16b4   :  { %2096 = vadd.xlane.f32.xlu0 %v2095_v18  ;;  %v2559_v24 = vpop.permute.xlu1 %2558 }
0x16b6   :  { %v7450_v16 = vpop.eup %7449 }
0x16b7   :  { %v2098_v1 = vsel %vm1856_vm10, %v7450_v16, 0.0 }
0x16b8   :  { %2099 = vadd.xlane.f32.xlu0 %v2098_v1 }
0x16ce   :  { %2155 = vrot.lane.b32.xlu0 %v7947_v25, %s7537_s13 }
0x16d2   :  { %2508 = vrot.lane.b32.xlu0 %v7945_v23, %s7539_s15 }
0x173d   :  { %v2097_v44 = vpop.xlane.xlu0 %2096 }
0x173e   :  { %7451 = vrcp.f32 %v2097_v44 }
0x1741   :  { %v2100_v26 = vpop.xlane.xlu0 %2099 }
0x1742   :  { %7453 = vrcp.f32 %v2100_v26 }
0x1745   :  { %v2156_v2 = vpop.permute.xlu0 %2155 }
0x1746   :  { %v2161_v3 = vsel %vm1887_vm11, %v2156_v2, 0 }
0x1747   :  { %7015 = vmatpush3.bf16.msra.mxu0 %v2161_v3 }
0x1748   :  { %7026 = vmatprep.subr.bf16.mxu0 %v7522_v7 }
0x1749   :  { %v2509_v2 = vpop.permute.xlu0 %2508 }
0x174b   :  { %v7452_v5 = vpop.eup %7451 }
0x174c   :  { %v2103_v4 = vmul.f32 %v7452_v5, %v7448_v33  ;;  %v2516_v33 = vsel %vm164_vm3, %v2511_v20, 0 }
0x174e   :  { %v2105_v6 = vpack.c.bf16 %v2103_v4, %v2103_v4 }
0x174f   :  { %v7454_v8 = vpop.eup %7453 }
0x1750   :  { %7011 = vmatmul.mubr.msk.bf16.vlgmr.msra.gmra.mxu1 %vm1883_vm12, %v2105_v6  ;;  %v2104_v14 = vmul.f32 %v7454_v8, %v7450_v16 }
0x1751   :  { %7022 = vmatprep.mubr.msk.bf16.mxu1 %vm7523_vm1, %v7522_v7  ;;  %7021 = vmatpush3.bf16.msra.mxu1 %v2297_v30 }
0x1752   :  { %v2106_v15 = vpack.c.bf16 %v2104_v14, %v2104_v14  ;;  %7032 = vmatprep.subr.bf16.mxu1 %v7522_v7 }
0x1754   :  { %7017 = vmatmul.mubr.msk.bf16.vlgmr.msra.gmra.mxu0 %vm1883_vm12, %v2106_v15 }
0x1755   :  { %7027 = vmatpush3.bf16.msra.mxu0 %v2432_v17  ;;  %7028 = vmatprep.mubr.msk.bf16.mxu0 %vm7523_vm1, %v7522_v7 }
0x1756   :  { %7038 = vmatprep.subr.bf16.mxu0 %v7522_v7 }
0x175c   :  { %7029 = vmatmul.mubr.msk.bf16.vlgmr.msra.gmra.mxu0 %vm164_vm3, %v2427_v9 }
0x175d   :  { %7039 = vmatpush3.bf16.xpose.msra.mxu0 %v2566_v22  ;;  %7040 = vmatprep.mubr.msk.bf16.mxu0 %vm7523_vm1, %v7522_v7 }
0x175e   :  { %7050 = vmatprep.subr.bf16.mxu0 %v7522_v7 }
0x1764   :  { %7041 = vmatmul.mubr.msk.bf16.vlgmr.msra.gmra.mxu0 %vm164_vm3, %v2559_v24 }
0x1765   :  { %7052 = vmatprep.mubr.msk.bf16.mxu0 %vm7523_vm1, %v7522_v7 }
0x1810   :  { %v2149_v31 = vpop.f32.mrf.mxu1 }
0x1811   :  { %v2203_v36 = vpack.c.bf16 %v2149_v31, %v2149_v31 }
0x1812   :  { %v7012_v37 = vpop.f32.mrf.mxu1 }
0x1813   :  { %v2213_v38 = vrot.slane %v2203_v36, %v7592_v19 }
0x1814   :  { %v2152_v39 = vpop.f32.mrf.mxu1  ;;  %v2197_v40 = vpop.f32.mrf.mxu0 }
0x1815   :  { %v2214_v41 = vcombine.high %v2213_v38, %v2213_v38  ;;  %v2221_v34 = vrot.slane %v2213_v38, %v7592_v19  ;;  %v2204_v12 = vpack.c.bf16 %v2197_v40, %v2197_v40 }
0x1816   :  { %v7013_v43 = vpop.f32.mrf.mxu1  ;;  %v7018_v45 = vpop.f32.mrf.mxu0 }
0x1817   :  { %v2228_v46 = vrot.slane %v2214_v41, %v7592_v19  ;;  %v2236_v56 = vrot.slane %v2204_v12, %v7592_v19  ;;  %v2229_v50 = vcombine.high %v2221_v34, %v2221_v34 }
0x1818   :  { %v2200_v49 = vpop.f32.mrf.mxu0 }
0x1819   :  { %v2253_v47 = vcombine.low %v2221_v34, %v2228_v46  ;;  %v2237_v51 = vcombine.high %v2236_v56, %v2236_v56  ;;  %v2244_v53 = vrot.slane %v2236_v56, %v7592_v19 }
0x181a   :  { %v7019_v48 = vpop.f32.mrf.mxu0 }
0x181b   :  { %v2251_v54 = vrot.slane %v2237_v51, %v7592_v19  ;;  %v2252_v57 = vcombine.high %v2244_v53, %v2244_v53  ;;  %v2254_v58 = vcombine.low %v2229_v50, %v2244_v53  ;;  %v2262_v60 = vrot.slane %v2253_v47, %v7592_v19 }
0x181c   :  { %v8063_v59 = vpop.f32.mrf.mxu0 }
0x181d   :  { %v2255_v52 = vcombine.low %v2251_v54, %v2252_v57  ;;  %v2269_v61 = vrot.slane %v2254_v58, %v7592_v19  ;;  %v1492_v57 = vld [vmem:[%s8034_s19 + $0x8] sm:$0xf] }
0x181e   :  { %v7030_v9 = vpop.f32.mrf.mxu0  ;;  %v2824_v58 = vsel %vm570_vm5, %v1492_v57, 0 }
0x181f   :  { %v2276_v10 = vrot.slane %v2255_v52, %v7592_v19  ;;  %v2277_v62 = vcombine.low %v2262_v60, %v2269_v61 }
0x1820   :  { %v8068_v63 = vpop.f32.mrf.mxu0 }
0x1821   :  { %v2284_v0 = vrot.slane %v2277_v62, %v7592_v19  ;;  %v2291_v13 = vrot.slane %v2276_v10, %v7592_v19 }
0x1822   :  { %v7031_v35 = vpop.f32.mrf.mxu0 }
0x1823   :  { %v2292_v42 = vcombine.low %v2284_v0, %v2291_v13 }
0x1824   :  { %v2602_v28 = vpop.f32.mrf.mxu0 }
0x1825   :  { %v2609_v18 = vmul.f32 0.35355338, %v2602_v28  ;;  %7023 = vmatmul.mubr.msk.bf16.vlgmr.msra.gmra.mxu1 %vm164_vm3, %v2292_v42 }
0x1826   :  { %7033 = vmatpush3.bf16.xpose.msra.mxu1 %v2516_v33  ;;  %v7042_v16 = vpop.f32.mrf.mxu0  ;;  %7034 = vmatprep.mubr.msk.bf16.mxu1 %vm7523_vm1, %v7522_v7 }
0x1827   :  { %v2613_v1 = vsel %vm1856_vm10, %v2609_v18, -inf  ;;  %7044 = vmatprep.subr.bf16.mxu1 %v7522_v7 }
0x1828   :  { %2614 = vmax.xlane.f32.xlu1 %v2613_v1  ;;  %v2605_v44 = vpop.f32.mrf.mxu0 }
0x182a   :  { %v7043_v26 = vpop.f32.mrf.mxu0 }
0x182d   :  { %7035 = vmatmul.mubr.msk.bf16.vlgmr.msra.gmra.mxu1 %vm164_vm3, %v2509_v2 }
0x182e   :  { %7046 = vmatprep.mubr.msk.bf16.mxu1 %vm7523_vm1, %v7522_v7 }
0x1839   :  { %2634 = vrot.lane.b32.xlu1 %v7945_v23, %s7541_s20 }
0x183d   :  { %2908 = vrot.lane.b32.xlu1 %v7945_v23, %s7542_s21 }
0x1841   :  { %2958 = vrot.lane.b32.xlu1 %v7947_v25, %s7542_s21 }
0x1845   :  { %2956 = vrot.lane.b32.xlu1 %v7947_v25, %s7543_s22 }
0x18b1   :  { %v2615_v3 = vpop.xlane.xlu1 %2614 }
0x18b2   :  { %v2617_v6 = vsub.f32 %v2609_v18, %v2615_v3 }
0x18b4   :  { %v2620_v8 = vmul.f32 1.442695, %v2617_v6 }
0x18b5   :  { %v2635_v5 = vpop.permute.xlu1 %2634 }
0x18b6   :  { %v2640_v4 = vsel %vm1887_vm11, %v2635_v5, 0  ;;  %7455 = vpow2.f32 %v2620_v8 }
0x18b7   :  { %7045 = vmatpush3.bf16.msra.mxu1 %v2640_v4 }
0x18b8   :  { %7056 = vmatprep.subr.bf16.mxu1 %v7522_v7 }
0x18b9   :  { %v2909_v49 = vpop.permute.xlu1 %2908 }
0x18ba   :  { %v2914_v47 = vsel %vm164_vm3, %v2909_v49, 0 }
0x18c3   :  { %v7456_v27 = vpop.eup %7455 }
0x18c4   :  { %v2625_v36 = vsel %vm1856_vm10, %v7456_v27, 0.0 }
0x18e5   :  { %v8091_v11 = vpop.f32.mrf.mxu1 }
0x18e6   :  { %v2469_v49 = vadd.f32 %v8063_v59, %v8091_v11 }
0x18e7   :  { %v7024_v14 = vpop.f32.mrf.mxu1 }
0x18e9   :  { %v8093_v15 = vpop.f32.mrf.mxu1 }
0x18eb   :  { %v7025_v17 = vpop.f32.mrf.mxu1 }
0x18ed   :  { %v2552_v20 = vpop.f32.mrf.mxu1 }
0x18ee   :  { %v2608_v21 = vmul.f32 0.35355338, %v2552_v20 }
0x18ef   :  { %v7036_v22 = vpop.f32.mrf.mxu1 }
0x18f0   :  { %v2610_v24 = vsel %vm1856_vm10, %v2608_v21, -inf }
0x18f1   :  { %2611 = vmax.xlane.f32.xlu0 %v2610_v24  ;;  %v2555_v30 = vpop.f32.mrf.mxu1 }
0x18f3   :  { %v7037_v31 = vpop.f32.mrf.mxu1 }
0x18f5   :  { %2626 = vadd.xlane.f32.xlu0 %v2625_v36 }
0x197a   :  { %v2612_v37 = vpop.xlane.xlu0 %2611 }
0x197b   :  { %v2616_v38 = vsub.f32 %v2608_v21, %v2612_v37 }
0x197d   :  { %v2618_v39 = vmul.f32 1.442695, %v2616_v38 }
0x197e   :  { %v2627_v34 = vpop.xlane.xlu0 %2626 }
0x197f   :  { %7457 = vpow2.f32 %v2618_v39  ;;  %v2959_v39 = vpop.permute.xlu1 %2958 }
0x1980   :  { %7459 = vrcp.f32 %v2627_v34 }
0x1983   :  { %v2957_v34 = vpop.permute.xlu1 %2956 }
0x198c   :  { %v7458_v40 = vpop.eup %7457 }
0x198d   :  { %v2622_v41 = vsel %vm1856_vm10, %v7458_v40, 0.0  ;;  %v7460_v12 = vpop.eup %7459 }
0x198e   :  { %2623 = vadd.xlane.f32.xlu0 %v2622_v41  ;;  %v2631_v45 = vmul.f32 %v7460_v12, %v7456_v27  ;;  %v2964_v41 = vsel %vm164_vm3, %v2959_v39, 0 }
0x1990   :  { %v2633_v50 = vpack.c.bf16 %v2631_v45, %v2631_v45 }
0x19a4   :  { %2682 = vrot.lane.b32.xlu0 %v7947_v25, %s7541_s20 }
0x19a8   :  { %2906 = vrot.lane.b32.xlu0 %v7945_v23, %s7543_s22 }
0x1a17   :  { %v2624_v43 = vpop.xlane.xlu0 %2623 }
0x1a18   :  { %7461 = vrcp.f32 %v2624_v43 }
0x1a1b   :  { %v2683_v46 = vpop.permute.xlu0 %2682 }
0x1a1c   :  { %v2688_v56 = vsel %vm1887_vm11, %v2683_v46, 0 }
0x1a1d   :  { %7051 = vmatpush3.bf16.msra.mxu0 %v2688_v56 }
0x1a1e   :  { %7062 = vmatprep.subr.bf16.mxu0 %v7522_v7 }
0x1a1f   :  { %v2907_v48 = vpop.permute.xlu0 %2906 }
0x1a20   :  { %7053 = vmatmul.mubr.msk.bf16.vlgmr.msra.gmra.mxu0 %vm1883_vm12, %v2633_v50  ;;  %v2477_v50 = vcombine.high %v2469_v49, %v2469_v49 }
0x1a21   :  { %7063 = vmatpush3.bf16.xpose.msra.mxu0 %v2914_v47  ;;  %7064 = vmatprep.mubr.msk.bf16.mxu0 %vm7523_vm1, %v7522_v7  ;;  %v2484_v47 = vrot.slane %v2469_v49, %v7636_v55 }
0x1a22   :  { %7074 = vmatprep.subr.bf16.mxu0 %v7522_v7 }
0x1a25   :  { %v7462_v51 = vpop.eup %7461 }
0x1a26   :  { %v2630_v53 = vmul.f32 %v7462_v51, %v7458_v40  ;;  %v2472_v51 = vadd.f32 %v8068_v63, %v8093_v15 }
0x1a28   :  { %7065 = vmatmul.mubr.msk.bf16.vlgmr.msra.gmra.mxu0 %vm164_vm3, %v2907_v48  ;;  %v2632_v54 = vpack.c.bf16 %v2630_v53, %v2630_v53  ;;  %v2491_v53 = vrot.slane %v2477_v50, %v7636_v55 }
0x1a29   :  { %7076 = vmatprep.mubr.msk.bf16.mxu0 %vm7523_vm1, %v7522_v7 }
0x1a2a   :  { %7047 = vmatmul.mubr.msk.bf16.vlgmr.msra.gmra.mxu1 %vm1883_vm12, %v2632_v54  ;;  %v2493_v11 = vcombine.high %v2491_v53, %v2491_v53 }
0x1a2b   :  { %7058 = vmatprep.mubr.msk.bf16.mxu1 %vm7523_vm1, %v7522_v7  ;;  %7057 = vmatpush3.bf16.msra.mxu1 %v2824_v58  ;;  %v2492_v58 = vcombine.high %v2484_v47, %v2484_v47 }
0x1a2c   :  { %7068 = vmatprep.subr.bf16.mxu1 %v7522_v7 }
0x1ae0   :  { %v2724_v60 = vpop.f32.mrf.mxu0 }
0x1ae1   :  { %v2731_v52 = vpack.c.bf16 %v2724_v60, %v2724_v60 }
0x1ae2   :  { %v7054_v61 = vpop.f32.mrf.mxu0 }
0x1ae3   :  { %v2763_v10 = vrot.slane %v2731_v52, %v7592_v19  ;;  %v2500_v52 = vrot.slane %v2472_v51, %v7636_v55 }
0x1ae4   :  { %v2727_v9 = vpop.f32.mrf.mxu0 }
0x1ae5   :  { %v2764_v13 = vcombine.high %v2763_v10, %v2763_v10  ;;  %v2771_v35 = vrot.slane %v2763_v10, %v7592_v19 }
0x1ae6   :  { %v7055_v62 = vpop.f32.mrf.mxu0 }
0x1ae7   :  { %v2778_v26 = vrot.slane %v2764_v13, %v7592_v19  ;;  %v2779_v2 = vcombine.high %v2771_v35, %v2771_v35 }
0x1ae8   :  { %v2950_v0 = vpop.f32.mrf.mxu0 }
0x1ae9   :  { %v3006_v42 = vmul.f32 0.35355338, %v2950_v0  ;;  %v2782_v17 = vcombine.low %v2778_v26, %v2779_v2 }
0x1aea   :  { %v2676_v28 = vpop.f32.mrf.mxu1  ;;  %v7066_v33 = vpop.f32.mrf.mxu0 }
0x1aeb   :  { %v2730_v18 = vpack.c.bf16 %v2676_v28, %v2676_v28  ;;  %v3008_v16 = vsel %vm1856_vm10, %v3006_v42, -inf  ;;  %v2803_v27 = vrot.slane %v2782_v17, %v7592_v19 }
0x1aec   :  { %v7048_v1 = vpop.f32.mrf.mxu1  ;;  %3009 = vmax.xlane.f32.xlu0 %v3008_v16  ;;  %v2953_v44 = vpop.f32.mrf.mxu0 }
0x1aed   :  { %v2740_v3 = vrot.slane %v2730_v18, %v7592_v19  ;;  %v2818_v37 = vrot.slane %v2803_v27, %v7592_v19 }
0x1aee   :  { %v2679_v5 = vpop.f32.mrf.mxu1  ;;  %v7067_v4 = vpop.f32.mrf.mxu0 }
0x1aef   :  { %v2741_v6 = vcombine.high %v2740_v3, %v2740_v3  ;;  %v2748_v8 = vrot.slane %v2740_v3, %v7592_v19 }
0x1af0   :  { %v7049_v14 = vpop.f32.mrf.mxu1 }
0x1af1   :  { %v2755_v20 = vrot.slane %v2741_v6, %v7592_v19  ;;  %v2756_v21 = vcombine.high %v2748_v8, %v2748_v8 }
0x1af3   :  { %v2780_v22 = vcombine.low %v2748_v8, %v2755_v20  ;;  %v2781_v24 = vcombine.low %v2756_v21, %v2771_v35  ;;  %v2501_v35 = vcombine.high %v2500_v52, %v2500_v52 }
0x1af5   :  { %v2789_v30 = vrot.slane %v2780_v22, %v7592_v19  ;;  %v2796_v31 = vrot.slane %v2781_v24, %v7592_v19 }
0x1af7   :  { %v2804_v36 = vcombine.low %v2789_v30, %v2796_v31 }
0x1af9   :  { %v2811_v38 = vrot.slane %v2804_v36, %v7592_v19 }
0x1afb   :  { %v2819_v40 = vcombine.low %v2811_v38, %v2818_v37 }
0x1afd   :  { %7059 = vmatmul.mubr.msk.bf16.vlgmr.msra.gmra.mxu1 %vm164_vm3, %v2819_v40 }
0x1afe   :  { %7069 = vmatpush3.bf16.xpose.msra.mxu1 %v2964_v41  ;;  %7070 = vmatprep.mubr.msk.bf16.mxu1 %vm7523_vm1, %v7522_v7 }
0x1aff   :  { %7080 = vmatprep.subr.bf16.mxu1 %v7522_v7 }
0x1b05   :  { %7071 = vmatmul.mubr.msk.bf16.vlgmr.msra.gmra.mxu1 %vm164_vm3, %v2957_v34  ;;  %v1493_v34 = vld [vmem:[%s8034_s19 + $0xc] sm:$0xf]  ;;  %s6650_s19 = sld [smem:[%s8735_s0 + %s7553_s16]]   ;;  %s7567_s16 = smov 33  }
0x1b06   :  { %7082 = vmatprep.mubr.msk.bf16.mxu1 %vm7523_vm1, %v7522_v7 }
0x1b75   :  { %v3010_v12 = vpop.xlane.xlu0 %3009 }
0x1b76   :  { %v3014_v43 = vsub.f32 %v3006_v42, %v3010_v12  ;;  %v3222_v12 = vsel %vm570_vm5, %v1493_v34, 0 }
0x1b78   :  { %v3016_v45 = vmul.f32 1.442695, %v3014_v43 }
0x1b7a   :  { %7463 = vpow2.f32 %v3016_v45 }
0x1b87   :  { %v7464_v46 = vpop.eup %7463 }
0x1b88   :  { %v3020_v56 = vsel %vm1856_vm10, %v7464_v46, 0.0 }
0x1b89   :  { %3021 = vadd.xlane.f32.xlu0 %v3020_v56 }
0x1bbd   :  { %v2860_v48 = vpop.f32.mrf.mxu1 }
0x1bbe   :  { %v2869_v54 = vcombine.high %v2860_v48, %v2860_v48  ;;  %v2876_v57 = vrot.slane %v2860_v48, %v7636_v55 }
0x1bbf   :  { %v7060_v60 = vpop.f32.mrf.mxu1 }
0x1bc0   :  { %v2883_v61 = vrot.slane %v2869_v54, %v7636_v55  ;;  %v2884_v9 = vcombine.high %v2876_v57, %v2876_v57  ;;  %v8148_v59 = vadd.f32 %v2876_v57, %v2484_v47 }
0x1bc1   :  { %v2863_v10 = vpop.f32.mrf.mxu1 }
0x1bc2   :  { %v2885_v62 = vcombine.high %v2883_v61, %v2883_v61  ;;  %v8150_v0 = vadd.f32 %v2884_v9, %v2492_v58  ;;  %v8152_v63 = vadd.f32 %v2883_v61, %v2491_v53  ;;  %v2892_v15 = vrot.slane %v2863_v10, %v7636_v55 }
0x1bc3   :  { %v7061_v13 = vpop.f32.mrf.mxu1 }
0x1bc4   :  { %v8155_v42 = vadd.f32 %v2885_v62, %v2493_v11  ;;  %v2893_v28 = vcombine.high %v2892_v15, %v2892_v15  ;;  %v8157_v33 = vadd.f32 %v2892_v15, %v2500_v52 }
0x1bc5   :  { %v3000_v18 = vpop.f32.mrf.mxu1 }
0x1bc6   :  { %v8159_v16 = vadd.f32 %v2893_v28, %v2501_v35  ;;  %v3007_v1 = vmul.f32 0.35355338, %v3000_v18 }
0x1bc7   :  { %v7072_v44 = vpop.f32.mrf.mxu1 }
0x1bc8   :  { %v3011_v26 = vsel %vm1856_vm10, %v3007_v1, -inf  ;;  %v6719_v44 = vld [vmem:[%s6643_s29] ss:$0 sm:$0xff]  ;;  %s6651_s29 = sld [smem:[%s8735_s0 + %s7554_s24]]  }
0x1bc9   :  { %3012 = vmax.xlane.f32.xlu1 %v3011_v26  ;;  %v3003_v2 = vpop.f32.mrf.mxu1  ;;  %v3310_v26 = vcombine.high %v6719_v44, %v6719_v44 }
0x1bca   :  { %v3317_v2 = vrot.slane %v6719_v44, %v7636_v55  ;;  %v6721_v44 = vld [vmem:[%s6645_s17] ss:$0 sm:$0xff] }
0x1bcb   :  { %v7073_v3 = vpop.f32.mrf.mxu1 }
0x1bda   :  { %3032 = vrot.lane.b32.xlu1 %v7945_v23, %s7544_s23 }
0x1c12   :  { %v3022_v5 = vpop.xlane.xlu0 %3021 }
0x1c13   :  { %7465 = vrcp.f32 %v3022_v5 }
0x1c20   :  { %v7466_v4 = vpop.eup %7465 }
0x1c21   :  { %v3028_v17 = vmul.f32 %v7466_v4, %v7464_v46 }
0x1c23   :  { %v3030_v22 = vpack.c.bf16 %v3028_v17, %v3028_v17 }
0x1c52   :  { %v3013_v6 = vpop.xlane.xlu1 %3012 }
0x1c53   :  { %v3015_v8 = vsub.f32 %v3007_v1, %v3013_v6  ;;  %v3324_v6 = vrot.slane %v3310_v26, %v7636_v55 }
0x1c55   :  { %v3018_v14 = vmul.f32 1.442695, %v3015_v8 }
0x1c56   :  { %v3033_v20 = vpop.permute.xlu1 %3032 }
0x1c57   :  { %7467 = vpow2.f32 %v3018_v14  ;;  %v3038_v21 = vsel %vm1887_vm11, %v3033_v20, 0 }
0x1c58   :  { %7075 = vmatpush3.bf16.msra.mxu0 %v3038_v21  ;;  %v3325_v21 = vcombine.high %v3317_v2, %v3317_v2 }
0x1c59   :  { %7086 = vmatprep.subr.bf16.mxu0 %v7522_v7 }
0x1c5b   :  { %7077 = vmatmul.mubr.msk.bf16.vlgmr.msra.gmra.mxu0 %vm1883_vm12, %v3030_v22 }
0x1c5c   :  { %7088 = vmatprep.mubr.msk.bf16.mxu0 %vm7523_vm1, %v7522_v7  ;;  %7087 = vmatpush3.bf16.msra.mxu0 %v3222_v12 }
0x1c5d   :  { %7100 = vmatprep.subr.bf16.mxu0 %v7522_v7 }
0x1c64   :  { %v7468_v23 = vpop.eup %7467 }
0x1c65   :  { %v3023_v24 = vsel %vm1856_vm10, %v7468_v23, 0.0 }
0x1c66   :  { %3024 = vadd.xlane.f32.xlu0 %v3023_v24 }
0x1c7c   :  { %3080 = vrot.lane.b32.xlu0 %v7947_v25, %s7544_s23 }
0x1cef   :  { %v3025_v27 = vpop.xlane.xlu0 %3024 }
0x1cf0   :  { %7469 = vrcp.f32 %v3025_v27 }
0x1cf3   :  { %v3081_v30 = vpop.permute.xlu0 %3080 }
0x1cf4   :  { %v3086_v31 = vsel %vm1887_vm11, %v3081_v30, 0 }
0x1cf5   :  { %7081 = vmatpush3.bf16.msra.mxu1 %v3086_v31 }
0x1cf6   :  { %7092 = vmatprep.subr.bf16.mxu1 %v7522_v7 }
0x1cfd   :  { %v7470_v36 = vpop.eup %7469 }
0x1cfe   :  { %v3029_v37 = vmul.f32 %v7470_v36, %v7468_v23 }
0x1d00   :  { %v3031_v38 = vpack.c.bf16 %v3029_v37, %v3029_v37 }
0x1d02   :  { %7083 = vmatmul.mubr.msk.bf16.vlgmr.msra.gmra.mxu1 %vm1883_vm12, %v3031_v38 }
0x1d03   :  { %7096 = vmatprep.mubr.msk.bf16.mxu1 %vm7523_vm1, %v7522_v7 }
0x1d1b   :  { %v3074_v39 = vpop.f32.mrf.mxu0 }
0x1d1c   :  { %v3128_v43 = vpack.c.bf16 %v3074_v39, %v3074_v39 }
0x1d1d   :  { %v7078_v40 = vpop.f32.mrf.mxu0 }
0x1d1e   :  { %v3138_v45 = vrot.slane %v3128_v43, %v7592_v19 }
0x1d1f   :  { %v3077_v25 = vpop.f32.mrf.mxu0 }
0x1d20   :  { %v3139_v46 = vcombine.high %v3138_v45, %v3138_v45  ;;  %v3146_v49 = vrot.slane %v3138_v45, %v7592_v19 }
0x1d21   :  { %v7079_v41 = vpop.f32.mrf.mxu0 }
0x1d22   :  { %v3153_v50 = vrot.slane %v3139_v46, %v7592_v19  ;;  %v3154_v54 = vcombine.high %v3146_v49, %v3146_v49 }
0x1d24   :  { %v3178_v57 = vcombine.low %v3146_v49, %v3153_v50 }
0x1d26   :  { %v3187_v10 = vrot.slane %v3178_v57, %v7592_v19 }
0x1dc2   :  { %v3122_v56 = vpop.f32.mrf.mxu1 }
0x1dc3   :  { %v3129_v47 = vpack.c.bf16 %v3122_v56, %v3122_v56 }
0x1dc4   :  { %v7084_v51 = vpop.f32.mrf.mxu1 }
0x1dc5   :  { %v3161_v53 = vrot.slane %v3129_v47, %v7592_v19 }
0x1dc6   :  { %v3125_v48 = vpop.f32.mrf.mxu1 }
0x1dc7   :  { %v3162_v58 = vcombine.high %v3161_v53, %v3161_v53  ;;  %v3169_v60 = vrot.slane %v3161_v53, %v7592_v19 }
0x1dc8   :  { %v7085_v52 = vpop.f32.mrf.mxu1 }
0x1dc9   :  { %v3176_v61 = vrot.slane %v3162_v58, %v7592_v19  ;;  %v3177_v9 = vcombine.high %v3169_v60, %v3169_v60  ;;  %v3179_v11 = vcombine.low %v3154_v54, %v3169_v60 }
0x1dcb   :  { %v3180_v62 = vcombine.low %v3176_v61, %v3177_v9  ;;  %v3194_v15 = vrot.slane %v3179_v11, %v7592_v19  ;;  %v7328_v9 = vld [vmem:[%s6646_s3] sm:$0xff]  }
0x1dcd   :  { %v3201_v13 = vrot.slane %v3180_v62, %v7592_v19  ;;  %v3202_v35 = vcombine.low %v3187_v10, %v3194_v15 }
0x1dcf   :  { %v3209_v28 = vrot.slane %v3202_v35, %v7592_v19  ;;  %v3216_v18 = vrot.slane %v3201_v13, %v7592_v19 }
0x1dd1   :  { %v3217_v1 = vcombine.low %v3209_v28, %v3216_v18  ;;  %v6720_v18 = vld [vmem:[%s6644_s8] ss:$0 sm:$0xff]  ;;  %s7566_s8 = smov 30  }
0x1dd3   :  { %7089 = vmatmul.mubr.msk.bf16.vlgmr.msra.gmra.mxu0 %vm164_vm3, %v3217_v1 }
0x1dd4   :  { %7108 = vmatprep.mubr.msk.bf16.mxu0 %vm7523_vm1, %v7522_v7 }
0x1e93   :  { %v3258_v3 = vpop.f32.mrf.mxu0 }
0x1e94   :  { %v3267_v5 = vcombine.high %v3258_v3, %v3258_v3  ;;  %v3274_v4 = vrot.slane %v3258_v3, %v7636_v55 }
0x1e95   :  { %v7090_v8 = vpop.f32.mrf.mxu0 }
0x1e96   :  { %v3281_v14 = vrot.slane %v3267_v5, %v7636_v55  ;;  %v3282_v17 = vcombine.high %v3274_v4, %v3274_v4  ;;  %v3298_v20 = vadd.f32 %v3274_v4, %v8148_v59 }
0x1e97   :  { %v3261_v22 = vpop.f32.mrf.mxu0 }
0x1e98   :  { %v3283_v23 = vcombine.high %v3281_v14, %v3281_v14  ;;  %v3299_v24 = vadd.f32 %v3282_v17, %v8150_v0  ;;  %v3300_v27 = vadd.f32 %v3281_v14, %v8152_v63  ;;  %v3290_v30 = vrot.slane %v3261_v22, %v7636_v55 }
0x1e99   :  { %v7091_v31 = vpop.f32.mrf.mxu0  ;;  %v3329_v37 = vadd.f32 %v3317_v2, %v3298_v20 }
0x1e9a   :  { %v3301_v36 = vadd.f32 %v3283_v23, %v8155_v42  ;;  %v3331_v38 = vadd.f32 %v3324_v6, %v3300_v27  ;;  %v3330_v39 = vadd.f32 %v3325_v21, %v3299_v24  ;;  %v3291_v40 = vcombine.high %v3290_v30, %v3290_v30 }
0x1e9b   :  { %v3302_v25 = vadd.f32 %v3290_v30, %v8157_v33 }
0x1e9c   :  { %v3332_v41 = vadd.f32 %v3317_v2, %v3301_v36  ;;  %v3341_v59 = vcombine.low %v3329_v37, %v3330_v39  ;;  %v3303_v34 = vadd.f32 %v3291_v40, %v8159_v16  ;;  %v3355_v63 = vrot.slane %v3331_v38, %v7636_v55 }
0x1e9d   :  { %v3333_v12 = vadd.f32 %v3325_v21, %v3302_v25 }
0x1e9e   :  { %v3348_v0 = vrot.slane %v3341_v59, %v7636_v55  ;;  %v3334_v43 = vadd.f32 %v3324_v6, %v3303_v34 }
0x1e9f   :  { %v3357_v45 = vcombine.low %v3332_v41, %v3333_v12 }
0x1ea0   :  { %v3356_v46 = vcombine.low %v3348_v0, %v3355_v63  ;;  %v3371_v56 = vrot.slane %v3334_v43, %v7636_v55  ;;  %v7329_v63 = vld [vmem:[%s6648_s25 + $0x18] sm:$0xff]   ;;  %v7330_v43 = vld [vmem:[%s6648_s25 + $0x10] sm:$0xff]  }
0x1ea1   :  { %v3364_v42 = vrot.slane %v3357_v45, %v7636_v55  ;;  %7101 = vmatpush3.bf16.msra.mxu0 %v7329_v63  ;;  %v7331_v45 = vld [vmem:[%s6648_s25 + $0x8] sm:$0xff]  }
0x1ea2   :  { %v3375_v49 = vadd.f32 %v3356_v46, %v7907_v29  ;;  %7102 = vmatprep.subr.bf16.mxu0 %v7522_v7  ;;  %v7332_v46 = vld [vmem:[%s6648_s25] sm:$0xff]  }
0x1ea3   :  { %v3372_v33 = vcombine.low %v3364_v42, %v3371_v56  ;;  %v6722_v42 = vld [vmem:[%s6647_s1] ss:$0 sm:$0xff] }
0x1ea4   :  { %v3380_v50 = vsel %vm3379_vm13, %v3375_v49, 0.0  ;;  %v3483_v56 = vcombine.high %v6722_v42, %v6722_v42 }
0x1ea5   :  { %3381 = vadd.xlane.f32.xlu1 %v3380_v50  ;;  %v3376_v16 = vadd.f32 %v3372_v33, %v7911_v32  ;;  %v7327_v32 = vld [vmem:[%s6646_s3 + $0x8] sm:$0xff]   ;;  %7103 = vmatpush3.bf16.msra.mxu0 %v7330_v43  ;;  %s6653_s3 = sld [smem:[%s8735_s0 + %s7555_s30]]  }
0x1ea6   :  { %7093 = vmatpush3.bf16.msra.mxu1 %v7327_v32  ;;  %7104 = vmatprep.subr.bf16.mxu0 %v7522_v7  ;;  %v3497_v33 = vrot.slane %v3483_v56, %v7636_v55 }
0x1ea7   :  { %v3383_v47 = vsel %vm3379_vm13, %v3376_v16, 0.0  ;;  %7094 = vmatprep.subr.bf16.mxu1 %v7522_v7 }
0x1ea8   :  { %3384 = vadd.xlane.f32.xlu0 %v3383_v47 }
0x1ea9   :  { %7105 = vmatpush3.bf16.msra.mxu0 %v7331_v45 }
0x1eaa   :  { %7095 = vmatpush3.bf16.msra.mxu1 %v7328_v9  ;;  %7106 = vmatprep.subr.bf16.mxu0 %v7522_v7 }
0x1eab   :  { %7112 = vmatprep.subr.bf16.mxu1 %v7522_v7 }
0x1ead   :  { %7107 = vmatpush3.bf16.msra.mxu0 %v7332_v46 }
0x1eae   :  { %7126 = vmatprep.subr.bf16.mxu0 %v7522_v7 }
0x1f2e   :  { %v3382_v51 = vpop.xlane.xlu1 %3381 }
0x1f2f   :  { %v3387_v53 = vmul.f32 0.03125, %v3382_v51 }
0x1f31   :  { %v3389_v48 = vsub.f32 %v3375_v49, %v3387_v53  ;;  %v3385_v54 = vpop.xlane.xlu0 %3384  ;;  %v3490_v49 = vrot.slane %v6722_v42, %v7636_v55 }
0x1f32   :  { %v3388_v57 = vmul.f32 0.03125, %v3385_v54 }
0x1f33   :  { %v3391_v58 = vmul.f32 %v3389_v48, %v3389_v48  ;;  %v3498_v50 = vcombine.high %v3490_v49, %v3490_v49  ;;  %v3552_v47 = vcombine.low %v3497_v33, %v3490_v49 }
0x1f34   :  { %v3390_v60 = vsub.f32 %v3376_v16, %v3388_v57 }
0x1f35   :  { %v3393_v52 = vsel %vm3379_vm13, %v3391_v58, 0.0  ;;  %v3551_v16 = vcombine.low %v3490_v49, %v3498_v50  ;;  %v3566_v53 = vrot.slane %v3552_v47, %v7636_v55  ;;  %v3568_v54 = vcombine.low %v3498_v50, %v3497_v33  ;;  %v6726_v49 = vld [vmem:[%s6649_s5] ss:$0 sm:$0xff]  ;;  %s7559_s5 = smov 23  }
0x1f36   :  { %3394 = vadd.xlane.f32.xlu1 %v3393_v52  ;;  %v3392_v29 = vmul.f32 %v3390_v60, %v3390_v60  ;;  %v3765_v33 = vcombine.high %v6726_v49, %v6726_v49  ;;  %v3772_v50 = vrot.slane %v6726_v49, %v7636_v55  ;;  %s6656_s9 = sld [smem:[%s8735_s0 + %s7559_s5]]  }
0x1f37   :  { %v3559_v51 = vrot.slane %v3551_v16, %v7636_v55 }
0x1f38   :  { %v3396_v61 = vsel %vm3379_vm13, %v3392_v29, 0.0  ;;  %v3779_v16 = vrot.slane %v3765_v33, %v7636_v55  ;;  %v3780_v47 = vcombine.high %v3772_v50, %v3772_v50 }
0x1f39   :  { %3397 = vadd.xlane.f32.xlu0 %v3396_v61 }
0x1fbf   :  { %v3395_v11 = vpop.xlane.xlu1 %3394 }
0x1fc0   :  { %v3399_v10 = vmul.f32 0.03125, %v3395_v11 }
0x1fc2   :  { %v3401_v62 = vadd.f32 1e-05, %v3399_v10  ;;  %v3398_v15 = vpop.xlane.xlu0 %3397 }
0x1fc3   :  { %v3400_v13 = vmul.f32 0.03125, %v3398_v15 }
0x1fc4   :  { %7471 = vrsqrt.f32 %v3401_v62 }
0x1fc5   :  { %v3402_v35 = vadd.f32 1e-05, %v3400_v13 }
0x1fc7   :  { %7473 = vrsqrt.f32 %v3402_v35 }
0x1fd1   :  { %v7472_v28 = vpop.eup %7471 }
0x1fd2   :  { %v3405_v1 = vmul.f32 %v7472_v28, %v3389_v48  ;;  %v3567_v48 = vcombine.low %v3559_v51, %v3566_v53  ;;  %v3845_v51 = vcombine.low %v3772_v50, %v3780_v47  ;;  %v3846_v53 = vcombine.low %v3779_v16, %v3772_v50 }
0x1fd4   :  { %v7474_v26 = vpop.eup %7473  ;;  %v3413_v2 = vmul.f32 %v6720_v18, %v3405_v1 }
0x1fd5   :  { %v3406_v3 = vmul.f32 %v7474_v26, %v3390_v60  ;;  %v3575_v60 = vrot.slane %v3568_v54, %v7636_v55  ;;  %v3860_v54 = vrot.slane %v3846_v53, %v7636_v55 }
0x1fd6   :  { %v8229_v5 = vadd.f32 %v6721_v44, %v3413_v2 }
0x1fd7   :  { %v3414_v4 = vmul.f32 %v6720_v18, %v3406_v3 }
0x1fd8   :  { %v3427_v6 = vpack.c.bf16 %v8229_v5, %v8229_v5 }
0x1fd9   :  { %v8233_v8 = vadd.f32 %v6721_v44, %v3414_v4 }
0x1fda   :  { %v3443_v14 = vrot.slane %v3427_v6, %v7592_v19 }
0x1fdb   :  { %v3428_v17 = vpack.c.bf16 %v8233_v8, %v8233_v8 }
0x1fdc   :  { %v3444_v20 = vcombine.high %v3443_v14, %v3443_v14  ;;  %v3451_v21 = vrot.slane %v3443_v14, %v7592_v19 }
0x1fdd   :  { %v3466_v22 = vrot.slane %v3428_v17, %v7592_v19 }
0x1fde   :  { %v3458_v23 = vrot.slane %v3444_v20, %v7592_v19  ;;  %v3459_v24 = vcombine.high %v3451_v21, %v3451_v21 }
0x1fdf   :  { %v3467_v27 = vcombine.high %v3466_v22, %v3466_v22  ;;  %v3474_v30 = vrot.slane %v3466_v22, %v7592_v19 }
0x1fe0   :  { %v3499_v31 = vcombine.low %v3451_v21, %v3458_v23 }
0x1fe1   :  { %v3481_v36 = vrot.slane %v3467_v27, %v7592_v19  ;;  %v3482_v37 = vcombine.high %v3474_v30, %v3474_v30  ;;  %v3500_v38 = vcombine.low %v3459_v24, %v3474_v30 }
0x1fe2   :  { %v3508_v39 = vrot.slane %v3499_v31, %v7592_v19 }
0x1fe3   :  { %v3501_v40 = vcombine.low %v3481_v36, %v3482_v37  ;;  %v3515_v25 = vrot.slane %v3500_v38, %v7592_v19 }
0x1fe5   :  { %v3522_v41 = vrot.slane %v3501_v40, %v7592_v19  ;;  %v3523_v59 = vcombine.low %v3508_v39, %v3515_v25 }
0x1fe7   :  { %v3530_v34 = vrot.slane %v3523_v59, %v7592_v19  ;;  %v3537_v12 = vrot.slane %v3522_v41, %v7592_v19 }
0x1fe9   :  { %v3538_v0 = vcombine.low %v3530_v34, %v3537_v12 }
0x1feb   :  { %7097 = vmatmul.mubr.msk.bf16.vlgmr.msra.gmra.mxu1 %vm660_vm7, %v3538_v0 }
0x1fec   :  { %7116 = vmatprep.mubr.msk.bf16.mxu1 %vm7523_vm1, %v7522_v7 }
0x20ab   :  { %v3615_v57 = vpop.f32.mrf.mxu1 }
0x20ac   :  { %v3616_v58 = vadd.f32 %v3615_v57, %v3567_v48  ;;  %v3853_v48 = vrot.slane %v3845_v51, %v7636_v55 }
0x20ad   :  { %v7098_v52 = vpop.f32.mrf.mxu1 }
0x20ae   :  { %v3624_v29 = vcombine.high %v3616_v58, %v3616_v58  ;;  %v3631_v61 = vrot.slane %v3616_v58, %v7636_v55  ;;  %v3861_v57 = vcombine.low %v3853_v48, %v3860_v54  ;;  %v3862_v58 = vcombine.low %v3780_v47, %v3779_v16 }
0x20af   :  { %v3618_v32 = vpop.f32.mrf.mxu1 }
0x20b0   :  { %v3638_v9 = vrot.slane %v3624_v29, %v7636_v55  ;;  %v3639_v11 = vcombine.high %v3631_v61, %v3631_v61  ;;  %v3619_v10 = vadd.f32 %v3618_v32, %v3575_v60  ;;  %v3655_v62 = vmax.f32 %v3631_v61, 0.0 }
0x20b1   :  { %v7099_v15 = vpop.f32.mrf.mxu1  ;;  %v3869_v29 = vrot.slane %v3862_v58, %v7636_v55 }
0x20b2   :  { %v3640_v13 = vcombine.high %v3638_v9, %v3638_v9  ;;  %v3656_v35 = vmax.f32 %v3639_v11, 0.0  ;;  %v3657_v28 = vmax.f32 %v3638_v9, 0.0  ;;  %v3647_v18 = vrot.slane %v3619_v10, %v7636_v55 }
0x20b4   :  { %v3658_v1 = vmax.f32 %v3640_v13, 0.0  ;;  %v3675_v44 = vcombine.low %v3655_v62, %v3656_v35  ;;  %v3648_v26 = vcombine.high %v3647_v18, %v3647_v18  ;;  %v3659_v2 = vmax.f32 %v3647_v18, 0.0 }
0x20b5   :  { %v3689_v4 = vrot.slane %v3657_v28, %v7636_v55 }
0x20b6   :  { %v3682_v3 = vrot.slane %v3675_v44, %v7636_v55  ;;  %v3660_v6 = vmax.f32 %v3648_v26, 0.0  ;;  %v3691_v14 = vcombine.low %v3658_v1, %v3659_v2 }
0x20b8   :  { %v3690_v17 = vcombine.low %v3682_v3, %v3689_v4  ;;  %v3705_v20 = vrot.slane %v3660_v6, %v7636_v55  ;;  %v3698_v21 = vrot.slane %v3691_v14, %v7636_v55 }
0x20ba   :  { %v3709_v22 = vpack.c.bf16 %v3690_v17, %v3690_v17  ;;  %v3706_v23 = vcombine.low %v3698_v21, %v3705_v20 }
0x20bc   :  { %v3725_v24 = vrot.slane %v3709_v22, %v7592_v19  ;;  %v3710_v27 = vpack.c.bf16 %v3706_v23, %v3706_v23 }
0x20be   :  { %v3726_v30 = vcombine.high %v3725_v24, %v3725_v24  ;;  %v3733_v31 = vrot.slane %v3725_v24, %v7592_v19  ;;  %v3748_v36 = vrot.slane %v3710_v27, %v7592_v19 }
0x20c0   :  { %v3740_v37 = vrot.slane %v3726_v30, %v7592_v19  ;;  %v3741_v38 = vcombine.high %v3733_v31, %v3733_v31  ;;  %v3749_v39 = vcombine.high %v3748_v36, %v3748_v36  ;;  %v3756_v40 = vrot.slane %v3748_v36, %v7592_v19 }
0x20c2   :  { %v3781_v25 = vcombine.low %v3733_v31, %v3740_v37  ;;  %v3763_v41 = vrot.slane %v3749_v39, %v7592_v19  ;;  %v3764_v59 = vcombine.high %v3756_v40, %v3756_v40  ;;  %v3782_v34 = vcombine.low %v3741_v38, %v3756_v40  ;;  %v7334_v40 = vld [vmem:[%s6652_s10] sm:$0xff]  }
0x20c4   :  { %v3790_v12 = vrot.slane %v3781_v25, %v7592_v19  ;;  %v3783_v0 = vcombine.low %v3763_v41, %v3764_v59  ;;  %v3797_v63 = vrot.slane %v3782_v34, %v7592_v19 }
0x20c6   :  { %v3804_v43 = vrot.slane %v3783_v0, %v7592_v19  ;;  %v3805_v45 = vcombine.low %v3790_v12, %v3797_v63 }
0x20c8   :  { %v3812_v46 = vrot.slane %v3805_v45, %v7592_v19  ;;  %v3819_v42 = vrot.slane %v3804_v43, %v7592_v19  ;;  %v6732_v43 = vld [vmem:[%s6650_s19] ss:$0 sm:$0xff]  ;;  %s7561_s19 = smov 27  }
0x20c9   :  { %s6660_s26 = sld [smem:[%s8735_s0 + %s7561_s19]]  }
0x20ca   :  { %v3820_v56 = vcombine.low %v3812_v46, %v3819_v42  ;;  %v6733_v42 = vld [vmem:[%s6651_s29] ss:$0 sm:$0xff]  ;;  %s7562_s29 = smov 26   ;;  %s6666_s19 = sld [smem:[%s8735_s0 + %s7567_s16]]  }
0x20cb   :  { %s6659_s2 = sld [smem:[%s8735_s0 + %s7562_s29]]  }
0x20cc   :  { %7109 = vmatmul.mubr.msk.bf16.vlgmr.msra.gmra.mxu0 %vm3872_vm14, %v3820_v56 }
0x20cd   :  { %7128 = vmatprep.mubr.msk.bf16.mxu0 %vm7523_vm1, %v7522_v7 }
0x218c   :  { %v3910_v60 = vpop.f32.mrf.mxu0 }
0x218d   :  { %v3911_v52 = vadd.f32 %v3910_v60, %v3861_v57 }
0x218e   :  { %v7110_v61 = vpop.f32.mrf.mxu0 }
0x218f   :  { %v3919_v32 = vcombine.high %v3911_v52, %v3911_v52  ;;  %v3926_v9 = vrot.slane %v3911_v52, %v7636_v55 }
0x2190   :  { %v3913_v11 = vpop.f32.mrf.mxu0 }
0x2191   :  { %v3933_v10 = vrot.slane %v3919_v32, %v7636_v55  ;;  %v3934_v62 = vcombine.high %v3926_v9, %v3926_v9  ;;  %v3914_v15 = vadd.f32 %v3913_v11, %v3869_v29 }
0x2192   :  { %v7111_v13 = vpop.f32.mrf.mxu0 }
0x2193   :  { %v3944_v35 = vcombine.low %v3926_v9, %v3934_v62  ;;  %v3935_v28 = vcombine.high %v3933_v10, %v3933_v10  ;;  %v3942_v18 = vrot.slane %v3914_v15, %v7636_v55  ;;  %v3958_v2 = vrot.slane %v3933_v10, %v7636_v55 }
0x2195   :  { %v3943_v1 = vcombine.high %v3942_v18, %v3942_v18  ;;  %v3960_v44 = vcombine.low %v3935_v28, %v3942_v18  ;;  %v3951_v26 = vrot.slane %v3944_v35, %v7636_v55 }
0x2197   :  { %v3967_v3 = vrot.slane %v3960_v44, %v7636_v55  ;;  %v3974_v4 = vrot.slane %v3943_v1, %v7636_v55  ;;  %v3959_v6 = vcombine.low %v3951_v26, %v3958_v2  ;;  %v6734_v44 = vld [vmem:[%s6653_s3] ss:$0 sm:$0xff]  ;;  %s7563_s3 = smov 28  }
0x2198   :  { %v4088_v26 = vcombine.high %v6734_v44, %v6734_v44  ;;  %v4095_v2 = vrot.slane %v6734_v44, %v7636_v55 }
0x2199   :  { %v3978_v14 = vadd.f32 %v3959_v6, %v8229_v5  ;;  %v3975_v17 = vcombine.low %v3967_v3, %v3974_v4 }
0x219a   :  { %v4102_v3 = vrot.slane %v4088_v26, %v7636_v55  ;;  %v4103_v4 = vcombine.high %v4095_v2, %v4095_v2 }
0x219b   :  { %v3982_v20 = vsel %vm3379_vm13, %v3978_v14, 0.0  ;;  %v3979_v21 = vadd.f32 %v3975_v17, %v8233_v8  ;;  %v7333_v8 = vld [vmem:[%s6652_s10 + $0x8] sm:$0xff]   ;;  %s7560_s10 = smov 24  }
0x219c   :  { %3983 = vadd.xlane.f32.xlu1 %v3982_v20  ;;  %7113 = vmatpush3.bf16.msra.mxu1 %v7333_v8  ;;  %v4156_v6 = vcombine.low %v4095_v2, %v4103_v4  ;;  %s6657_s18 = sld [smem:[%s8735_s0 + %s7560_s10]]  }
0x219d   :  { %v3985_v22 = vsel %vm3379_vm13, %v3979_v21, 0.0  ;;  %7114 = vmatprep.subr.bf16.mxu1 %v7522_v7 }
0x219e   :  { %3986 = vadd.xlane.f32.xlu0 %v3985_v22  ;;  %v4164_v17 = vrot.slane %v4156_v6, %v7636_v55  ;;  %v4173_v22 = vcombine.low %v4103_v4, %v4102_v3 }
0x21a0   :  { %7115 = vmatpush3.bf16.msra.mxu1 %v7334_v40 }
0x21a1   :  { %7120 = vmatprep.subr.bf16.mxu1 %v7522_v7 }
0x2225   :  { %v3984_v23 = vpop.xlane.xlu1 %3983 }
0x2226   :  { %v3988_v24 = vmul.f32 0.03125, %v3984_v23 }
0x2227   :  { %v3987_v27 = vpop.xlane.xlu0 %3986 }
0x2228   :  { %v3990_v30 = vsub.f32 %v3978_v14, %v3988_v24  ;;  %v3989_v31 = vmul.f32 0.03125, %v3987_v27  ;;  %v4157_v14 = vcombine.low %v4102_v3, %v4095_v2  ;;  %v4180_v27 = vrot.slane %v4173_v22, %v7636_v55 }
0x222a   :  { %v3991_v36 = vsub.f32 %v3979_v21, %v3989_v31  ;;  %v3992_v37 = vmul.f32 %v3990_v30, %v3990_v30  ;;  %v4171_v20 = vrot.slane %v4157_v14, %v7636_v55 }
0x222c   :  { %v3994_v38 = vsel %vm3379_vm13, %v3992_v37, 0.0  ;;  %v3993_v39 = vmul.f32 %v3991_v36, %v3991_v36  ;;  %v4172_v21 = vcombine.low %v4164_v17, %v4171_v20 }
0x222d   :  { %3995 = vadd.xlane.f32.xlu1 %v3994_v38 }
0x222e   :  { %v3997_v5 = vsel %vm3379_vm13, %v3993_v39, 0.0 }
0x222f   :  { %3998 = vadd.xlane.f32.xlu0 %v3997_v5 }
0x22b6   :  { %v3996_v25 = vpop.xlane.xlu1 %3995 }
0x22b7   :  { %v4000_v41 = vmul.f32 0.03125, %v3996_v25 }
0x22b8   :  { %v3999_v59 = vpop.xlane.xlu0 %3998 }
0x22b9   :  { %v4002_v34 = vadd.f32 1e-05, %v4000_v41  ;;  %v4001_v12 = vmul.f32 0.03125, %v3999_v59 }
0x22bb   :  { %7475 = vrsqrt.f32 %v4002_v34  ;;  %v4003_v0 = vadd.f32 1e-05, %v4001_v12 }
0x22bd   :  { %7477 = vrsqrt.f32 %v4003_v0 }
0x22c8   :  { %v7476_v63 = vpop.eup %7475 }
0x22c9   :  { %v4006_v45 = vmul.f32 %v7476_v63, %v3990_v30 }
0x22ca   :  { %v7478_v46 = vpop.eup %7477 }
0x22cb   :  { %v4014_v56 = vmul.f32 %v6732_v43, %v4006_v45  ;;  %v4007_v49 = vmul.f32 %v7478_v46, %v3991_v36 }
0x22cd   :  { %v8319_v33 = vadd.f32 %v6733_v42, %v4014_v56  ;;  %v4015_v50 = vmul.f32 %v6732_v43, %v4007_v49 }
0x22cf   :  { %v4032_v16 = vpack.c.bf16 %v8319_v33, %v8319_v33  ;;  %v8323_v47 = vadd.f32 %v6733_v42, %v4015_v50 }
0x22d1   :  { %v4048_v51 = vrot.slane %v4032_v16, %v7592_v19  ;;  %v4033_v53 = vpack.c.bf16 %v8323_v47, %v8323_v47 }
0x22d3   :  { %v4071_v48 = vrot.slane %v4033_v53, %v7592_v19  ;;  %v4049_v54 = vcombine.high %v4048_v51, %v4048_v51  ;;  %v4056_v57 = vrot.slane %v4048_v51, %v7592_v19 }
0x22d5   :  { %v4063_v58 = vrot.slane %v4049_v54, %v7592_v19  ;;  %v4064_v60 = vcombine.high %v4056_v57, %v4056_v57  ;;  %v4072_v52 = vcombine.high %v4071_v48, %v4071_v48  ;;  %v4079_v29 = vrot.slane %v4071_v48, %v7592_v19 }
0x22d7   :  { %v4086_v61 = vrot.slane %v4072_v52, %v7592_v19  ;;  %v4087_v32 = vcombine.high %v4079_v29, %v4079_v29  ;;  %v4104_v9 = vcombine.low %v4056_v57, %v4063_v58  ;;  %v4105_v11 = vcombine.low %v4064_v60, %v4079_v29 }
0x22d9   :  { %v4106_v10 = vcombine.low %v4086_v61, %v4087_v32  ;;  %v4113_v62 = vrot.slane %v4104_v9, %v7592_v19  ;;  %v4120_v15 = vrot.slane %v4105_v11, %v7592_v19 }
0x22db   :  { %v4127_v13 = vrot.slane %v4106_v10, %v7592_v19  ;;  %v4128_v35 = vcombine.low %v4113_v62, %v4120_v15 }
0x22dd   :  { %v4135_v28 = vrot.slane %v4128_v35, %v7592_v19  ;;  %v4142_v18 = vrot.slane %v4127_v13, %v7592_v19 }
0x22df   :  { %v4143_v1 = vcombine.low %v4135_v28, %v4142_v18 }
0x22e1   :  { %7117 = vmatmul.mubr.msk.bf16.vlgmr.msra.gmra.mxu1 %vm660_vm7, %v4143_v1 }
0x22e2   :  { %7122 = vmatprep.mubr.msk.bf16.mxu1 %vm7523_vm1, %v7522_v7 }
0x23a1   :  { %v4220_v23 = vpop.f32.mrf.mxu1 }
0x23a2   :  { %v4221_v24 = vadd.f32 %v4220_v23, %v4172_v21 }
0x23a3   :  { %v7118_v30 = vpop.f32.mrf.mxu1 }
0x23a4   :  { %v4229_v31 = vcombine.high %v4221_v24, %v4221_v24  ;;  %v4236_v36 = vrot.slane %v4221_v24, %v7636_v55 }
0x23a5   :  { %v4223_v37 = vpop.f32.mrf.mxu1 }
0x23a6   :  { %v4243_v38 = vrot.slane %v4229_v31, %v7636_v55  ;;  %v4244_v39 = vcombine.high %v4236_v36, %v4236_v36  ;;  %v4224_v5 = vadd.f32 %v4223_v37, %v4180_v27 }
0x23a7   :  { %v7119_v8 = vpop.f32.mrf.mxu1 }
0x23a8   :  { %v4254_v40 = vcombine.low %v4236_v36, %v4244_v39  ;;  %v4245_v25 = vcombine.high %v4243_v38, %v4243_v38  ;;  %v4252_v41 = vrot.slane %v4224_v5, %v7636_v55  ;;  %v4268_v34 = vrot.slane %v4243_v38, %v7636_v55 }
0x23aa   :  { %v4261_v59 = vrot.slane %v4254_v40, %v7636_v55  ;;  %v4253_v12 = vcombine.high %v4252_v41, %v4252_v41  ;;  %v4270_v0 = vcombine.low %v4245_v25, %v4252_v41 }
0x23ac   :  { %v4269_v63 = vcombine.low %v4261_v59, %v4268_v34  ;;  %v4277_v43 = vrot.slane %v4270_v0, %v7636_v55  ;;  %v4284_v45 = vrot.slane %v4253_v12, %v7636_v55 }
0x23ae   :  { %v8356_v46 = vpack.c.bf16 %v4269_v63, %v4269_v63  ;;  %v4285_v42 = vcombine.low %v4277_v43, %v4284_v45 }
0x23b0   :  { %v8358_v56 = vpack.c.bf16 %v4285_v42, %v4285_v42  ;;  %4291 = vrot.lane.b32.xlu1 %v8356_v46, %s7534_s6 }
0x23b2   :  { %4340 = vrot.lane.b32.xlu0 %v8358_v56, %s7534_s6 }
0x2422   :  { %v4292_v49 = vpop.permute.xlu1 %4291 }
0x2423   :  { %v4297_v50 = vsel %vm164_vm3, %v4292_v49, 0 }
0x2424   :  { %7121 = vmatpush3.bf16.xpose.msra.mxu1 %v4297_v50  ;;  %v4341_v16 = vpop.permute.xlu0 %4340 }
0x2425   :  { %v4346_v51 = vsel %vm164_vm3, %v4341_v16, 0  ;;  %7132 = vmatprep.subr.bf16.mxu1 %v7522_v7 }
0x2426   :  { %7127 = vmatpush3.bf16.xpose.msra.mxu0 %v4346_v51 }
0x2427   :  { %7138 = vmatprep.subr.bf16.mxu0 %v7522_v7 }
0x242b   :  { %7123 = vmatmul.mubr.msk.bf16.vlgmr.msra.gmra.mxu1 %vm164_vm3, %v8356_v46 }
0x242c   :  { %7134 = vmatprep.mubr.msk.bf16.mxu1 %vm7523_vm1, %v7522_v7 }
0x242d   :  { %7129 = vmatmul.mubr.msk.bf16.vlgmr.msra.gmra.mxu0 %vm164_vm3, %v8358_v56 }
0x242e   :  { %7140 = vmatprep.mubr.msk.bf16.mxu0 %vm7523_vm1, %v7522_v7 }
0x24eb   :  { %v4333_v53 = vpop.f32.mrf.mxu1 }
0x24ec   :  { %v4388_v48 = vmul.f32 0.35355338, %v4333_v53 }
0x24ed   :  { %v7124_v54 = vpop.f32.mrf.mxu1  ;;  %v4382_v57 = vpop.f32.mrf.mxu0 }
0x24ee   :  { %v4389_v58 = vmul.f32 0.35355338, %v4382_v57  ;;  %v4390_v60 = vsel %vm1856_vm10, %v4388_v48, -inf }
0x24ef   :  { %4391 = vmax.xlane.f32.xlu1 %v4390_v60  ;;  %v4336_v52 = vpop.f32.mrf.mxu1  ;;  %v7130_v29 = vpop.f32.mrf.mxu0 }
0x24f0   :  { %v4393_v61 = vsel %vm1856_vm10, %v4389_v58, -inf }
0x24f1   :  { %v7125_v32 = vpop.f32.mrf.mxu1  ;;  %4394 = vmax.xlane.f32.xlu0 %v4393_v61  ;;  %v4385_v9 = vpop.f32.mrf.mxu0 }
0x24f3   :  { %v7131_v11 = vpop.f32.mrf.mxu0 }
0x2500   :  { %4414 = vrot.lane.b32.xlu1 %v8356_v46, %s7530_s27 }
0x2578   :  { %v4392_v10 = vpop.xlane.xlu1 %4391 }
0x2579   :  { %v4396_v62 = vsub.f32 %v4388_v48, %v4392_v10 }
0x257a   :  { %v4395_v15 = vpop.xlane.xlu0 %4394 }
0x257b   :  { %v4398_v13 = vmul.f32 1.442695, %v4396_v62  ;;  %v4397_v35 = vsub.f32 %v4389_v58, %v4395_v15 }
0x257c   :  { %v4415_v28 = vpop.permute.xlu1 %4414 }
0x257d   :  { %7479 = vpow2.f32 %v4398_v13  ;;  %v4400_v18 = vmul.f32 1.442695, %v4397_v35  ;;  %v4420_v1 = vsel %vm1887_vm11, %v4415_v28, 0 }
0x257e   :  { %7133 = vmatpush3.bf16.msra.mxu1 %v4420_v1 }
0x257f   :  { %7481 = vpow2.f32 %v4400_v18  ;;  %7144 = vmatprep.subr.bf16.mxu1 %v7522_v7 }
0x258a   :  { %v7480_v44 = vpop.eup %7479 }
0x258b   :  { %v4402_v26 = vsel %vm1856_vm10, %v7480_v44, 0.0 }
0x258c   :  { %v7482_v2 = vpop.eup %7481  ;;  %4403 = vadd.xlane.f32.xlu1 %v4402_v26 }
0x258d   :  { %v4405_v3 = vsel %vm1856_vm10, %v7482_v2, 0.0 }
0x258e   :  { %4406 = vadd.xlane.f32.xlu0 %v4405_v3 }
0x259d   :  { %4514 = vrot.lane.b32.xlu1 %v8356_v46, %s7535_s11 }
0x25a1   :  { %4564 = vrot.lane.b32.xlu1 %v8358_v56, %s7535_s11  ;;  %s6661_s11 = sld [smem:[%s8735_s0 + %s7563_s3]]  }
0x25a4   :  { %4462 = vrot.lane.b32.xlu0 %v8358_v56, %s7530_s27  ;;  %s7556_s27 = smov 21  }
0x25a5   :  { %4562 = vrot.lane.b32.xlu1 %v8358_v56, %s7536_s12 }
0x25a8   :  { %4512 = vrot.lane.b32.xlu0 %v8356_v46, %s7536_s12  ;;  %s8445_s12 = sld [smem:[%s8735_s0 + %s7556_s27]]  }
0x2615   :  { %v4404_v4 = vpop.xlane.xlu1 %4403 }
0x2616   :  { %7483 = vrcp.f32 %v4404_v4 }
0x2617   :  { %v4407_v6 = vpop.xlane.xlu0 %4406 }
0x2618   :  { %7485 = vrcp.f32 %v4407_v6 }
0x2619   :  { %v4515_v20 = vpop.permute.xlu1 %4514 }
0x261a   :  { %v4520_v31 = vsel %vm164_vm3, %v4515_v20, 0 }
0x261b   :  { %v4463_v14 = vpop.permute.xlu0 %4462 }
0x261c   :  { %v4468_v17 = vsel %vm1887_vm11, %v4463_v14, 0 }
0x261d   :  { %7139 = vmatpush3.bf16.msra.mxu0 %v4468_v17  ;;  %v4565_v30 = vpop.permute.xlu1 %4564 }
0x261e   :  { %7150 = vmatprep.subr.bf16.mxu0 %v7522_v7  ;;  %v4570_v37 = vsel %vm164_vm3, %v4565_v30, 0 }
0x261f   :  { %v4513_v38 = vpop.permute.xlu0 %4512 }
0x2621   :  { %v4563_v39 = vpop.permute.xlu1 %4562 }
0x2623   :  { %v7484_v21 = vpop.eup %7483 }
0x2624   :  { %v4410_v22 = vmul.f32 %v7484_v21, %v7480_v44 }
0x2625   :  { %v7486_v23 = vpop.eup %7485 }
0x2626   :  { %v4412_v24 = vpack.c.bf16 %v4410_v22, %v4410_v22  ;;  %v4411_v27 = vmul.f32 %v7486_v23, %v7482_v2 }
0x2628   :  { %7135 = vmatmul.mubr.msk.bf16.vlgmr.msra.gmra.mxu1 %vm1883_vm12, %v4412_v24  ;;  %v4413_v36 = vpack.c.bf16 %v4411_v27, %v4411_v27 }
0x2629   :  { %7145 = vmatpush3.bf16.xpose.msra.mxu1 %v4520_v31  ;;  %7146 = vmatprep.mubr.msk.bf16.mxu1 %vm7523_vm1, %v7522_v7 }
0x262a   :  { %7141 = vmatmul.mubr.msk.bf16.vlgmr.msra.gmra.mxu0 %vm1883_vm12, %v4413_v36  ;;  %7156 = vmatprep.subr.bf16.mxu1 %v7522_v7 }
0x262b   :  { %7151 = vmatpush3.bf16.xpose.msra.mxu0 %v4570_v37  ;;  %7152 = vmatprep.mubr.msk.bf16.mxu0 %vm7523_vm1, %v7522_v7 }
0x262c   :  { %7162 = vmatprep.subr.bf16.mxu0 %v7522_v7 }
0x2630   :  { %7147 = vmatmul.mubr.msk.bf16.vlgmr.msra.gmra.mxu1 %vm164_vm3, %v4513_v38 }
0x2631   :  { %7158 = vmatprep.mubr.msk.bf16.mxu1 %vm7523_vm1, %v7522_v7 }
0x2632   :  { %7153 = vmatmul.mubr.msk.bf16.vlgmr.msra.gmra.mxu0 %vm164_vm3, %v4563_v39 }
0x2633   :  { %7164 = vmatprep.mubr.msk.bf16.mxu0 %vm7523_vm1, %v7522_v7 }
0x26e8   :  { %v4456_v5 = vpop.f32.mrf.mxu1 }
0x26e9   :  { %v4510_v8 = vpack.c.bf16 %v4456_v5, %v4456_v5 }
0x26ea   :  { %v7136_v40 = vpop.f32.mrf.mxu1  ;;  %v4504_v25 = vpop.f32.mrf.mxu0 }
0x26eb   :  { %v4879_v41 = vrot.slane %v4510_v8, %v7592_v19  ;;  %v4511_v59 = vpack.c.bf16 %v4504_v25, %v4504_v25 }
0x26ec   :  { %v4459_v34 = vpop.f32.mrf.mxu1  ;;  %v7142_v12 = vpop.f32.mrf.mxu0 }
0x26ed   :  { %v4880_v0 = vcombine.high %v4879_v41, %v4879_v41  ;;  %v4887_v63 = vrot.slane %v4879_v41, %v7592_v19  ;;  %v4902_v43 = vrot.slane %v4511_v59, %v7592_v19  ;;  %v4024_v59 = vld [vmem:[%s8445_s12] sm:$0xf] }
0x26ee   :  { %v7137_v45 = vpop.f32.mrf.mxu1  ;;  %v4507_v42 = vpop.f32.mrf.mxu0 }
0x26ef   :  { %v4894_v49 = vrot.slane %v4880_v0, %v7592_v19  ;;  %v4895_v50 = vcombine.high %v4887_v63, %v4887_v63  ;;  %v4903_v16 = vcombine.high %v4902_v43, %v4902_v43  ;;  %v4910_v51 = vrot.slane %v4902_v43, %v7592_v19 }
0x26f0   :  { %v7143_v53 = vpop.f32.mrf.mxu0  ;;  %v4556_v48 = vpop.f32.mrf.mxu1  ;;  %v4963_v0 = vsel %vm570_vm5, %v4024_v59, 0 }
0x26f1   :  { %v4919_v54 = vcombine.low %v4887_v63, %v4894_v49  ;;  %v4917_v57 = vrot.slane %v4903_v16, %v7592_v19  ;;  %v4918_v58 = vcombine.high %v4910_v51, %v4910_v51  ;;  %v4920_v60 = vcombine.low %v4895_v50, %v4910_v51  ;;  %v4025_v49 = vld [vmem:[%s8445_s12 + $0x4] sm:$0xf] }
0x26f2   :  { %v4612_v52 = vmul.f32 0.35355338, %v4556_v48  ;;  %v7148_v29 = vpop.f32.mrf.mxu1  ;;  %v4606_v61 = vpop.f32.mrf.mxu0  ;;  %v4828_v50 = vsel %vm570_vm5, %v4025_v49, 0 }
0x26f3   :  { %v4928_v32 = vrot.slane %v4919_v54, %v7592_v19  ;;  %v4921_v9 = vcombine.low %v4917_v57, %v4918_v58  ;;  %v4935_v11 = vrot.slane %v4920_v60, %v7592_v19  ;;  %v4613_v10 = vmul.f32 0.35355338, %v4606_v61 }
0x26f4   :  { %v4614_v62 = vsel %vm1856_vm10, %v4612_v52, -inf  ;;  %v4559_v15 = vpop.f32.mrf.mxu1  ;;  %v7154_v13 = vpop.f32.mrf.mxu0 }
0x26f5   :  { %v4942_v35 = vrot.slane %v4921_v9, %v7592_v19  ;;  %v4943_v28 = vcombine.low %v4928_v32, %v4935_v11  ;;  %4615 = vmax.xlane.f32.xlu0 %v4614_v62  ;;  %v4617_v18 = vsel %vm1856_vm10, %v4613_v10, -inf }
0x26f6   :  { %v7149_v1 = vpop.f32.mrf.mxu1  ;;  %4618 = vmax.xlane.f32.xlu1 %v4617_v18  ;;  %v4609_v44 = vpop.f32.mrf.mxu0 }
0x26f7   :  { %v4950_v26 = vrot.slane %v4943_v28, %v7592_v19  ;;  %v4957_v2 = vrot.slane %v4942_v35, %v7592_v19 }
0x26f8   :  { %v7155_v3 = vpop.f32.mrf.mxu0 }
0x26f9   :  { %v4958_v4 = vcombine.low %v4950_v26, %v4957_v2 }
0x2707   :  { %4638 = vrot.lane.b32.xlu1 %v8356_v46, %s7537_s13 }
0x270b   :  { %5041 = vrot.lane.b32.xlu1 %v8356_v46, %s7538_s14 }
0x270f   :  { %5091 = vrot.lane.b32.xlu1 %v8358_v56, %s7538_s14 }
0x2713   :  { %5089 = vrot.lane.b32.xlu1 %v8358_v56, %s7539_s15 }
0x277e   :  { %v4616_v6 = vpop.xlane.xlu0 %4615 }
0x277f   :  { %v4620_v14 = vsub.f32 %v4612_v52, %v4616_v6  ;;  %v4619_v17 = vpop.xlane.xlu1 %4618 }
0x2780   :  { %v4621_v20 = vsub.f32 %v4613_v10, %v4619_v17 }
0x2781   :  { %v4622_v21 = vmul.f32 1.442695, %v4620_v14 }
0x2782   :  { %v4624_v22 = vmul.f32 1.442695, %v4621_v20 }
0x2783   :  { %7487 = vpow2.f32 %v4622_v21  ;;  %v4639_v23 = vpop.permute.xlu1 %4638 }
0x2784   :  { %v4644_v24 = vsel %vm1887_vm11, %v4639_v23, 0  ;;  %7489 = vpow2.f32 %v4624_v22 }
0x2785   :  { %7157 = vmatpush3.bf16.msra.mxu1 %v4644_v24 }
0x2786   :  { %7168 = vmatprep.subr.bf16.mxu1 %v7522_v7 }
0x2787   :  { %v5042_v63 = vpop.permute.xlu1 %5041 }
0x278b   :  { %v5092_v43 = vpop.permute.xlu1 %5091 }
0x278c   :  { %v5097_v45 = vsel %vm164_vm3, %v5092_v43, 0 }
0x278f   :  { %v5090_v42 = vpop.permute.xlu1 %5089 }
0x2790   :  { %v7488_v27 = vpop.eup %7487 }
0x2791   :  { %v4626_v30 = vsel %vm1856_vm10, %v7488_v27, 0.0  ;;  %v7490_v31 = vpop.eup %7489 }
0x2792   :  { %4627 = vadd.xlane.f32.xlu0 %v4626_v30  ;;  %v4629_v36 = vsel %vm1856_vm10, %v7490_v31, 0.0 }
0x2796   :  { %4630 = vadd.xlane.f32.xlu0 %v4629_v36 }
0x27ac   :  { %4686 = vrot.lane.b32.xlu0 %v8358_v56, %s7537_s13  ;;  %s7557_s13 = smov 22  }
0x27b0   :  { %5039 = vrot.lane.b32.xlu0 %v8356_v46, %s7539_s15 }
0x281b   :  { %v4628_v37 = vpop.xlane.xlu0 %4627 }
0x281c   :  { %7491 = vrcp.f32 %v4628_v37 }
0x281f   :  { %v4631_v38 = vpop.xlane.xlu0 %4630 }
0x2820   :  { %7493 = vrcp.f32 %v4631_v38 }
0x2823   :  { %v4687_v39 = vpop.permute.xlu0 %4686 }
0x2824   :  { %v4692_v5 = vsel %vm1887_vm11, %v4687_v39, 0 }
0x2825   :  { %7163 = vmatpush3.bf16.msra.mxu0 %v4692_v5 }
0x2826   :  { %7174 = vmatprep.subr.bf16.mxu0 %v7522_v7 }
0x2827   :  { %v5040_v39 = vpop.permute.xlu0 %5039 }
0x2829   :  { %v7492_v8 = vpop.eup %7491 }
0x282a   :  { %v4634_v40 = vmul.f32 %v7492_v8, %v7488_v27  ;;  %v5047_v27 = vsel %vm164_vm3, %v5042_v63, 0 }
0x282c   :  { %v4636_v25 = vpack.c.bf16 %v4634_v40, %v4634_v40 }
0x282d   :  { %v7494_v41 = vpop.eup %7493 }
0x282e   :  { %7159 = vmatmul.mubr.msk.bf16.vlgmr.msra.gmra.mxu1 %vm1883_vm12, %v4636_v25  ;;  %v4635_v34 = vmul.f32 %v7494_v41, %v7490_v31 }
0x282f   :  { %7170 = vmatprep.mubr.msk.bf16.mxu1 %vm7523_vm1, %v7522_v7  ;;  %7169 = vmatpush3.bf16.msra.mxu1 %v4828_v50 }
0x2830   :  { %v4637_v12 = vpack.c.bf16 %v4635_v34, %v4635_v34  ;;  %7180 = vmatprep.subr.bf16.mxu1 %v7522_v7 }
0x2832   :  { %7165 = vmatmul.mubr.msk.bf16.vlgmr.msra.gmra.mxu0 %vm1883_vm12, %v4637_v12 }
0x2833   :  { %7175 = vmatpush3.bf16.msra.mxu0 %v4963_v0  ;;  %7176 = vmatprep.mubr.msk.bf16.mxu0 %vm7523_vm1, %v7522_v7 }
0x2834   :  { %7186 = vmatprep.subr.bf16.mxu0 %v7522_v7 }
0x283a   :  { %7177 = vmatmul.mubr.msk.bf16.vlgmr.msra.gmra.mxu0 %vm164_vm3, %v4958_v4 }
0x283b   :  { %7187 = vmatpush3.bf16.xpose.msra.mxu0 %v5097_v45  ;;  %7188 = vmatprep.mubr.msk.bf16.mxu0 %vm7523_vm1, %v7522_v7 }
0x283c   :  { %7198 = vmatprep.subr.bf16.mxu0 %v7522_v7 }
0x2842   :  { %7189 = vmatmul.mubr.msk.bf16.vlgmr.msra.gmra.mxu0 %vm164_vm3, %v5090_v42 }
0x2843   :  { %7200 = vmatprep.mubr.msk.bf16.mxu0 %vm7523_vm1, %v7522_v7 }
0x28ee   :  { %v4680_v16 = vpop.f32.mrf.mxu1 }
0x28ef   :  { %v4734_v51 = vpack.c.bf16 %v4680_v16, %v4680_v16 }
0x28f0   :  { %v7160_v53 = vpop.f32.mrf.mxu1 }
0x28f1   :  { %v4744_v48 = vrot.slane %v4734_v51, %v7592_v19 }
0x28f2   :  { %v4683_v54 = vpop.f32.mrf.mxu1  ;;  %v4728_v57 = vpop.f32.mrf.mxu0 }
0x28f3   :  { %v4745_v58 = vcombine.high %v4744_v48, %v4744_v48  ;;  %v4752_v60 = vrot.slane %v4744_v48, %v7592_v19  ;;  %v4735_v52 = vpack.c.bf16 %v4728_v57, %v4728_v57 }
0x28f4   :  { %v7161_v29 = vpop.f32.mrf.mxu1  ;;  %v7166_v61 = vpop.f32.mrf.mxu0 }
0x28f5   :  { %v4759_v32 = vrot.slane %v4745_v58, %v7592_v19  ;;  %v4767_v9 = vrot.slane %v4735_v52, %v7592_v19  ;;  %v4760_v10 = vcombine.high %v4752_v60, %v4752_v60 }
0x28f6   :  { %v4731_v11 = vpop.f32.mrf.mxu0 }
0x28f7   :  { %v4784_v62 = vcombine.low %v4752_v60, %v4759_v32  ;;  %v4768_v15 = vcombine.high %v4767_v9, %v4767_v9  ;;  %v4775_v13 = vrot.slane %v4767_v9, %v7592_v19 }
0x28f8   :  { %v7167_v35 = vpop.f32.mrf.mxu0 }
0x28f9   :  { %v4782_v28 = vrot.slane %v4768_v15, %v7592_v19  ;;  %v4783_v18 = vcombine.high %v4775_v13, %v4775_v13  ;;  %v4785_v1 = vcombine.low %v4760_v10, %v4775_v13  ;;  %v4793_v26 = vrot.slane %v4784_v62, %v7592_v19 }
0x28fa   :  { %v8474_v44 = vpop.f32.mrf.mxu0 }
0x28fb   :  { %v4786_v2 = vcombine.low %v4782_v28, %v4783_v18  ;;  %v4800_v3 = vrot.slane %v4785_v1, %v7592_v19  ;;  %v4026_v18 = vld [vmem:[%s8445_s12 + $0x8] sm:$0xf] }
0x28fc   :  { %v7178_v4 = vpop.f32.mrf.mxu0  ;;  %v5355_v1 = vsel %vm570_vm5, %v4026_v18, 0 }
0x28fd   :  { %v4807_v6 = vrot.slane %v4786_v2, %v7592_v19  ;;  %v4808_v14 = vcombine.low %v4793_v26, %v4800_v3 }
0x28fe   :  { %v8479_v17 = vpop.f32.mrf.mxu0 }
0x28ff   :  { %v4815_v20 = vrot.slane %v4808_v14, %v7592_v19  ;;  %v4822_v21 = vrot.slane %v4807_v6, %v7592_v19 }
0x2900   :  { %v7179_v22 = vpop.f32.mrf.mxu0 }
0x2901   :  { %v4823_v23 = vcombine.low %v4815_v20, %v4822_v21 }
0x2902   :  { %v5133_v24 = vpop.f32.mrf.mxu0 }
0x2903   :  { %v5140_v30 = vmul.f32 0.35355338, %v5133_v24  ;;  %7171 = vmatmul.mubr.msk.bf16.vlgmr.msra.gmra.mxu1 %vm164_vm3, %v4823_v23 }
0x2904   :  { %7181 = vmatpush3.bf16.xpose.msra.mxu1 %v5047_v27  ;;  %v7190_v31 = vpop.f32.mrf.mxu0  ;;  %7182 = vmatprep.mubr.msk.bf16.mxu1 %vm7523_vm1, %v7522_v7 }
0x2905   :  { %v5144_v36 = vsel %vm1856_vm10, %v5140_v30, -inf  ;;  %7192 = vmatprep.subr.bf16.mxu1 %v7522_v7 }
0x2906   :  { %5145 = vmax.xlane.f32.xlu1 %v5144_v36  ;;  %v5136_v37 = vpop.f32.mrf.mxu0 }
0x2908   :  { %v7191_v38 = vpop.f32.mrf.mxu0 }
0x290b   :  { %7183 = vmatmul.mubr.msk.bf16.vlgmr.msra.gmra.mxu1 %vm164_vm3, %v5040_v39 }
0x290c   :  { %7194 = vmatprep.mubr.msk.bf16.mxu1 %vm7523_vm1, %v7522_v7 }
0x2917   :  { %5165 = vrot.lane.b32.xlu1 %v8356_v46, %s7541_s20 }
0x291b   :  { %5439 = vrot.lane.b32.xlu1 %v8356_v46, %s7542_s21 }
0x291f   :  { %5489 = vrot.lane.b32.xlu1 %v8358_v56, %s7542_s21  ;;  %s7558_s21 = smov 25  }
0x2920   :  { %s6658_s4 = sld [smem:[%s8735_s0 + %s7558_s21]]  }
0x2923   :  { %5487 = vrot.lane.b32.xlu1 %v8358_v56, %s7543_s22 }
0x298f   :  { %v5146_v5 = vpop.xlane.xlu1 %5145 }
0x2990   :  { %v5148_v25 = vsub.f32 %v5140_v30, %v5146_v5 }
0x2992   :  { %v5151_v41 = vmul.f32 1.442695, %v5148_v25 }
0x2993   :  { %v5166_v8 = vpop.permute.xlu1 %5165 }
0x2994   :  { %v5171_v40 = vsel %vm1887_vm11, %v5166_v8, 0  ;;  %7495 = vpow2.f32 %v5151_v41 }
0x2995   :  { %7193 = vmatpush3.bf16.msra.mxu1 %v5171_v40 }
0x2996   :  { %7204 = vmatprep.subr.bf16.mxu1 %v7522_v7 }
0x2997   :  { %v5440_v11 = vpop.permute.xlu1 %5439 }
0x2998   :  { %v5445_v62 = vsel %vm164_vm3, %v5440_v11, 0 }
0x29a1   :  { %v7496_v49 = vpop.eup %7495 }
0x29a2   :  { %v5156_v51 = vsel %vm1856_vm10, %v7496_v49, 0.0 }
0x29c3   :  { %v8502_v59 = vpop.f32.mrf.mxu1 }
0x29c4   :  { %v5000_v11 = vadd.f32 %v8474_v44, %v8502_v59 }
0x29c5   :  { %v7172_v34 = vpop.f32.mrf.mxu1 }
0x29c7   :  { %v8504_v12 = vpop.f32.mrf.mxu1 }
0x29c9   :  { %v7173_v0 = vpop.f32.mrf.mxu1 }
0x29cb   :  { %v5083_v63 = vpop.f32.mrf.mxu1 }
0x29cc   :  { %v5139_v43 = vmul.f32 0.35355338, %v5083_v63 }
0x29cd   :  { %v7184_v45 = vpop.f32.mrf.mxu1 }
0x29ce   :  { %v5141_v42 = vsel %vm1856_vm10, %v5139_v43, -inf }
0x29cf   :  { %5142 = vmax.xlane.f32.xlu0 %v5141_v42  ;;  %v5086_v50 = vpop.f32.mrf.mxu1 }
0x29d1   :  { %v7185_v16 = vpop.f32.mrf.mxu1 }
0x29d3   :  { %5157 = vadd.xlane.f32.xlu0 %v5156_v51 }
0x2a58   :  { %v5143_v53 = vpop.xlane.xlu0 %5142 }
0x2a59   :  { %v5147_v48 = vsub.f32 %v5139_v43, %v5143_v53 }
0x2a5b   :  { %v5149_v54 = vmul.f32 1.442695, %v5147_v48 }
0x2a5c   :  { %v5158_v60 = vpop.xlane.xlu0 %5157 }
0x2a5d   :  { %7497 = vpow2.f32 %v5149_v54  ;;  %v5490_v54 = vpop.permute.xlu1 %5489 }
0x2a5e   :  { %7499 = vrcp.f32 %v5158_v60 }
0x2a61   :  { %v5488_v60 = vpop.permute.xlu1 %5487 }
0x2a6a   :  { %v7498_v57 = vpop.eup %7497 }
0x2a6b   :  { %v5153_v58 = vsel %vm1856_vm10, %v7498_v57, 0.0  ;;  %v7500_v52 = vpop.eup %7499 }
0x2a6c   :  { %5154 = vadd.xlane.f32.xlu0 %v5153_v58  ;;  %v5162_v61 = vmul.f32 %v7500_v52, %v7496_v49  ;;  %v5495_v58 = vsel %vm164_vm3, %v5490_v54, 0 }
0x2a6e   :  { %v5164_v10 = vpack.c.bf16 %v5162_v61, %v5162_v61 }
0x2a82   :  { %5213 = vrot.lane.b32.xlu0 %v8358_v56, %s7541_s20  ;;  %s6655_s20 = sld [smem:[%s8735_s0 + %s7557_s13]]  }
0x2a86   :  { %5437 = vrot.lane.b32.xlu0 %v8356_v46, %s7543_s22  ;;  %s6665_s22 = sld [smem:[%s8735_s0 + %s7531_s28]]  }
0x2a87   :  { %s6663_s28 = sld [smem:[%s8735_s0 + %s7566_s8]]  }
0x2af5   :  { %v5155_v29 = vpop.xlane.xlu0 %5154 }
0x2af6   :  { %7501 = vrcp.f32 %v5155_v29 }
0x2af9   :  { %v5214_v32 = vpop.permute.xlu0 %5213 }
0x2afa   :  { %v5219_v9 = vsel %vm1887_vm11, %v5214_v32, 0 }
0x2afb   :  { %7199 = vmatpush3.bf16.msra.mxu0 %v5219_v9 }
0x2afc   :  { %7210 = vmatprep.subr.bf16.mxu0 %v7522_v7 }
0x2afd   :  { %v5438_v35 = vpop.permute.xlu0 %5437 }
0x2afe   :  { %7201 = vmatmul.mubr.msk.bf16.vlgmr.msra.gmra.mxu0 %vm1883_vm12, %v5164_v10  ;;  %v5008_v10 = vcombine.high %v5000_v11, %v5000_v11 }
0x2aff   :  { %7211 = vmatpush3.bf16.xpose.msra.mxu0 %v5445_v62  ;;  %7212 = vmatprep.mubr.msk.bf16.mxu0 %vm7523_vm1, %v7522_v7  ;;  %v5015_v62 = vrot.slane %v5000_v11, %v7636_v55 }
0x2b00   :  { %7222 = vmatprep.subr.bf16.mxu0 %v7522_v7 }
0x2b03   :  { %v7502_v15 = vpop.eup %7501 }
0x2b04   :  { %v5161_v13 = vmul.f32 %v7502_v15, %v7498_v57  ;;  %v5003_v15 = vadd.f32 %v8479_v17, %v8504_v12 }
0x2b06   :  { %7213 = vmatmul.mubr.msk.bf16.vlgmr.msra.gmra.mxu0 %vm164_vm3, %v5438_v35  ;;  %v5163_v28 = vpack.c.bf16 %v5161_v13, %v5161_v13  ;;  %v5022_v13 = vrot.slane %v5008_v10, %v7636_v55 }
0x2b07   :  { %7224 = vmatprep.mubr.msk.bf16.mxu0 %vm7523_vm1, %v7522_v7 }
0x2b08   :  { %7195 = vmatmul.mubr.msk.bf16.vlgmr.msra.gmra.mxu1 %vm1883_vm12, %v5163_v28  ;;  %v5024_v59 = vcombine.high %v5022_v13, %v5022_v13 }
0x2b09   :  { %7206 = vmatprep.mubr.msk.bf16.mxu1 %vm7523_vm1, %v7522_v7  ;;  %7205 = vmatpush3.bf16.msra.mxu1 %v5355_v1  ;;  %v5023_v1 = vcombine.high %v5015_v62, %v5015_v62 }
0x2b0a   :  { %7216 = vmatprep.subr.bf16.mxu1 %v7522_v7 }
0x2bbe   :  { %v5255_v26 = vpop.f32.mrf.mxu0 }
0x2bbf   :  { %v5262_v2 = vpack.c.bf16 %v5255_v26, %v5255_v26 }
0x2bc0   :  { %v7202_v3 = vpop.f32.mrf.mxu0 }
0x2bc1   :  { %v5294_v6 = vrot.slane %v5262_v2, %v7592_v19  ;;  %v5031_v2 = vrot.slane %v5003_v15, %v7636_v55 }
0x2bc2   :  { %v5258_v4 = vpop.f32.mrf.mxu0 }
0x2bc3   :  { %v5295_v21 = vcombine.high %v5294_v6, %v5294_v6  ;;  %v5302_v22 = vrot.slane %v5294_v6, %v7592_v19 }
0x2bc4   :  { %v7203_v14 = vpop.f32.mrf.mxu0 }
0x2bc5   :  { %v5309_v38 = vrot.slane %v5295_v21, %v7592_v19  ;;  %v5310_v39 = vcombine.high %v5302_v22, %v5302_v22 }
0x2bc6   :  { %v5481_v20 = vpop.f32.mrf.mxu0 }
0x2bc7   :  { %v5537_v23 = vmul.f32 0.35355338, %v5481_v20  ;;  %v5313_v0 = vcombine.low %v5309_v38, %v5310_v39 }
0x2bc8   :  { %v5207_v24 = vpop.f32.mrf.mxu1  ;;  %v7214_v27 = vpop.f32.mrf.mxu0 }
0x2bc9   :  { %v5261_v30 = vpack.c.bf16 %v5207_v24, %v5207_v24  ;;  %v5539_v31 = vsel %vm1856_vm10, %v5537_v23, -inf  ;;  %v5334_v49 = vrot.slane %v5313_v0, %v7592_v19 }
0x2bca   :  { %v7196_v36 = vpop.f32.mrf.mxu1  ;;  %5540 = vmax.xlane.f32.xlu0 %v5539_v31  ;;  %v5484_v37 = vpop.f32.mrf.mxu0 }
0x2bcb   :  { %v5271_v5 = vrot.slane %v5261_v30, %v7592_v19  ;;  %v5349_v53 = vrot.slane %v5334_v49, %v7592_v19 }
0x2bcc   :  { %v5210_v8 = vpop.f32.mrf.mxu1  ;;  %v7215_v40 = vpop.f32.mrf.mxu0 }
0x2bcd   :  { %v5272_v25 = vcombine.high %v5271_v5, %v5271_v5  ;;  %v5279_v41 = vrot.slane %v5271_v5, %v7592_v19 }
0x2bce   :  { %v7197_v34 = vpop.f32.mrf.mxu1 }
0x2bcf   :  { %v5286_v63 = vrot.slane %v5272_v25, %v7592_v19  ;;  %v5287_v43 = vcombine.high %v5279_v41, %v5279_v41 }
0x2bd1   :  { %v5311_v45 = vcombine.low %v5279_v41, %v5286_v63  ;;  %v5312_v42 = vcombine.low %v5287_v43, %v5302_v22  ;;  %v5032_v22 = vcombine.high %v5031_v2, %v5031_v2 }
0x2bd3   :  { %v5320_v50 = vrot.slane %v5311_v45, %v7592_v19  ;;  %v5327_v16 = vrot.slane %v5312_v42, %v7592_v19 }
0x2bd5   :  { %v5335_v51 = vcombine.low %v5320_v50, %v5327_v16 }
0x2bd7   :  { %v5342_v48 = vrot.slane %v5335_v51, %v7592_v19 }
0x2bd9   :  { %v5350_v57 = vcombine.low %v5342_v48, %v5349_v53 }
0x2bdb   :  { %7207 = vmatmul.mubr.msk.bf16.vlgmr.msra.gmra.mxu1 %vm164_vm3, %v5350_v57 }
0x2bdc   :  { %7217 = vmatpush3.bf16.xpose.msra.mxu1 %v5495_v58  ;;  %7218 = vmatprep.mubr.msk.bf16.mxu1 %vm7523_vm1, %v7522_v7 }
0x2bdd   :  { %7228 = vmatprep.subr.bf16.mxu1 %v7522_v7 }
0x2be3   :  { %7219 = vmatmul.mubr.msk.bf16.vlgmr.msra.gmra.mxu1 %vm164_vm3, %v5488_v60  ;;  %v4027_v60 = vld [vmem:[%s8445_s12 + $0xc] sm:$0xf]  ;;  %s7564_s12 = smov 31  }
0x2be4   :  { %7230 = vmatprep.mubr.msk.bf16.mxu1 %vm7523_vm1, %v7522_v7  ;;  %s6664_s15 = sld [smem:[%s8735_s0 + %s7564_s12]]  }
0x2c53   :  { %v5541_v52 = vpop.xlane.xlu0 %5540 }
0x2c54   :  { %v5545_v29 = vsub.f32 %v5537_v23, %v5541_v52  ;;  %v5753_v52 = vsel %vm570_vm5, %v4027_v60, 0 }
0x2c56   :  { %v5547_v61 = vmul.f32 1.442695, %v5545_v29 }
0x2c58   :  { %7503 = vpow2.f32 %v5547_v61 }
0x2c65   :  { %v7504_v32 = vpop.eup %7503 }
0x2c66   :  { %v5551_v9 = vsel %vm1856_vm10, %v7504_v32, 0.0 }
0x2c67   :  { %5552 = vadd.xlane.f32.xlu0 %v5551_v9 }
0x2c9b   :  { %v5391_v35 = vpop.f32.mrf.mxu1 }
0x2c9c   :  { %v5400_v28 = vcombine.high %v5391_v35, %v5391_v35  ;;  %v5407_v18 = vrot.slane %v5391_v35, %v7636_v55 }
0x2c9d   :  { %v7208_v26 = vpop.f32.mrf.mxu1 }
0x2c9e   :  { %v5414_v3 = vrot.slane %v5400_v28, %v7636_v55  ;;  %v5415_v4 = vcombine.high %v5407_v18, %v5407_v18  ;;  %v8559_v44 = vadd.f32 %v5407_v18, %v5015_v62 }
0x2c9f   :  { %v5394_v6 = vpop.f32.mrf.mxu1 }
0x2ca0   :  { %v5416_v14 = vcombine.high %v5414_v3, %v5414_v3  ;;  %v8561_v20 = vadd.f32 %v5415_v4, %v5023_v1  ;;  %v8563_v17 = vadd.f32 %v5414_v3, %v5022_v13  ;;  %v5423_v12 = vrot.slane %v5394_v6, %v7636_v55 }
0x2ca1   :  { %v7209_v21 = vpop.f32.mrf.mxu1 }
0x2ca2   :  { %v8566_v23 = vadd.f32 %v5416_v14, %v5024_v59  ;;  %v5424_v24 = vcombine.high %v5423_v12, %v5423_v12  ;;  %v8568_v27 = vadd.f32 %v5423_v12, %v5031_v2 }
0x2ca3   :  { %v5531_v30 = vpop.f32.mrf.mxu1 }
0x2ca4   :  { %v8570_v31 = vadd.f32 %v5424_v24, %v5032_v22  ;;  %v5538_v36 = vmul.f32 0.35355338, %v5531_v30 }
0x2ca5   :  { %v7220_v37 = vpop.f32.mrf.mxu1 }
0x2ca6   :  { %v5542_v38 = vsel %vm1856_vm10, %v5538_v36, -inf  ;;  %v6758_v37 = vld [vmem:[%s6655_s20] ss:$0 sm:$0xff] }
0x2ca7   :  { %5543 = vmax.xlane.f32.xlu1 %v5542_v38  ;;  %v5534_v39 = vpop.f32.mrf.mxu1  ;;  %v5841_v38 = vcombine.high %v6758_v37, %v6758_v37 }
0x2ca8   :  { %v5848_v39 = vrot.slane %v6758_v37, %v7636_v55  ;;  %v6760_v37 = vld [vmem:[%s6657_s18] ss:$0 sm:$0xff] }
0x2ca9   :  { %v7221_v5 = vpop.f32.mrf.mxu1 }
0x2cb8   :  { %5563 = vrot.lane.b32.xlu1 %v8356_v46, %s7544_s23 }
0x2cf0   :  { %v5553_v8 = vpop.xlane.xlu0 %5552 }
0x2cf1   :  { %7505 = vrcp.f32 %v5553_v8 }
0x2cfe   :  { %v7506_v40 = vpop.eup %7505 }
0x2cff   :  { %v5559_v0 = vmul.f32 %v7506_v40, %v7504_v32 }
0x2d01   :  { %v5561_v45 = vpack.c.bf16 %v5559_v0, %v5559_v0 }
0x2d30   :  { %v5544_v25 = vpop.xlane.xlu1 %5543 }
0x2d31   :  { %v5546_v41 = vsub.f32 %v5538_v36, %v5544_v25  ;;  %v5855_v25 = vrot.slane %v5841_v38, %v7636_v55 }
0x2d33   :  { %v5549_v34 = vmul.f32 1.442695, %v5546_v41 }
0x2d34   :  { %v5564_v63 = vpop.permute.xlu1 %5563 }
0x2d35   :  { %7507 = vpow2.f32 %v5549_v34  ;;  %v5569_v43 = vsel %vm1887_vm11, %v5564_v63, 0 }
0x2d36   :  { %7223 = vmatpush3.bf16.msra.mxu0 %v5569_v43  ;;  %v5856_v43 = vcombine.high %v5848_v39, %v5848_v39 }
0x2d37   :  { %7234 = vmatprep.subr.bf16.mxu0 %v7522_v7 }
0x2d39   :  { %7225 = vmatmul.mubr.msk.bf16.vlgmr.msra.gmra.mxu0 %vm1883_vm12, %v5561_v45 }
0x2d3a   :  { %7236 = vmatprep.mubr.msk.bf16.mxu0 %vm7523_vm1, %v7522_v7  ;;  %7235 = vmatpush3.bf16.msra.mxu0 %v5753_v52 }
0x2d3b   :  { %7248 = vmatprep.subr.bf16.mxu0 %v7522_v7 }
0x2d42   :  { %v7508_v46 = vpop.eup %7507 }
0x2d43   :  { %v5554_v42 = vsel %vm1856_vm10, %v7508_v46, 0.0 }
0x2d44   :  { %5555 = vadd.xlane.f32.xlu0 %v5554_v42 }
0x2d5a   :  { %5611 = vrot.lane.b32.xlu0 %v8358_v56, %s7544_s23  ;;  %s7565_s23 = smov 29  }
0x2d5b   :  { %s6662_s7 = sld [smem:[%s8735_s0 + %s7565_s23]]  }
0x2dcd   :  { %v5556_v49 = vpop.xlane.xlu0 %5555 }
0x2dce   :  { %7509 = vrcp.f32 %v5556_v49 }
0x2dd1   :  { %v5612_v50 = vpop.permute.xlu0 %5611 }
0x2dd2   :  { %v5617_v16 = vsel %vm1887_vm11, %v5612_v50, 0 }
0x2dd3   :  { %7229 = vmatpush3.bf16.msra.mxu1 %v5617_v16 }
0x2dd4   :  { %7240 = vmatprep.subr.bf16.mxu1 %v7522_v7 }
0x2ddb   :  { %v7510_v51 = vpop.eup %7509 }
0x2ddc   :  { %v5560_v53 = vmul.f32 %v7510_v51, %v7508_v46 }
0x2dde   :  { %v5562_v48 = vpack.c.bf16 %v5560_v53, %v5560_v53 }
0x2de0   :  { %7231 = vmatmul.mubr.msk.bf16.vlgmr.msra.gmra.mxu1 %vm1883_vm12, %v5562_v48 }
0x2de1   :  { %7244 = vmatprep.mubr.msk.bf16.mxu1 %vm7523_vm1, %v7522_v7 }
0x2df9   :  { %v5605_v54 = vpop.f32.mrf.mxu0 }
0x2dfa   :  { %v5659_v29 = vpack.c.bf16 %v5605_v54, %v5605_v54 }
0x2dfb   :  { %v7226_v57 = vpop.f32.mrf.mxu0 }
0x2dfc   :  { %v5669_v61 = vrot.slane %v5659_v29, %v7592_v19 }
0x2dfd   :  { %v5608_v56 = vpop.f32.mrf.mxu0 }
0x2dfe   :  { %v5670_v32 = vcombine.high %v5669_v61, %v5669_v61  ;;  %v5677_v11 = vrot.slane %v5669_v61, %v7592_v19 }
0x2dff   :  { %v7227_v58 = vpop.f32.mrf.mxu0 }
0x2e00   :  { %v5684_v10 = vrot.slane %v5670_v32, %v7592_v19  ;;  %v5685_v28 = vcombine.high %v5677_v11, %v5677_v11 }
0x2e02   :  { %v5709_v18 = vcombine.low %v5677_v11, %v5684_v10 }
0x2e04   :  { %v5718_v6 = vrot.slane %v5709_v18, %v7592_v19 }
0x2ea0   :  { %v5653_v9 = vpop.f32.mrf.mxu1 }
0x2ea1   :  { %v5660_v62 = vpack.c.bf16 %v5653_v9, %v5653_v9 }
0x2ea2   :  { %v7232_v15 = vpop.f32.mrf.mxu1 }
0x2ea3   :  { %v5692_v13 = vrot.slane %v5660_v62, %v7592_v19 }
0x2ea4   :  { %v5656_v35 = vpop.f32.mrf.mxu1 }
0x2ea5   :  { %v5693_v1 = vcombine.high %v5692_v13, %v5692_v13  ;;  %v5700_v26 = vrot.slane %v5692_v13, %v7592_v19 }
0x2ea6   :  { %v7233_v2 = vpop.f32.mrf.mxu1 }
0x2ea7   :  { %v5707_v3 = vrot.slane %v5693_v1, %v7592_v19  ;;  %v5708_v4 = vcombine.high %v5700_v26, %v5700_v26  ;;  %v5710_v59 = vcombine.low %v5685_v28, %v5700_v26 }
0x2ea9   :  { %v5711_v14 = vcombine.low %v5707_v3, %v5708_v4  ;;  %v5725_v12 = vrot.slane %v5710_v59, %v7592_v19  ;;  %v7336_v4 = vld [vmem:[%s6658_s4] sm:$0xff]  }
0x2eab   :  { %v5732_v21 = vrot.slane %v5711_v14, %v7592_v19  ;;  %v5733_v22 = vcombine.low %v5718_v6, %v5725_v12 }
0x2ead   :  { %v5740_v24 = vrot.slane %v5733_v22, %v7592_v19  ;;  %v5747_v30 = vrot.slane %v5732_v21, %v7592_v19 }
0x2eaf   :  { %v5748_v36 = vcombine.low %v5740_v24, %v5747_v30  ;;  %v6759_v30 = vld [vmem:[%s6656_s9] ss:$0 sm:$0xff] }
0x2eb1   :  { %7237 = vmatmul.mubr.msk.bf16.vlgmr.msra.gmra.mxu0 %vm164_vm3, %v5748_v36 }
0x2eb2   :  { %7256 = vmatprep.mubr.msk.bf16.mxu0 %vm7523_vm1, %v7522_v7 }
0x2f71   :  { %v5789_v5 = vpop.f32.mrf.mxu0 }
0x2f72   :  { %v5798_v8 = vcombine.high %v5789_v5, %v5789_v5  ;;  %v5805_v40 = vrot.slane %v5789_v5, %v7636_v55 }
0x2f73   :  { %v7238_v41 = vpop.f32.mrf.mxu0 }
0x2f74   :  { %v5812_v34 = vrot.slane %v5798_v8, %v7636_v55  ;;  %v5813_v0 = vcombine.high %v5805_v40, %v5805_v40  ;;  %v5829_v63 = vadd.f32 %v5805_v40, %v8559_v44 }
0x2f75   :  { %v5792_v45 = vpop.f32.mrf.mxu0 }
0x2f76   :  { %v5814_v46 = vcombine.high %v5812_v34, %v5812_v34  ;;  %v5830_v42 = vadd.f32 %v5813_v0, %v8561_v20  ;;  %v5831_v49 = vadd.f32 %v5812_v34, %v8563_v17  ;;  %v5821_v50 = vrot.slane %v5792_v45, %v7636_v55 }
0x2f77   :  { %v7239_v16 = vpop.f32.mrf.mxu0  ;;  %v5860_v53 = vadd.f32 %v5848_v39, %v5829_v63 }
0x2f78   :  { %v5832_v51 = vadd.f32 %v5814_v46, %v8566_v23  ;;  %v5862_v48 = vadd.f32 %v5855_v25, %v5831_v49  ;;  %v5861_v54 = vadd.f32 %v5856_v43, %v5830_v42  ;;  %v5822_v57 = vcombine.high %v5821_v50, %v5821_v50 }
0x2f79   :  { %v5833_v56 = vadd.f32 %v5821_v50, %v8568_v27 }
0x2f7a   :  { %v5863_v58 = vadd.f32 %v5848_v39, %v5832_v51  ;;  %v5872_v44 = vcombine.low %v5860_v53, %v5861_v54  ;;  %v5834_v60 = vadd.f32 %v5822_v57, %v8570_v31  ;;  %v5886_v17 = vrot.slane %v5862_v48, %v7636_v55 }
0x2f7b   :  { %v5864_v52 = vadd.f32 %v5856_v43, %v5833_v56 }
0x2f7c   :  { %v5879_v20 = vrot.slane %v5872_v44, %v7636_v55  ;;  %v5865_v29 = vadd.f32 %v5855_v25, %v5834_v60 }
0x2f7d   :  { %v5888_v61 = vcombine.low %v5863_v58, %v5864_v52 }
0x2f7e   :  { %v5887_v32 = vcombine.low %v5879_v20, %v5886_v17  ;;  %v5902_v9 = vrot.slane %v5865_v29, %v7636_v55  ;;  %v7337_v17 = vld [vmem:[%s6660_s26 + $0x18] sm:$0xff]   ;;  %v7338_v29 = vld [vmem:[%s6660_s26 + $0x10] sm:$0xff]  }
0x2f7f   :  { %v5895_v23 = vrot.slane %v5888_v61, %v7636_v55  ;;  %7249 = vmatpush3.bf16.msra.mxu0 %v7337_v17  ;;  %v7339_v61 = vld [vmem:[%s6660_s26 + $0x8] sm:$0xff]  }
0x2f80   :  { %v5906_v11 = vadd.f32 %v5887_v32, %v8319_v33  ;;  %7250 = vmatprep.subr.bf16.mxu0 %v7522_v7  ;;  %v7340_v32 = vld [vmem:[%s6660_s26] sm:$0xff]  }
0x2f81   :  { %v5903_v10 = vcombine.low %v5895_v23, %v5902_v9  ;;  %v6761_v23 = vld [vmem:[%s6659_s2] ss:$0 sm:$0xff] }
0x2f82   :  { %v5910_v27 = vsel %vm3379_vm13, %v5906_v11, 0.0  ;;  %v6012_v9 = vcombine.high %v6761_v23, %v6761_v23 }
0x2f83   :  { %5911 = vadd.xlane.f32.xlu1 %v5910_v27  ;;  %v5907_v31 = vadd.f32 %v5903_v10, %v8323_v47  ;;  %v7335_v47 = vld [vmem:[%s6658_s4 + $0x8] sm:$0xff]   ;;  %7251 = vmatpush3.bf16.msra.mxu0 %v7338_v29 }
0x2f84   :  { %7241 = vmatpush3.bf16.msra.mxu1 %v7335_v47  ;;  %7252 = vmatprep.subr.bf16.mxu0 %v7522_v7  ;;  %v6026_v10 = vrot.slane %v6012_v9, %v7636_v55 }
0x2f85   :  { %v5913_v62 = vsel %vm3379_vm13, %v5907_v31, 0.0  ;;  %7242 = vmatprep.subr.bf16.mxu1 %v7522_v7 }
0x2f86   :  { %5914 = vadd.xlane.f32.xlu0 %v5913_v62 }
0x2f87   :  { %7253 = vmatpush3.bf16.msra.mxu0 %v7339_v61 }
0x2f88   :  { %7243 = vmatpush3.bf16.msra.mxu1 %v7336_v4  ;;  %7254 = vmatprep.subr.bf16.mxu0 %v7522_v7 }
0x2f89   :  { %7260 = vmatprep.subr.bf16.mxu1 %v7522_v7 }
0x2f8b   :  { %7255 = vmatpush3.bf16.msra.mxu0 %v7340_v32 }
0x300c   :  { %v5912_v15 = vpop.xlane.xlu1 %5911 }
0x300d   :  { %v5916_v13 = vmul.f32 0.03125, %v5912_v15 }
0x300f   :  { %v5918_v35 = vsub.f32 %v5906_v11, %v5916_v13  ;;  %v5915_v28 = vpop.xlane.xlu0 %5914  ;;  %v6019_v11 = vrot.slane %v6761_v23, %v7636_v55 }
0x3010   :  { %v5917_v18 = vmul.f32 0.03125, %v5915_v28 }
0x3011   :  { %v5920_v1 = vmul.f32 %v5918_v35, %v5918_v35  ;;  %v6027_v27 = vcombine.high %v6019_v11, %v6019_v11  ;;  %v6081_v62 = vcombine.low %v6026_v10, %v6019_v11 }
0x3012   :  { %v5919_v26 = vsub.f32 %v5907_v31, %v5917_v18 }
0x3013   :  { %v5922_v2 = vsel %vm3379_vm13, %v5920_v1, 0.0  ;;  %v6080_v31 = vcombine.low %v6019_v11, %v6027_v27  ;;  %v6095_v13 = vrot.slane %v6081_v62, %v7636_v55  ;;  %v6097_v28 = vcombine.low %v6027_v27, %v6026_v10  ;;  %v6765_v11 = vld [vmem:[%s6661_s11] ss:$0 sm:$0xff] }
0x3014   :  { %5923 = vadd.xlane.f32.xlu1 %v5922_v2  ;;  %v5921_v33 = vmul.f32 %v5919_v26, %v5919_v26  ;;  %v6294_v10 = vcombine.high %v6765_v11, %v6765_v11  ;;  %v6301_v27 = vrot.slane %v6765_v11, %v7636_v55 }
0x3015   :  { %v6088_v15 = vrot.slane %v6080_v31, %v7636_v55 }
0x3016   :  { %v5925_v3 = vsel %vm3379_vm13, %v5921_v33, 0.0  ;;  %v6308_v31 = vrot.slane %v6294_v10, %v7636_v55  ;;  %v6309_v62 = vcombine.high %v6301_v27, %v6301_v27 }
0x3017   :  { %5926 = vadd.xlane.f32.xlu0 %v5925_v3 }
0x309d   :  { %v5924_v59 = vpop.xlane.xlu1 %5923 }
0x309e   :  { %v5928_v6 = vmul.f32 0.03125, %v5924_v59 }
0x30a0   :  { %v5930_v14 = vadd.f32 1e-05, %v5928_v6  ;;  %v5927_v12 = vpop.xlane.xlu0 %5926 }
0x30a1   :  { %v5929_v21 = vmul.f32 0.03125, %v5927_v12 }
0x30a2   :  { %7511 = vrsqrt.f32 %v5930_v14 }
0x30a3   :  { %v5931_v22 = vadd.f32 1e-05, %v5929_v21 }
0x30a5   :  { %7513 = vrsqrt.f32 %v5931_v22 }
0x30af   :  { %v7512_v24 = vpop.eup %7511 }
0x30b0   :  { %v5934_v36 = vmul.f32 %v7512_v24, %v5918_v35  ;;  %v6096_v35 = vcombine.low %v6088_v15, %v6095_v13  ;;  %v6374_v15 = vcombine.low %v6301_v27, %v6309_v62  ;;  %v6375_v13 = vcombine.low %v6308_v31, %v6301_v27 }
0x30b2   :  { %v7514_v38 = vpop.eup %7513  ;;  %v5942_v39 = vmul.f32 %v6759_v30, %v5934_v36 }
0x30b3   :  { %v5935_v5 = vmul.f32 %v7514_v38, %v5919_v26  ;;  %v6104_v26 = vrot.slane %v6097_v28, %v7636_v55 }
0x30b4   :  { %v8640_v8 = vadd.f32 %v6760_v37, %v5942_v39 }
0x30b5   :  { %v5943_v40 = vmul.f32 %v6759_v30, %v5935_v5 }
0x30b6   :  { %v5956_v25 = vpack.c.bf16 %v8640_v8, %v8640_v8 }
0x30b7   :  { %v8644_v41 = vadd.f32 %v6760_v37, %v5943_v40 }
0x30b8   :  { %v5972_v34 = vrot.slane %v5956_v25, %v7592_v19 }
0x30b9   :  { %v5957_v0 = vpack.c.bf16 %v8644_v41, %v8644_v41 }
0x30ba   :  { %v5973_v63 = vcombine.high %v5972_v34, %v5972_v34  ;;  %v5980_v43 = vrot.slane %v5972_v34, %v7592_v19 }
0x30bb   :  { %v5995_v45 = vrot.slane %v5957_v0, %v7592_v19 }
0x30bc   :  { %v5987_v46 = vrot.slane %v5973_v63, %v7592_v19  ;;  %v5988_v42 = vcombine.high %v5980_v43, %v5980_v43 }
0x30bd   :  { %v5996_v49 = vcombine.high %v5995_v45, %v5995_v45  ;;  %v6003_v50 = vrot.slane %v5995_v45, %v7592_v19 }
0x30be   :  { %v6028_v16 = vcombine.low %v5980_v43, %v5987_v46 }
0x30bf   :  { %v6010_v51 = vrot.slane %v5996_v49, %v7592_v19  ;;  %v6011_v53 = vcombine.high %v6003_v50, %v6003_v50  ;;  %v6029_v48 = vcombine.low %v5988_v42, %v6003_v50 }
0x30c0   :  { %v6037_v54 = vrot.slane %v6028_v16, %v7592_v19 }
0x30c1   :  { %v6030_v57 = vcombine.low %v6010_v51, %v6011_v53  ;;  %v6044_v56 = vrot.slane %v6029_v48, %v7592_v19 }
0x30c3   :  { %v6051_v58 = vrot.slane %v6030_v57, %v7592_v19  ;;  %v6052_v44 = vcombine.low %v6037_v54, %v6044_v56 }
0x30c5   :  { %v6059_v60 = vrot.slane %v6052_v44, %v7592_v19  ;;  %v6066_v52 = vrot.slane %v6051_v58, %v7592_v19 }
0x30c7   :  { %v6067_v20 = vcombine.low %v6059_v60, %v6066_v52 }
0x30c9   :  { %7245 = vmatmul.mubr.msk.bf16.vlgmr.msra.gmra.mxu1 %vm660_vm7, %v6067_v20 }
0x30ca   :  { %7264 = vmatprep.mubr.msk.bf16.mxu1 %vm7523_vm1, %v7522_v7 }
0x3189   :  { %v6144_v18 = vpop.f32.mrf.mxu1 }
0x318a   :  { %v6145_v1 = vadd.f32 %v6144_v18, %v6096_v35  ;;  %v6382_v35 = vrot.slane %v6374_v15, %v7636_v55  ;;  %v6391_v18 = vcombine.low %v6309_v62, %v6308_v31 }
0x318b   :  { %v7246_v2 = vpop.f32.mrf.mxu1 }
0x318c   :  { %v6153_v33 = vcombine.high %v6145_v1, %v6145_v1  ;;  %v6160_v3 = vrot.slane %v6145_v1, %v7636_v55  ;;  %v6398_v2 = vrot.slane %v6391_v18, %v7636_v55 }
0x318d   :  { %v6147_v47 = vpop.f32.mrf.mxu1 }
0x318e   :  { %v6167_v4 = vrot.slane %v6153_v33, %v7636_v55  ;;  %v6168_v59 = vcombine.high %v6160_v3, %v6160_v3  ;;  %v6148_v6 = vadd.f32 %v6147_v47, %v6104_v26  ;;  %v6184_v14 = vmax.f32 %v6160_v3, 0.0 }
0x318f   :  { %v7247_v12 = vpop.f32.mrf.mxu1 }
0x3190   :  { %v6169_v21 = vcombine.high %v6167_v4, %v6167_v4  ;;  %v6185_v22 = vmax.f32 %v6168_v59, 0.0  ;;  %v6186_v24 = vmax.f32 %v6167_v4, 0.0  ;;  %v6176_v30 = vrot.slane %v6148_v6, %v7636_v55 }
0x3192   :  { %v6187_v36 = vmax.f32 %v6169_v21, 0.0  ;;  %v6204_v37 = vcombine.low %v6184_v14, %v6185_v22  ;;  %v6177_v38 = vcombine.high %v6176_v30, %v6176_v30  ;;  %v6188_v39 = vmax.f32 %v6176_v30, 0.0 }
0x3193   :  { %v6218_v40 = vrot.slane %v6186_v24, %v7636_v55 }
0x3194   :  { %v6211_v5 = vrot.slane %v6204_v37, %v7636_v55  ;;  %v6189_v25 = vmax.f32 %v6177_v38, 0.0  ;;  %v6220_v34 = vcombine.low %v6187_v36, %v6188_v39 }
0x3196   :  { %v6219_v0 = vcombine.low %v6211_v5, %v6218_v40  ;;  %v6234_v63 = vrot.slane %v6189_v25, %v7636_v55  ;;  %v6227_v43 = vrot.slane %v6220_v34, %v7636_v55 }
0x3198   :  { %v6238_v45 = vpack.c.bf16 %v6219_v0, %v6219_v0  ;;  %v6235_v46 = vcombine.low %v6227_v43, %v6234_v63 }
0x319a   :  { %v6254_v42 = vrot.slane %v6238_v45, %v7592_v19  ;;  %v6239_v49 = vpack.c.bf16 %v6235_v46, %v6235_v46 }
0x319c   :  { %v6255_v50 = vcombine.high %v6254_v42, %v6254_v42  ;;  %v6262_v16 = vrot.slane %v6254_v42, %v7592_v19  ;;  %v6277_v51 = vrot.slane %v6239_v49, %v7592_v19 }
0x319e   :  { %v6269_v53 = vrot.slane %v6255_v50, %v7592_v19  ;;  %v6270_v48 = vcombine.high %v6262_v16, %v6262_v16  ;;  %v6278_v54 = vcombine.high %v6277_v51, %v6277_v51  ;;  %v6285_v57 = vrot.slane %v6277_v51, %v7592_v19 }
0x31a0   :  { %v6310_v56 = vcombine.low %v6262_v16, %v6269_v53  ;;  %v6292_v58 = vrot.slane %v6278_v54, %v7592_v19  ;;  %v6293_v44 = vcombine.high %v6285_v57, %v6285_v57  ;;  %v6311_v60 = vcombine.low %v6270_v48, %v6285_v57  ;;  %v7342_v48 = vld [vmem:[%s6664_s15] sm:$0xff]  }
0x31a1   :  { %v72_v54 = vstv %s6665_s22 }
0x31a2   :  { %v6319_v52 = vrot.slane %v6310_v56, %v7592_v19  ;;  %v6312_v20 = vcombine.low %v6292_v58, %v6293_v44  ;;  %v6326_v17 = vrot.slane %v6311_v60, %v7592_v19  ;;  %73 = vst [vmem:[#allocation3] sm:$0x1] %v72_v54 }
0x31a4   :  { %v6333_v29 = vrot.slane %v6312_v20, %v7592_v19  ;;  %v6334_v61 = vcombine.low %v6319_v52, %v6326_v17  ;;  %v6771_v20 = vld [vmem:[%s6662_s7] ss:$0 sm:$0xff] }
0x31a6   :  { %v6341_v32 = vrot.slane %v6334_v61, %v7592_v19  ;;  %v6348_v23 = vrot.slane %v6333_v29, %v7592_v19  ;;  %v6389_v19 = vrot.slane %v6375_v13, %v7636_v55  ;;  %v6772_v61 = vld [vmem:[%s6663_s28] ss:$0 sm:$0xff] }
0x31a8   :  { %v6349_v9 = vcombine.low %v6341_v32, %v6348_v23  ;;  %v6390_v28 = vcombine.low %v6382_v35, %v6389_v19 }
0x31a9   :  { %v6773_v18 = vld [vmem:[#allocation3] ss:$0 sm:$0xff] }
0x31aa   :  { %7257 = vmatmul.mubr.msk.bf16.vlgmr.msra.gmra.mxu0 %vm3872_vm14, %v6349_v9 }
0x326a   :  { %v6438_v1 = vpop.f32.mrf.mxu0 }
0x326b   :  { %v6439_v26 = vadd.f32 %v6438_v1, %v6390_v28 }
0x326c   :  { %v7258_v33 = vpop.f32.mrf.mxu0 }
0x326d   :  { %v6447_v3 = vcombine.high %v6439_v26, %v6439_v26  ;;  %v6454_v47 = vrot.slane %v6439_v26, %v7636_v55 }
0x326e   :  { %v6441_v4 = vpop.f32.mrf.mxu0 }
0x326f   :  { %v6461_v59 = vrot.slane %v6447_v3, %v7636_v55  ;;  %v6462_v6 = vcombine.high %v6454_v47, %v6454_v47  ;;  %v6442_v14 = vadd.f32 %v6441_v4, %v6398_v2 }
0x3270   :  { %v7259_v12 = vpop.f32.mrf.mxu0 }
0x3271   :  { %v6472_v21 = vcombine.low %v6454_v47, %v6462_v6  ;;  %v6463_v22 = vcombine.high %v6461_v59, %v6461_v59  ;;  %v6470_v24 = vrot.slane %v6442_v14, %v7636_v55  ;;  %v6486_v36 = vrot.slane %v6461_v59, %v7636_v55 }
0x3273   :  { %v6479_v30 = vrot.slane %v6472_v21, %v7636_v55  ;;  %v6471_v37 = vcombine.high %v6470_v24, %v6470_v24  ;;  %v6488_v38 = vcombine.low %v6463_v22, %v6470_v24 }
0x3275   :  { %v6495_v39 = vrot.slane %v6488_v38, %v7636_v55  ;;  %v6502_v5 = vrot.slane %v6471_v37, %v7636_v55  ;;  %v6487_v40 = vcombine.low %v6479_v30, %v6486_v36 }
0x3277   :  { %v6506_v25 = vadd.f32 %v6487_v40, %v8640_v8  ;;  %v6503_v34 = vcombine.low %v6495_v39, %v6502_v5 }
0x3279   :  { %v6510_v0 = vsel %vm3379_vm13, %v6506_v25, 0.0  ;;  %v6507_v63 = vadd.f32 %v6503_v34, %v8644_v41  ;;  %v7341_v41 = vld [vmem:[%s6664_s15 + $0x8] sm:$0xff]  }
0x327a   :  { %6511 = vadd.xlane.f32.xlu1 %v6510_v0  ;;  %7261 = vmatpush3.bf16.msra.mxu1 %v7341_v41 }
0x327b   :  { %v6513_v43 = vsel %vm3379_vm13, %v6507_v63, 0.0  ;;  %7262 = vmatprep.subr.bf16.mxu1 %v7522_v7 }
0x327c   :  { %6514 = vadd.xlane.f32.xlu0 %v6513_v43 }
0x327e   :  { %7263 = vmatpush3.bf16.msra.mxu1 %v7342_v48 }
0x3303   :  { %v6512_v45 = vpop.xlane.xlu1 %6511 }
0x3304   :  { %v6516_v46 = vmul.f32 0.03125, %v6512_v45 }
0x3305   :  { %v6515_v42 = vpop.xlane.xlu0 %6514 }
0x3306   :  { %v6518_v49 = vsub.f32 %v6506_v25, %v6516_v46  ;;  %v6517_v50 = vmul.f32 0.03125, %v6515_v42 }
0x3308   :  { %v6519_v16 = vsub.f32 %v6507_v63, %v6517_v50  ;;  %v6520_v51 = vmul.f32 %v6518_v49, %v6518_v49 }
0x330a   :  { %v6522_v55 = vsel %vm3379_vm13, %v6520_v51, 0.0  ;;  %v6521_v53 = vmul.f32 %v6519_v16, %v6519_v16 }
0x330b   :  { %6523 = vadd.xlane.f32.xlu1 %v6522_v55 }
0x330c   :  { %v6525_v8 = vsel %vm3379_vm13, %v6521_v53, 0.0 }
0x330d   :  { %6526 = vadd.xlane.f32.xlu0 %v6525_v8 }
0x3394   :  { %v6524_v57 = vpop.xlane.xlu1 %6523 }
0x3395   :  { %v6528_v56 = vmul.f32 0.03125, %v6524_v57 }
0x3396   :  { %v6527_v58 = vpop.xlane.xlu0 %6526 }
0x3397   :  { %v6530_v44 = vadd.f32 1e-05, %v6528_v56  ;;  %v6529_v60 = vmul.f32 0.03125, %v6527_v58 }
0x3399   :  { %7515 = vrsqrt.f32 %v6530_v44  ;;  %v6531_v52 = vadd.f32 1e-05, %v6529_v60 }
0x339b   :  { %7517 = vrsqrt.f32 %v6531_v52 }
0x33a6   :  { %v7516_v7 = vpop.eup %7515 }
0x33a7   :  { %v6534_v17 = vmul.f32 %v7516_v7, %v6518_v49 }
0x33a8   :  { %v7518_v29 = vpop.eup %7517 }
0x33a9   :  { %v6542_v32 = vmul.f32 %v6771_v20, %v6534_v17  ;;  %v6535_v23 = vmul.f32 %v7518_v29, %v6519_v16 }
0x33ab   :  { %v6543_v9 = vmul.f32 %v6771_v20, %v6535_v23  ;;  %v6550_v11 = vadd.f32 %v6772_v61, %v6542_v32 }
0x33ad   :  { %v6551_v10 = vadd.f32 %v6772_v61, %v6543_v9  ;;  %v6556_v27 = vpack.c.bf16 %v6550_v11, %v6550_v11 }
0x33af   :  { %v6557_v31 = vpack.c.bf16 %v6551_v10, %v6551_v10  ;;  %v6567_v62 = vunpack.c.l.b16 %v6556_v27 }
0x33b1   :  { %v6568_v15 = vunpack.c.l.b16 %v6557_v31  ;;  %v6569_v13 = vrot.slane %v6567_v62, 5 }
0x33b3   :  { %v6570_v35 = vrot.slane %v6568_v15, 4 }
0x33b5   :  { %v6571_v19 = vsel %vm791_vm6, %v6570_v35, %v6569_v13 }
0x33b6   :  { %v6572_v28 = vpack.c.b16 %v6571_v19, %v6571_v19 }
0x33b8   :  { %7265 = vmatmul.mubr.msk.bf16.vlgmr.msra.gmra.mxu1 %vm660_vm7, %v6572_v28 }
0x3478   :  { %v6622_v1 = vpop.f32.mrf.mxu1 }
0x3479   :  { %v6623_v26 = vadd.f32 %v6773_v18, %v6622_v1 }
0x347a   :  { %v7266_v2 = vpop.f32.mrf.mxu1 }
0x347b   :  { %6629 = vst.msk [vmem:[%s6666_s19] sm:$0x3] %vm6628_vm15, %v6623_v26 }
0x347c   :  { %v6625_v33 = vpop.f32.mrf.mxu1 }
0x347e   :  { %v7267_v3 = vpop.f32.mrf.mxu1 }

</bundles_post_ra>
